<compile_context>
chip_gen: v7x
topology: tpu7x:2x2x1
jax: 0.10.0
libtpu: 0.0.40
codegen_flags: <defaults>
</compile_context>

<pallas_src>
import functools

import jax
import jax.numpy as jnp
from jax import lax
from jax.experimental import pallas as pl
from jax.experimental.pallas import tpu as pltpu


# ----------------------------------------------------------------------------
# Kernel: one (group, spatial-row tile) per grid step.
# ----------------------------------------------------------------------------
def _conv_bnstats_kernel(x_ref, w_ref, y_ref, s1_ref, s2_ref):
    # x_ref : (3, 1, N, H+2, W, Cg) bf16  ReLU'd, zero-padded, width-pre-shifted (kw=0,1,2)
    # w_ref : (1, 9, Cg, Cg)        bf16  per-group weights, index kh*3+kw -> (cin, cout)
    # y_ref : (1, N, TH, W, Cg)     bf16  raw conv output tile
    # s1_ref: (1, 1, Cg)            f32   per-group sum(y)    (resident across tiles)
    # s2_ref: (1, 1, Cg)            f32   per-group sum(y*y)  (resident across tiles)
    _, _, N, Hp, W, Cg = x_ref.shape
    TH = y_ref.shape[2]
    t = pl.program_id(1)
    row0 = t * TH
    M = N * TH * W

    # 3x3 conv as 9 unrolled accumulating dots into a single f32 accumulator.
    # Width shifts were materialized in the wrapper, so each tap is only an
    # H-offset on a resident VMEM block -- no sublane/lane relayout copies.
    acc = None
    for kh in range(3):
        for kw in range(3):
            tap = x_ref[kw, 0, :, pl.ds(row0 + kh, TH), :, :].reshape(M, Cg)
            d = jnp.dot(tap, w_ref[0, kh * 3 + kw],
                        preferred_element_type=jnp.float32)
            acc = d if acc is None else acc + d

    # Two-phase BatchNorm, phase 1: accumulate per-channel batch sums across the
    # spatial tiles of this group.  The stats blocks keep the same block index
    # for every tile, so they stay resident in VMEM (accumulator pattern).
    @pl.when(t == 0)
    def _():
        s1_ref[...] = jnp.zeros_like(s1_ref)
        s2_ref[...] = jnp.zeros_like(s2_ref)

    s1_ref[...] += jnp.sum(acc, axis=0, keepdims=True)[None]
    s2_ref[...] += jnp.sum(acc * acc, axis=0, keepdims=True)[None]

    # Raw conv output in bf16; normalization happens in the wrapper fused with
    # the mandatory NCHW transpose.
    y_ref[...] = acc.reshape(1, N, TH, W, Cg).astype(y_ref.dtype)


def conv_bnstats(x3, w_g, *, tile_h):
    """x3: (3, G, N, H+2, W, Cg) bf16, w_g: (G, 9, Cg, Cg) bf16
    -> (y (G,N,H,W,Cg) bf16, s1 (G,1,Cg) f32, s2 (G,1,Cg) f32)."""
    _, G, N, Hp, W, Cg = x3.shape
    H = Hp - 2
    assert H % tile_h == 0, "tile_h must divide H"
    n_tiles = H // tile_h
    return pl.pallas_call(
        _conv_bnstats_kernel,
        out_shape=(
            jax.ShapeDtypeStruct((G, N, H, W, Cg), jnp.bfloat16),
            jax.ShapeDtypeStruct((G, 1, Cg), jnp.float32),
            jax.ShapeDtypeStruct((G, 1, Cg), jnp.float32),
        ),
        grid_spec=pltpu.PrefetchScalarGridSpec(
            num_scalar_prefetch=0,
            grid=(G, n_tiles),
            in_specs=[
                # Whole per-group (pre-shifted, padded) input: index ignores the
                # tile axis, so it is DMA'd once per group, stays resident
                # across tiles, and the next group's block is prefetched under
                # the current group's compute.
                pl.BlockSpec((3, 1, N, Hp, W, Cg),
                             lambda g, t: (0, g, 0, 0, 0, 0)),
                # Per-group weight slab, also resident across tiles.
                pl.BlockSpec((1, 9, Cg, Cg), lambda g, t: (g, 0, 0, 0)),
            ],
            out_specs=[
                pl.BlockSpec((1, N, tile_h, W, Cg), lambda g, t: (g, 0, t, 0, 0)),
                pl.BlockSpec((1, 1, Cg), lambda g, t: (g, 0, 0)),
                pl.BlockSpec((1, 1, Cg), lambda g, t: (g, 0, 0)),
            ],
        ),
        compiler_params=pltpu.CompilerParams(
            # Group axis -> 2-TC megacore split; tile axis carries the BN
            # reduction and must stay on one core.
            dimension_semantics=("parallel", "arbitrary"),
            vmem_limit_bytes=48 * 1024 * 1024,
        ),
    )(x3, w_g)


def _pick_tile_h(N, H, W, target_m=512):
    """Smallest divisor of H giving at least ~target_m matmul rows per tile
    (amortizes MXU fill/drain on the ragged Cg=264 column tile)."""
    for th in range(1, H + 1):
        if H % th == 0 and N * th * W >= target_m:
            return th
    return H


# ----------------------------------------------------------------------------
# Module wrapper: mirrors M.forward(x23) with x in NCHW (PyTorch convention).
# ----------------------------------------------------------------------------
def m_forward(x_nchw, w_oihw, gamma, beta, groups=2, eps=1e-5, tile_h=None):
    N, C, H, W = x_nchw.shape
    G = groups
    Cg = C // G
    if tile_h is None:
        tile_h = _pick_tile_h(N, H, W)

    # ReLU in f32 on the wrapper side (fuses with transpose/pad/cast under jit;
    # relu(0)==0 so the zero padding below is unaffected).
    xr = jnp.maximum(x_nchw, 0.0)
    xg = xr.reshape(N, G, Cg, H, W).transpose(1, 0, 3, 4, 2)        # (G,N,H,W,Cg)
    xg = jnp.pad(xg.astype(jnp.bfloat16),
                 ((0, 0), (0, 0), (1, 1), (1, 1), (0, 0)))          # (G,N,H+2,W+2,Cg)
    # Three width-pre-shifted copies so the kernel never slices the sublane (W)
    # axis (input is tiny; the shifts fuse with the pad/cast in XLA).
    x3 = jnp.stack([xg[:, :, :, kw:kw + W, :] for kw in range(3)],
                   axis=0)                                          # (3,G,N,H+2,W,Cg)

    # Conv weights: (Cout=G*Cg, Cg_in, 3, 3) -> (G, kh*3+kw, cin, cout), bf16.
    w_g = (w_oihw.reshape(G, Cg, Cg, 3, 3)
                 .transpose(0, 3, 4, 2, 1)
                 .reshape(G, 9, Cg, Cg)
                 .astype(jnp.bfloat16))

    y, s1, s2 = conv_bnstats(x3, w_g, tile_h=tile_h)                # phase 1

    # Phase 2: BatchNorm (training mode, biased variance) from f32 sums; the
    # per-element normalize fuses with the required NCHW transpose in XLA.
    cnt = float(N * H * W)
    mean = s1[:, 0, :] / cnt                                        # (G, Cg)
    var = s2[:, 0, :] / cnt - mean * mean
    gamma_g = gamma.reshape(G, Cg).astype(jnp.float32)
    beta_g = beta.reshape(G, Cg).astype(jnp.float32)
    scale = gamma_g * lax.rsqrt(var + eps)
    shift = beta_g - mean * scale
    # TODO(synk): BatchNorm running_mean / running_var updates (momentum=0.1,
    # unbiased var) are module-state side effects; mean/var are available here
    # but not returned since forward() only returns the normalized tensor.

    out = (y.astype(jnp.float32) * scale[:, None, None, None, :]
           + shift[:, None, None, None, :])                         # (G,N,H,W,Cg) f32
    return out.transpose(1, 0, 4, 2, 3).reshape(N, C, H, W)


# ----------------------------------------------------------------------------
# Pure-JAX f32 reference (for correctness check).
# ----------------------------------------------------------------------------
def reference_forward(x_nchw, w_oihw, gamma, beta, groups=2, eps=1e-5):
    xr = jnp.maximum(x_nchw, 0.0)
    y = lax.conv_general_dilated(
        xr, w_oihw, window_strides=(1, 1), padding=((1, 1), (1, 1)),
        dimension_numbers=("NCHW", "OIHW", "NCHW"),
        feature_group_count=groups, precision=lax.Precision.HIGHEST)
    mean = jnp.mean(y, axis=(0, 2, 3), keepdims=True)
    var = jnp.mean((y - mean) ** 2, axis=(0, 2, 3), keepdims=True)
    g = gamma.reshape(1, -1, 1, 1)
    b = beta.reshape(1, -1, 1, 1)
    return g * (y - mean) * lax.rsqrt(var + eps) + b


if __name__ == "__main__":
    # Channel count fixed by the module (528, groups=2); spatial reduced from
    # 56x56 to 8x8, batch=2.  tile_h=4 forces 2 spatial tiles per group so the
    # cross-tile BN-statistics accumulation path is exercised.
    N, C, H, W = 2, 528, 8, 8
    G = 2
    Cg = C // G

    key = jax.random.PRNGKey(0)
    kx, kw, kg, kb = jax.random.split(key, 4)
    x = jax.random.normal(kx, (N, C, H, W), dtype=jnp.float32)
    w = jax.random.normal(kw, (C, Cg, 3, 3), dtype=jnp.float32) * 0.05
    gamma = 1.0 + 0.1 * jax.random.normal(kg, (C,), dtype=jnp.float32)
    beta = 0.1 * jax.random.normal(kb, (C,), dtype=jnp.float32)

    fwd = jax.jit(functools.partial(m_forward, tile_h=4))
    out = jax.block_until_ready(fwd(x, w, gamma, beta))

    ref = reference_forward(x, w, gamma, beta)
    assert out.shape == (N, C, H, W)
    max_err = float(jnp.max(jnp.abs(out - ref)))
    # bf16 MXU inputs + bf16 raw-conv storage with f32 accumulation/stats.
    assert jnp.allclose(out, ref, rtol=3e-2, atol=3e-2), f"max abs err = {max_err}"

    print("KERNEL_OK")
</pallas_src>

<mosaic_0001>
module attributes {stable_mosaic.version = 11 : i64} {
  func.func @_conv_bnstats_kernel(%arg0: i32, %arg1: i32, %arg2: memref<3x1x2x10x8x264xbf16, #tpu.memory_space<vmem>>, %arg3: memref<1x9x264x264xbf16, #tpu.memory_space<vmem>>, %arg4: memref<1x2x4x8x264xbf16, #tpu.memory_space<vmem>>, %arg5: memref<1x1x264xf32, #tpu.memory_space<vmem>>, %arg6: memref<1x1x264xf32, #tpu.memory_space<vmem>>) attributes {dimension_semantics = [#tpu.dimension_semantics<parallel>, #tpu.dimension_semantics<arbitrary>], iteration_bounds = array<i64: 2, 2>, scalar_prefetch = 0 : i64, scratch_operands = 0 : i64, tpu.core_type = #tpu.core_type<tc>, window_params = [{transform_indices = @transform_0, window_bounds = array<i64: 3, 1, 2, 10, 8, 264>}, {transform_indices = @transform_1, window_bounds = array<i64: 1, 9, 264, 264>}, {transform_indices = @transform_2, window_bounds = array<i64: 1, 2, 4, 8, 264>}, {transform_indices = @transform_3, window_bounds = array<i64: 1, 1, 264>}, {transform_indices = @transform_4, window_bounds = array<i64: 1, 1, 264>}]} {
    %c4_i32 = arith.constant 4 : i32
    %0 = arith.muli %arg1, %c4_i32 : i32
    %c0_i32 = arith.constant 0 : i32
    %1 = arith.addi %0, %c0_i32 : i32
    %c0 = arith.constant 0 : index
    %c0_0 = arith.constant 0 : index
    %c0_1 = arith.constant 0 : index
    %2 = arith.index_cast %1 : i32 to index
    %c0_2 = arith.constant 0 : index
    %c0_3 = arith.constant 0 : index
    %3 = vector.load %arg2[%c0, %c0_0, %c0_1, %2, %c0_2, %c0_3] : memref<3x1x2x10x8x264xbf16, #tpu.memory_space<vmem>>, vector<1x1x2x4x8x264xbf16>
    %4 = vector.shape_cast %3 : vector<1x1x2x4x8x264xbf16> to vector<2x4x8x264xbf16>
    %5 = vector.shape_cast %4 : vector<2x4x8x264xbf16> to vector<64x264xbf16>
    %c0_4 = arith.constant 0 : index
    %c0_5 = arith.constant 0 : index
    %c0_6 = arith.constant 0 : index
    %c0_7 = arith.constant 0 : index
    %6 = vector.load %arg3[%c0_4, %c0_5, %c0_6, %c0_7] : memref<1x9x264x264xbf16, #tpu.memory_space<vmem>>, vector<1x1x264x264xbf16>
    %7 = vector.shape_cast %6 : vector<1x1x264x264xbf16> to vector<264x264xbf16>
    %cst = arith.constant dense<0.000000e+00> : vector<64x264xf32>
    %8 = tpu.matmul %5, %7, %cst {dimension_numbers = #tpu.dot_dimension_numbers<[1], [0], [0], [1], [0, 0, 1, 1], [], []>} : vector<64x264xbf16>, vector<264x264xbf16>, vector<64x264xf32> -> vector<64x264xf32>
    %c0_i32_8 = arith.constant 0 : i32
    %9 = arith.addi %0, %c0_i32_8 : i32
    %c1 = arith.constant 1 : index
    %c0_9 = arith.constant 0 : index
    %c0_10 = arith.constant 0 : index
    %10 = arith.index_cast %9 : i32 to index
    %c0_11 = arith.constant 0 : index
    %c0_12 = arith.constant 0 : index
    %11 = vector.load %arg2[%c1, %c0_9, %c0_10, %10, %c0_11, %c0_12] : memref<3x1x2x10x8x264xbf16, #tpu.memory_space<vmem>>, vector<1x1x2x4x8x264xbf16>
    %12 = vector.shape_cast %11 : vector<1x1x2x4x8x264xbf16> to vector<2x4x8x264xbf16>
    %13 = vector.shape_cast %12 : vector<2x4x8x264xbf16> to vector<64x264xbf16>
    %c0_13 = arith.constant 0 : index
    %c1_14 = arith.constant 1 : index
    %c0_15 = arith.constant 0 : index
    %c0_16 = arith.constant 0 : index
    %14 = vector.load %arg3[%c0_13, %c1_14, %c0_15, %c0_16] : memref<1x9x264x264xbf16, #tpu.memory_space<vmem>>, vector<1x1x264x264xbf16>
    %15 = vector.shape_cast %14 : vector<1x1x264x264xbf16> to vector<264x264xbf16>
    %cst_17 = arith.constant dense<0.000000e+00> : vector<64x264xf32>
    %16 = tpu.matmul %13, %15, %cst_17 {dimension_numbers = #tpu.dot_dimension_numbers<[1], [0], [0], [1], [0, 0, 1, 1], [], []>} : vector<64x264xbf16>, vector<264x264xbf16>, vector<64x264xf32> -> vector<64x264xf32>
    %17 = arith.addf %8, %16 : vector<64x264xf32>
    %c0_i32_18 = arith.constant 0 : i32
    %18 = arith.addi %0, %c0_i32_18 : i32
    %c2 = arith.constant 2 : index
    %c0_19 = arith.constant 0 : index
    %c0_20 = arith.constant 0 : index
    %19 = arith.index_cast %18 : i32 to index
    %c0_21 = arith.constant 0 : index
    %c0_22 = arith.constant 0 : index
    %20 = vector.load %arg2[%c2, %c0_19, %c0_20, %19, %c0_21, %c0_22] : memref<3x1x2x10x8x264xbf16, #tpu.memory_space<vmem>>, vector<1x1x2x4x8x264xbf16>
    %21 = vector.shape_cast %20 : vector<1x1x2x4x8x264xbf16> to vector<2x4x8x264xbf16>
    %22 = vector.shape_cast %21 : vector<2x4x8x264xbf16> to vector<64x264xbf16>
    %c0_23 = arith.constant 0 : index
    %c2_24 = arith.constant 2 : index
    %c0_25 = arith.constant 0 : index
    %c0_26 = arith.constant 0 : index
    %23 = vector.load %arg3[%c0_23, %c2_24, %c0_25, %c0_26] : memref<1x9x264x264xbf16, #tpu.memory_space<vmem>>, vector<1x1x264x264xbf16>
    %24 = vector.shape_cast %23 : vector<1x1x264x264xbf16> to vector<264x264xbf16>
    %cst_27 = arith.constant dense<0.000000e+00> : vector<64x264xf32>
    %25 = tpu.matmul %22, %24, %cst_27 {dimension_numbers = #tpu.dot_dimension_numbers<[1], [0], [0], [1], [0, 0, 1, 1], [], []>} : vector<64x264xbf16>, vector<264x264xbf16>, vector<64x264xf32> -> vector<64x264xf32>
    %26 = arith.addf %17, %25 : vector<64x264xf32>
    %c1_i32 = arith.constant 1 : i32
    %27 = arith.addi %0, %c1_i32 : i32
    %c0_28 = arith.constant 0 : index
    %c0_29 = arith.constant 0 : index
    %c0_30 = arith.constant 0 : index
    %28 = arith.index_cast %27 : i32 to index
    %c0_31 = arith.constant 0 : index
    %c0_32 = arith.constant 0 : index
    %29 = vector.load %arg2[%c0_28, %c0_29, %c0_30, %28, %c0_31, %c0_32] : memref<3x1x2x10x8x264xbf16, #tpu.memory_space<vmem>>, vector<1x1x2x4x8x264xbf16>
    %30 = vector.shape_cast %29 : vector<1x1x2x4x8x264xbf16> to vector<2x4x8x264xbf16>
    %31 = vector.shape_cast %30 : vector<2x4x8x264xbf16> to vector<64x264xbf16>
    %c0_33 = arith.constant 0 : index
    %c3 = arith.constant 3 : index
    %c0_34 = arith.constant 0 : index
    %c0_35 = arith.constant 0 : index
    %32 = vector.load %arg3[%c0_33, %c3, %c0_34, %c0_35] : memref<1x9x264x264xbf16, #tpu.memory_space<vmem>>, vector<1x1x264x264xbf16>
    %33 = vector.shape_cast %32 : vector<1x1x264x264xbf16> to vector<264x264xbf16>
    %cst_36 = arith.constant dense<0.000000e+00> : vector<64x264xf32>
    %34 = tpu.matmul %31, %33, %cst_36 {dimension_numbers = #tpu.dot_dimension_numbers<[1], [0], [0], [1], [0, 0, 1, 1], [], []>} : vector<64x264xbf16>, vector<264x264xbf16>, vector<64x264xf32> -> vector<64x264xf32>
    %35 = arith.addf %26, %34 : vector<64x264xf32>
    %c1_i32_37 = arith.constant 1 : i32
    %36 = arith.addi %0, %c1_i32_37 : i32
    %c1_38 = arith.constant 1 : index
    %c0_39 = arith.constant 0 : index
    %c0_40 = arith.constant 0 : index
    %37 = arith.index_cast %36 : i32 to index
    %c0_41 = arith.constant 0 : index
    %c0_42 = arith.constant 0 : index
    %38 = vector.load %arg2[%c1_38, %c0_39, %c0_40, %37, %c0_41, %c0_42] : memref<3x1x2x10x8x264xbf16, #tpu.memory_space<vmem>>, vector<1x1x2x4x8x264xbf16>
    %39 = vector.shape_cast %38 : vector<1x1x2x4x8x264xbf16> to vector<2x4x8x264xbf16>
    %40 = vector.shape_cast %39 : vector<2x4x8x264xbf16> to vector<64x264xbf16>
    %c0_43 = arith.constant 0 : index
    %c4 = arith.constant 4 : index
    %c0_44 = arith.constant 0 : index
    %c0_45 = arith.constant 0 : index
    %41 = vector.load %arg3[%c0_43, %c4, %c0_44, %c0_45] : memref<1x9x264x264xbf16, #tpu.memory_space<vmem>>, vector<1x1x264x264xbf16>
    %42 = vector.shape_cast %41 : vector<1x1x264x264xbf16> to vector<264x264xbf16>
    %cst_46 = arith.constant dense<0.000000e+00> : vector<64x264xf32>
    %43 = tpu.matmul %40, %42, %cst_46 {dimension_numbers = #tpu.dot_dimension_numbers<[1], [0], [0], [1], [0, 0, 1, 1], [], []>} : vector<64x264xbf16>, vector<264x264xbf16>, vector<64x264xf32> -> vector<64x264xf32>
    %44 = arith.addf %35, %43 : vector<64x264xf32>
    %c1_i32_47 = arith.constant 1 : i32
    %45 = arith.addi %0, %c1_i32_47 : i32
    %c2_48 = arith.constant 2 : index
    %c0_49 = arith.constant 0 : index
    %c0_50 = arith.constant 0 : index
    %46 = arith.index_cast %45 : i32 to index
    %c0_51 = arith.constant 0 : index
    %c0_52 = arith.constant 0 : index
    %47 = vector.load %arg2[%c2_48, %c0_49, %c0_50, %46, %c0_51, %c0_52] : memref<3x1x2x10x8x264xbf16, #tpu.memory_space<vmem>>, vector<1x1x2x4x8x264xbf16>
    %48 = vector.shape_cast %47 : vector<1x1x2x4x8x264xbf16> to vector<2x4x8x264xbf16>
    %49 = vector.shape_cast %48 : vector<2x4x8x264xbf16> to vector<64x264xbf16>
    %c0_53 = arith.constant 0 : index
    %c5 = arith.constant 5 : index
    %c0_54 = arith.constant 0 : index
    %c0_55 = arith.constant 0 : index
    %50 = vector.load %arg3[%c0_53, %c5, %c0_54, %c0_55] : memref<1x9x264x264xbf16, #tpu.memory_space<vmem>>, vector<1x1x264x264xbf16>
    %51 = vector.shape_cast %50 : vector<1x1x264x264xbf16> to vector<264x264xbf16>
    %cst_56 = arith.constant dense<0.000000e+00> : vector<64x264xf32>
    %52 = tpu.matmul %49, %51, %cst_56 {dimension_numbers = #tpu.dot_dimension_numbers<[1], [0], [0], [1], [0, 0, 1, 1], [], []>} : vector<64x264xbf16>, vector<264x264xbf16>, vector<64x264xf32> -> vector<64x264xf32>
    %53 = arith.addf %44, %52 : vector<64x264xf32>
    %c2_i32 = arith.constant 2 : i32
    %54 = arith.addi %0, %c2_i32 : i32
    %c0_57 = arith.constant 0 : index
    %c0_58 = arith.constant 0 : index
    %c0_59 = arith.constant 0 : index
    %55 = arith.index_cast %54 : i32 to index
    %c0_60 = arith.constant 0 : index
    %c0_61 = arith.constant 0 : index
    %56 = vector.load %arg2[%c0_57, %c0_58, %c0_59, %55, %c0_60, %c0_61] : memref<3x1x2x10x8x264xbf16, #tpu.memory_space<vmem>>, vector<1x1x2x4x8x264xbf16>
    %57 = vector.shape_cast %56 : vector<1x1x2x4x8x264xbf16> to vector<2x4x8x264xbf16>
    %58 = vector.shape_cast %57 : vector<2x4x8x264xbf16> to vector<64x264xbf16>
    %c0_62 = arith.constant 0 : index
    %c6 = arith.constant 6 : index
    %c0_63 = arith.constant 0 : index
    %c0_64 = arith.constant 0 : index
    %59 = vector.load %arg3[%c0_62, %c6, %c0_63, %c0_64] : memref<1x9x264x264xbf16, #tpu.memory_space<vmem>>, vector<1x1x264x264xbf16>
    %60 = vector.shape_cast %59 : vector<1x1x264x264xbf16> to vector<264x264xbf16>
    %cst_65 = arith.constant dense<0.000000e+00> : vector<64x264xf32>
    %61 = tpu.matmul %58, %60, %cst_65 {dimension_numbers = #tpu.dot_dimension_numbers<[1], [0], [0], [1], [0, 0, 1, 1], [], []>} : vector<64x264xbf16>, vector<264x264xbf16>, vector<64x264xf32> -> vector<64x264xf32>
    %62 = arith.addf %53, %61 : vector<64x264xf32>
    %c2_i32_66 = arith.constant 2 : i32
    %63 = arith.addi %0, %c2_i32_66 : i32
    %c1_67 = arith.constant 1 : index
    %c0_68 = arith.constant 0 : index
    %c0_69 = arith.constant 0 : index
    %64 = arith.index_cast %63 : i32 to index
    %c0_70 = arith.constant 0 : index
    %c0_71 = arith.constant 0 : index
    %65 = vector.load %arg2[%c1_67, %c0_68, %c0_69, %64, %c0_70, %c0_71] : memref<3x1x2x10x8x264xbf16, #tpu.memory_space<vmem>>, vector<1x1x2x4x8x264xbf16>
    %66 = vector.shape_cast %65 : vector<1x1x2x4x8x264xbf16> to vector<2x4x8x264xbf16>
    %67 = vector.shape_cast %66 : vector<2x4x8x264xbf16> to vector<64x264xbf16>
    %c0_72 = arith.constant 0 : index
    %c7 = arith.constant 7 : index
    %c0_73 = arith.constant 0 : index
    %c0_74 = arith.constant 0 : index
    %68 = vector.load %arg3[%c0_72, %c7, %c0_73, %c0_74] : memref<1x9x264x264xbf16, #tpu.memory_space<vmem>>, vector<1x1x264x264xbf16>
    %69 = vector.shape_cast %68 : vector<1x1x264x264xbf16> to vector<264x264xbf16>
    %cst_75 = arith.constant dense<0.000000e+00> : vector<64x264xf32>
    %70 = tpu.matmul %67, %69, %cst_75 {dimension_numbers = #tpu.dot_dimension_numbers<[1], [0], [0], [1], [0, 0, 1, 1], [], []>} : vector<64x264xbf16>, vector<264x264xbf16>, vector<64x264xf32> -> vector<64x264xf32>
    %71 = arith.addf %62, %70 : vector<64x264xf32>
    %c2_i32_76 = arith.constant 2 : i32
    %72 = arith.addi %0, %c2_i32_76 : i32
    %c2_77 = arith.constant 2 : index
    %c0_78 = arith.constant 0 : index
    %c0_79 = arith.constant 0 : index
    %73 = arith.index_cast %72 : i32 to index
    %c0_80 = arith.constant 0 : index
    %c0_81 = arith.constant 0 : index
    %74 = vector.load %arg2[%c2_77, %c0_78, %c0_79, %73, %c0_80, %c0_81] : memref<3x1x2x10x8x264xbf16, #tpu.memory_space<vmem>>, vector<1x1x2x4x8x264xbf16>
    %75 = vector.shape_cast %74 : vector<1x1x2x4x8x264xbf16> to vector<2x4x8x264xbf16>
    %76 = vector.shape_cast %75 : vector<2x4x8x264xbf16> to vector<64x264xbf16>
    %c0_82 = arith.constant 0 : index
    %c8 = arith.constant 8 : index
    %c0_83 = arith.constant 0 : index
    %c0_84 = arith.constant 0 : index
    %77 = vector.load %arg3[%c0_82, %c8, %c0_83, %c0_84] : memref<1x9x264x264xbf16, #tpu.memory_space<vmem>>, vector<1x1x264x264xbf16>
    %78 = vector.shape_cast %77 : vector<1x1x264x264xbf16> to vector<264x264xbf16>
    %cst_85 = arith.constant dense<0.000000e+00> : vector<64x264xf32>
    %79 = tpu.matmul %76, %78, %cst_85 {dimension_numbers = #tpu.dot_dimension_numbers<[1], [0], [0], [1], [0, 0, 1, 1], [], []>} : vector<64x264xbf16>, vector<264x264xbf16>, vector<64x264xf32> -> vector<64x264xf32>
    %80 = arith.addf %71, %79 : vector<64x264xf32>
    %c0_i32_86 = arith.constant 0 : i32
    %81 = arith.cmpi eq, %arg1, %c0_i32_86 : i32
    %82 = arith.extui %81 : i1 to i32
    %c0_i32_87 = arith.constant 0 : i32
    %83 = arith.cmpi ne, %82, %c0_i32_87 : i32
    scf.if %83 {
      %cst_107 = arith.constant 0.000000e+00 : f32
      %100 = vector.broadcast %cst_107 : f32 to vector<1x1x264xf32>
      %c0_108 = arith.constant 0 : index
      %c0_109 = arith.constant 0 : index
      %c0_110 = arith.constant 0 : index
      %101 = vector.load %arg5[%c0_108, %c0_109, %c0_110] : memref<1x1x264xf32, #tpu.memory_space<vmem>>, vector<1x1x264xf32>
      tpu.vector_store %arg5[%c0_108, %c0_109, %c0_110], %100 {strides = array<i32>} : memref<1x1x264xf32, #tpu.memory_space<vmem>>, vector<1x1x264xf32>,
      %cst_111 = arith.constant 0.000000e+00 : f32
      %102 = vector.broadcast %cst_111 : f32 to vector<1x1x264xf32>
      %c0_112 = arith.constant 0 : index
      %c0_113 = arith.constant 0 : index
      %c0_114 = arith.constant 0 : index
      %103 = vector.load %arg6[%c0_112, %c0_113, %c0_114] : memref<1x1x264xf32, #tpu.memory_space<vmem>>, vector<1x1x264xf32>
      tpu.vector_store %arg6[%c0_112, %c0_113, %c0_114], %102 {strides = array<i32>} : memref<1x1x264xf32, #tpu.memory_space<vmem>>, vector<1x1x264xf32>,
    } else {
    }
    %c0_88 = arith.constant 0 : index
    %c0_89 = arith.constant 0 : index
    %c0_90 = arith.constant 0 : index
    %84 = vector.load %arg5[%c0_88, %c0_89, %c0_90] : memref<1x1x264xf32, #tpu.memory_space<vmem>>, vector<1x1x264xf32>
    %cst_91 = arith.constant dense<0.000000e+00> : vector<264xf32>
    %85 = vector.multi_reduction <add>, %80, %cst_91 [0] : vector<64x264xf32> to vector<264xf32>
    %86 = vector.shape_cast %85 : vector<264xf32> to vector<1x264xf32>
    %87 = vector.shape_cast %86 : vector<1x264xf32> to vector<1x1x264xf32>
    %88 = arith.addf %84, %87 : vector<1x1x264xf32>
    %c0_92 = arith.constant 0 : index
    %c0_93 = arith.constant 0 : index
    %c0_94 = arith.constant 0 : index
    %89 = vector.load %arg5[%c0_92, %c0_93, %c0_94] : memref<1x1x264xf32, #tpu.memory_space<vmem>>, vector<1x1x264xf32>
    tpu.vector_store %arg5[%c0_92, %c0_93, %c0_94], %88 {strides = array<i32>} : memref<1x1x264xf32, #tpu.memory_space<vmem>>, vector<1x1x264xf32>,
    %c0_95 = arith.constant 0 : index
    %c0_96 = arith.constant 0 : index
    %c0_97 = arith.constant 0 : index
    %90 = vector.load %arg6[%c0_95, %c0_96, %c0_97] : memref<1x1x264xf32, #tpu.memory_space<vmem>>, vector<1x1x264xf32>
    %91 = arith.mulf %80, %80 : vector<64x264xf32>
    %cst_98 = arith.constant dense<0.000000e+00> : vector<264xf32>
    %92 = vector.multi_reduction <add>, %91, %cst_98 [0] : vector<64x264xf32> to vector<264xf32>
    %93 = vector.shape_cast %92 : vector<264xf32> to vector<1x264xf32>
    %94 = vector.shape_cast %93 : vector<1x264xf32> to vector<1x1x264xf32>
    %95 = arith.addf %90, %94 : vector<1x1x264xf32>
    %c0_99 = arith.constant 0 : index
    %c0_100 = arith.constant 0 : index
    %c0_101 = arith.constant 0 : index
    %96 = vector.load %arg6[%c0_99, %c0_100, %c0_101] : memref<1x1x264xf32, #tpu.memory_space<vmem>>, vector<1x1x264xf32>
    tpu.vector_store %arg6[%c0_99, %c0_100, %c0_101], %95 {strides = array<i32>} : memref<1x1x264xf32, #tpu.memory_space<vmem>>, vector<1x1x264xf32>,
    %97 = vector.shape_cast %80 : vector<64x264xf32> to vector<1x2x4x8x264xf32>
    %98 = arith.truncf %97 : vector<1x2x4x8x264xf32> to vector<1x2x4x8x264xbf16>
    %c0_102 = arith.constant 0 : index
    %c0_103 = arith.constant 0 : index
    %c0_104 = arith.constant 0 : index
    %c0_105 = arith.constant 0 : index
    %c0_106 = arith.constant 0 : index
    %99 = vector.load %arg4[%c0_102, %c0_103, %c0_104, %c0_105, %c0_106] : memref<1x2x4x8x264xbf16, #tpu.memory_space<vmem>>, vector<1x2x4x8x264xbf16>
    tpu.vector_store %arg4[%c0_102, %c0_103, %c0_104, %c0_105, %c0_106], %98 {strides = array<i32>} : memref<1x2x4x8x264xbf16, #tpu.memory_space<vmem>>, vector<1x2x4x8x264xbf16>,
    return
  }
  func.func @transform_0(%arg0: i32, %arg1: i32) -> (i32, i32, i32, i32, i32, i32) {
    %c0_i32 = arith.constant 0 : i32
    %c0_i32_0 = arith.constant 0 : i32
    %c0_i32_1 = arith.constant 0 : i32
    %c0_i32_2 = arith.constant 0 : i32
    %c0_i32_3 = arith.constant 0 : i32
    %c0_i32_4 = arith.constant 0 : i32
    return %c0_i32, %arg0, %c0_i32_0, %c0_i32_1, %c0_i32_2, %c0_i32_3 : i32, i32, i32, i32, i32, i32
  }
  func.func @transform_1(%arg0: i32, %arg1: i32) -> (i32, i32, i32, i32) {
    %c0_i32 = arith.constant 0 : i32
    %c0_i32_0 = arith.constant 0 : i32
    %c0_i32_1 = arith.constant 0 : i32
    %c0_i32_2 = arith.constant 0 : i32
    return %arg0, %c0_i32, %c0_i32_0, %c0_i32_1 : i32, i32, i32, i32
  }
  func.func @transform_2(%arg0: i32, %arg1: i32) -> (i32, i32, i32, i32, i32) {
    %c0_i32 = arith.constant 0 : i32
    %c0_i32_0 = arith.constant 0 : i32
    %c0_i32_1 = arith.constant 0 : i32
    %c0_i32_2 = arith.constant 0 : i32
    return %arg0, %c0_i32, %arg1, %c0_i32_0, %c0_i32_1 : i32, i32, i32, i32, i32
  }
  func.func @transform_3(%arg0: i32, %arg1: i32) -> (i32, i32, i32) {
    %c0_i32 = arith.constant 0 : i32
    %c0_i32_0 = arith.constant 0 : i32
    %c0_i32_1 = arith.constant 0 : i32
    return %arg0, %c0_i32, %c0_i32_0 : i32, i32, i32
  }
  func.func @transform_4(%arg0: i32, %arg1: i32) -> (i32, i32, i32) {
    %c0_i32 = arith.constant 0 : i32
    %c0_i32_0 = arith.constant 0 : i32
    %c0_i32_1 = arith.constant 0 : i32
    return %arg0, %c0_i32, %c0_i32_0 : i32, i32, i32
  }
}

</mosaic_0001>

<bundles_post_ra>
// kernel: m_forward.1
= control target key start
LH: loop header
LB: loop body
LE: loop exit
PB: predicated region body
PF: predicated region fallthrough
CT: control target
= control target key end

     0   :  { %s13175_s0 = inlined_call_operand.vmem [shape: bf16[3,2,2,10,8,264], index: 0, kind: input, shape index: {}]   ;;  %s13176_s1 = inlined_call_operand.vmem [shape: bf16[2,9,264,264], index: 1, kind: input, shape index: {}]   ;;  %s13177_s2 = inlined_call_operand.vmem [shape: bf16[2,2,8,8,264], index: 2, kind: output, shape index: {0}]   ;;  %s13178_s3 = inlined_call_operand.vmem [shape: f32[2,1,264], index: 3, kind: output, shape index: {1}]   ;;  %s13179_s4 = inlined_call_operand.vmem [shape: f32[2,1,264], index: 4, kind: output, shape index: {2}]  }
   0x1   :  { %13197 = sst [smem:[#allocation11_spill]] %s13175_s0 }
   0x2   :  { %s10990_s15 = smov 0   ;;  %s10992_s16 = smov 0  }
   0x3   :  { %s10994_s17 = smov 0   ;;  %s10996_s18 = smov 0  }
   0x4   :  { %s10998_s19 = smov 0   ;;  %s11000_s20 = smov 0  }
   0x5   :  { %s11002_s21 = smov 0   ;;  %s11004_s22 = smov 0  }
   0x6   :  { %s11006_s23 = smov 0  }
   0x7 LB: > { %s24_s24 = sadd.s32 1, %s10952_s21  ;;  %s27_s25 = sadd.s32 1, %s10956_s22  ;;  %s10960_s23 = sphi %s11006_s23, %s15_s23   ;;  %s10956_s22 = sphi %s11004_s22, %s13240_s22   ;;  %s10952_s21 = sphi %s11002_s21, %s13239_s21   ;;  %s10948_s20 = sphi %s11000_s20, %s13238_s20   ;;  %s10944_s19 = sphi %s10998_s19, %s13237_s19   ;;  %s10940_s18 = sphi %s10996_s18, %s13236_s18   ;;  %s10936_s17 = sphi %s10994_s17, %s13235_s17   ;;  %s10932_s16 = sphi %s10992_s16, %s13234_s16   ;;  %s10928_s15 = sphi %s10990_s15, %s13233_s15  }
   0x8   : > { %p25_p0 = scmp.ge.s32.totalorder %s24_s24, 2  ;;  %p41_p1 = scmp.ne.s32.totalorder %s10940_s18, %s10936_s17 }
   0x9   : > { %s7624_s26 = sadd.s32 4294967295, %s10960_s23   ;;  %p42_p2 = scmp.eq.s32.totalorder %s10960_s23, 0 }
   0xa   : > { %s13242_s24 = smov (%p25_p0, %s24_s24), 0  ;;  %s13244_s25 = smov (!%p25_p0, %s27_s25), %s10956_s22 }
   0xb   : > { %p29_p3 = scmp.ge.s32.totalorder %s13244_s25, 2  ;;  %s84_s27 = ssub.s32 %s10952_s21, %s13242_s24 }
   0xc   : > { %p11046_p4 = por %p42_p2, %p41_p1  ;;  %p98_p5 = scmp.ne.s32.totalorder %s10932_s16, %s10928_s15 }
   0xd   : > { %s13246_s25 = smov (%p29_p3, %s13244_s25), 0  ;;  %s34_s29 = sadd.s32 1, %s10940_s18 }
   0xe   : > { %p99_p6 = scmp.eq.s32.totalorder %s7624_s26, 3  ;;  %s31_s30 = ssub.s32 %s10956_s22, %s13246_s25 }
   0xf   : > { %s88_s5 = sadd.s32 1, %s10932_s16  ;;  %p32_p7 = scmp.eq.s32.totalorder %s31_s30, 0 }
  0x10   : > { %s85_s6 = sor.u32 %s84_s27, %s31_s30  ;;  %p11058_p9 = por %p99_p6, %p98_p5 }
  0x11   : > { %p86_p8 = scmp.eq.s32.totalorder %s85_s6, 0  ;;  %p7627_p10 = scmp.ge.s32.totalorder %s10960_s23, 4 }
  0x12   : > { %s11063_s8 = scalar_select %p32_p7, %s10940_s18, %s34_s29  }
  0x13   : > { %s11066_s9 = scalar_select %p86_p8, %s10932_s16, %s88_s5  }
  0x14   : > { %173 = sbr.rel (%p7627_p10) target bundleno = 106 (0x6a), region = 16 }
  0x1b   : > { %176 = sbr.rel (!%p11046_p4) target bundleno = 106 (0x6a), region = 20  ;;  %s178_s10 = sand.u32 (%p11046_p4), 1, %s10940_s18  }
  0x1c   : > { %s10044_s11 = smul.u32 (%p11046_p4), 240, %s10956_s22  ;;  %s13200_s0 = sld [smem:[#allocation11_spill]] (%p11046_p4) }
  0x1d   : > { %s10043_s12 = smul.u32 (%p11046_p4), 720, %s178_s10 }
  0x1f   : > { %s11081_s27 = scalar_lea.vmem (%p11046_p4), [#allocation2], %s10043_s12 }
  0x22   : > { %s11076_s26 = scalar_lea.vmem %s13200_s0, %s10044_s11 }
  0x23   : > { %v198_v0 = vld [vmem:[%s11076_s26] sm:$0xff]  ;;  %v200_v1 = vld [vmem:[%s11076_s26 + $0xc] sm:$0xff]  ;;  %v202_v2 = vld [vmem:[%s11076_s26 + $0x18] sm:$0xff] }
  0x24   : > { %199 = vst [vmem:[%s11081_s27] sm:$0xff] %v198_v0  ;;  %201 = vst [vmem:[%s11081_s27 + $0xc] sm:$0xff] %v200_v1  ;;  %v204_v3 = vld [vmem:[%s11076_s26 + $0x24] sm:$0xff]  ;;  %v206_v4 = vld [vmem:[%s11076_s26 + $0x30] sm:$0xff] }
  0x25   : > { %203 = vst [vmem:[%s11081_s27 + $0x18] sm:$0xff] %v202_v2  ;;  %v208_v5 = vld [vmem:[%s11076_s26 + $0x3c] sm:$0xff]  ;;  %205 = vst [vmem:[%s11081_s27 + $0x24] sm:$0xff] %v204_v3  ;;  %v210_v6 = vld [vmem:[%s11076_s26 + $0x48] sm:$0xff] }
  0x26   : > { %207 = vst [vmem:[%s11081_s27 + $0x30] sm:$0xff] %v206_v4  ;;  %209 = vst [vmem:[%s11081_s27 + $0x3c] sm:$0xff] %v208_v5  ;;  %v212_v7 = vld [vmem:[%s11076_s26 + $0x54] sm:$0xff]  ;;  %v214_v8 = vld [vmem:[%s11076_s26 + $0x60] sm:$0xff] }
  0x27   : > { %211 = vst [vmem:[%s11081_s27 + $0x48] sm:$0xff] %v210_v6  ;;  %213 = vst [vmem:[%s11081_s27 + $0x54] sm:$0xff] %v212_v7  ;;  %v216_v9 = vld [vmem:[%s11076_s26 + $0x6c] sm:$0xff]  ;;  %v218_v10 = vld [vmem:[%s11076_s26 + $0x78] sm:$0xff] }
  0x28   : > { %215 = vst [vmem:[%s11081_s27 + $0x60] sm:$0xff] %v214_v8  ;;  %v220_v11 = vld [vmem:[%s11076_s26 + $0x84] sm:$0xff]  ;;  %217 = vst [vmem:[%s11081_s27 + $0x6c] sm:$0xff] %v216_v9  ;;  %v222_v12 = vld [vmem:[%s11076_s26 + $0x90] sm:$0xff] }
  0x29   : > { %219 = vst [vmem:[%s11081_s27 + $0x78] sm:$0xff] %v218_v10  ;;  %221 = vst [vmem:[%s11081_s27 + $0x84] sm:$0xff] %v220_v11  ;;  %v224_v13 = vld [vmem:[%s11076_s26 + $0x9c] sm:$0xff]  ;;  %v226_v14 = vld [vmem:[%s11076_s26 + $0xa8] sm:$0xff] }
  0x2a   : > { %223 = vst [vmem:[%s11081_s27 + $0x90] sm:$0xff] %v222_v12  ;;  %225 = vst [vmem:[%s11081_s27 + $0x9c] sm:$0xff] %v224_v13  ;;  %v228_v15 = vld [vmem:[%s11076_s26 + $0xb4] sm:$0xff]  ;;  %v230_v16 = vld [vmem:[%s11076_s26 + $0xc0] sm:$0xff] }
  0x2b   : > { %227 = vst [vmem:[%s11081_s27 + $0xa8] sm:$0xff] %v226_v14  ;;  %v232_v17 = vld [vmem:[%s11076_s26 + $0xcc] sm:$0xff]  ;;  %229 = vst [vmem:[%s11081_s27 + $0xb4] sm:$0xff] %v228_v15  ;;  %v234_v18 = vld [vmem:[%s11076_s26 + $0xd8] sm:$0xff] }
  0x2c   : > { %231 = vst [vmem:[%s11081_s27 + $0xc0] sm:$0xff] %v230_v16  ;;  %233 = vst [vmem:[%s11081_s27 + $0xcc] sm:$0xff] %v232_v17  ;;  %v236_v19 = vld [vmem:[%s11076_s26 + $0xe4] sm:$0xff]  ;;  %v240_v21 = vld [vmem:[%s11076_s26 + $0x1ec] sm:$0xff] }
  0x2d   : > { %v238_v20 = vld [vmem:[%s11076_s26 + $0x1e0] sm:$0xff]  ;;  %235 = vst [vmem:[%s11081_s27 + $0xd8] sm:$0xff] %v234_v18  ;;  %237 = vst [vmem:[%s11081_s27 + $0xe4] sm:$0xff] %v236_v19  ;;  %v242_v22 = vld [vmem:[%s11076_s26 + $0x1f8] sm:$0xff] }
  0x2e   : > { %239 = vst [vmem:[%s11081_s27 + $0xf0] sm:$0xff] %v238_v20  ;;  %v244_v23 = vld [vmem:[%s11076_s26 + $0x204] sm:$0xff]  ;;  %241 = vst [vmem:[%s11081_s27 + $0xfc] sm:$0xff] %v240_v21  ;;  %v246_v24 = vld [vmem:[%s11076_s26 + $0x210] sm:$0xff] }
  0x2f   : > { %243 = vst [vmem:[%s11081_s27 + $0x108] sm:$0xff] %v242_v22  ;;  %245 = vst [vmem:[%s11081_s27 + $0x114] sm:$0xff] %v244_v23  ;;  %v248_v25 = vld [vmem:[%s11076_s26 + $0x21c] sm:$0xff]  ;;  %v250_v26 = vld [vmem:[%s11076_s26 + $0x228] sm:$0xff] }
  0x30   : > { %247 = vst [vmem:[%s11081_s27 + $0x120] sm:$0xff] %v246_v24  ;;  %249 = vst [vmem:[%s11081_s27 + $0x12c] sm:$0xff] %v248_v25  ;;  %v252_v27 = vld [vmem:[%s11076_s26 + $0x234] sm:$0xff]  ;;  %v254_v28 = vld [vmem:[%s11076_s26 + $0x240] sm:$0xff] }
  0x31   : > { %251 = vst [vmem:[%s11081_s27 + $0x138] sm:$0xff] %v250_v26  ;;  %v256_v29 = vld [vmem:[%s11076_s26 + $0x24c] sm:$0xff]  ;;  %253 = vst [vmem:[%s11081_s27 + $0x144] sm:$0xff] %v252_v27  ;;  %v258_v30 = vld [vmem:[%s11076_s26 + $0x258] sm:$0xff] }
  0x32   : > { %255 = vst [vmem:[%s11081_s27 + $0x150] sm:$0xff] %v254_v28  ;;  %257 = vst [vmem:[%s11081_s27 + $0x15c] sm:$0xff] %v256_v29  ;;  %v260_v31 = vld [vmem:[%s11076_s26 + $0x264] sm:$0xff]  ;;  %v262_v32 = vld [vmem:[%s11076_s26 + $0x270] sm:$0xff] }
  0x33   : > { %259 = vst [vmem:[%s11081_s27 + $0x168] sm:$0xff] %v258_v30  ;;  %261 = vst [vmem:[%s11081_s27 + $0x174] sm:$0xff] %v260_v31  ;;  %v264_v33 = vld [vmem:[%s11076_s26 + $0x27c] sm:$0xff]  ;;  %v266_v34 = vld [vmem:[%s11076_s26 + $0x288] sm:$0xff] }
  0x34   : > { %263 = vst [vmem:[%s11081_s27 + $0x180] sm:$0xff] %v262_v32  ;;  %v268_v35 = vld [vmem:[%s11076_s26 + $0x294] sm:$0xff]  ;;  %265 = vst [vmem:[%s11081_s27 + $0x18c] sm:$0xff] %v264_v33  ;;  %v270_v36 = vld [vmem:[%s11076_s26 + $0x2a0] sm:$0xff] }
  0x35   : > { %267 = vst [vmem:[%s11081_s27 + $0x198] sm:$0xff] %v266_v34  ;;  %269 = vst [vmem:[%s11081_s27 + $0x1a4] sm:$0xff] %v268_v35  ;;  %v272_v37 = vld [vmem:[%s11076_s26 + $0x2ac] sm:$0xff]  ;;  %v274_v38 = vld [vmem:[%s11076_s26 + $0x2b8] sm:$0xff] }
  0x36   : > { %271 = vst [vmem:[%s11081_s27 + $0x1b0] sm:$0xff] %v270_v36  ;;  %273 = vst [vmem:[%s11081_s27 + $0x1bc] sm:$0xff] %v272_v37  ;;  %v276_v39 = vld [vmem:[%s11076_s26 + $0x2c4] sm:$0xff]  ;;  %v280_v41 = vld [vmem:[%s11076_s26 + $0x3cc] sm:$0xff] }
  0x37   : > { %275 = vst [vmem:[%s11081_s27 + $0x1c8] sm:$0xff] %v274_v38  ;;  %v278_v40 = vld [vmem:[%s11076_s26 + $0x3c0] sm:$0xff]  ;;  %277 = vst [vmem:[%s11081_s27 + $0x1d4] sm:$0xff] %v276_v39  ;;  %v282_v42 = vld [vmem:[%s11076_s26 + $0x3d8] sm:$0xff] }
  0x38   : > { %279 = vst [vmem:[%s11081_s27 + $0x1e0] sm:$0xff] %v278_v40  ;;  %281 = vst [vmem:[%s11081_s27 + $0x1ec] sm:$0xff] %v280_v41  ;;  %v284_v43 = vld [vmem:[%s11076_s26 + $0x3e4] sm:$0xff]  ;;  %v286_v44 = vld [vmem:[%s11076_s26 + $0x3f0] sm:$0xff] }
  0x39   : > { %283 = vst [vmem:[%s11081_s27 + $0x1f8] sm:$0xff] %v282_v42  ;;  %285 = vst [vmem:[%s11081_s27 + $0x204] sm:$0xff] %v284_v43  ;;  %v288_v45 = vld [vmem:[%s11076_s26 + $0x3fc] sm:$0xff]  ;;  %v290_v46 = vld [vmem:[%s11076_s26 + $0x408] sm:$0xff] }
  0x3a   : > { %287 = vst [vmem:[%s11081_s27 + $0x210] sm:$0xff] %v286_v44  ;;  %v292_v47 = vld [vmem:[%s11076_s26 + $0x414] sm:$0xff]  ;;  %289 = vst [vmem:[%s11081_s27 + $0x21c] sm:$0xff] %v288_v45  ;;  %v294_v48 = vld [vmem:[%s11076_s26 + $0x420] sm:$0xff] }
  0x3b   : > { %291 = vst [vmem:[%s11081_s27 + $0x228] sm:$0xff] %v290_v46  ;;  %293 = vst [vmem:[%s11081_s27 + $0x234] sm:$0xff] %v292_v47  ;;  %v296_v49 = vld [vmem:[%s11076_s26 + $0x42c] sm:$0xff]  ;;  %v298_v50 = vld [vmem:[%s11076_s26 + $0x438] sm:$0xff] }
  0x3c   : > { %295 = vst [vmem:[%s11081_s27 + $0x240] sm:$0xff] %v294_v48  ;;  %297 = vst [vmem:[%s11081_s27 + $0x24c] sm:$0xff] %v296_v49  ;;  %v300_v51 = vld [vmem:[%s11076_s26 + $0x444] sm:$0xff]  ;;  %v302_v52 = vld [vmem:[%s11076_s26 + $0x450] sm:$0xff] }
  0x3d   : > { %299 = vst [vmem:[%s11081_s27 + $0x258] sm:$0xff] %v298_v50  ;;  %v304_v53 = vld [vmem:[%s11076_s26 + $0x45c] sm:$0xff]  ;;  %301 = vst [vmem:[%s11081_s27 + $0x264] sm:$0xff] %v300_v51  ;;  %v306_v54 = vld [vmem:[%s11076_s26 + $0x468] sm:$0xff] }
  0x3e   : > { %303 = vst [vmem:[%s11081_s27 + $0x270] sm:$0xff] %v302_v52  ;;  %305 = vst [vmem:[%s11081_s27 + $0x27c] sm:$0xff] %v304_v53  ;;  %v308_v55 = vld [vmem:[%s11076_s26 + $0x474] sm:$0xff]  ;;  %v310_v56 = vld [vmem:[%s11076_s26 + $0x480] sm:$0xff] }
  0x3f   : > { %307 = vst [vmem:[%s11081_s27 + $0x288] sm:$0xff] %v306_v54  ;;  %309 = vst [vmem:[%s11081_s27 + $0x294] sm:$0xff] %v308_v55  ;;  %v312_v57 = vld [vmem:[%s11076_s26 + $0x48c] sm:$0xff]  ;;  %v314_v58 = vld [vmem:[%s11076_s26 + $0x498] sm:$0xff] }
  0x40   : > { %311 = vst [vmem:[%s11081_s27 + $0x2a0] sm:$0xff] %v310_v56  ;;  %v316_v59 = vld [vmem:[%s11076_s26 + $0x4a4] sm:$0xff]  ;;  %313 = vst [vmem:[%s11081_s27 + $0x2ac] sm:$0xff] %v312_v57  ;;  %v7631_v61 = vld [vmem:[%s11076_s26 + $0x14] sm:$0xf] }
  0x41   : > { %315 = vst [vmem:[%s11081_s27 + $0x2b8] sm:$0xff] %v314_v58  ;;  %317 = vst [vmem:[%s11081_s27 + $0x2c4] sm:$0xff] %v316_v59  ;;  %v7629_v60 = vld [vmem:[%s11076_s26 + $0x8] sm:$0xf]  ;;  %v7633_v62 = vld [vmem:[%s11076_s26 + $0x20] sm:$0xf] }
  0x42   : > { %7630 = vst [vmem:[%s11081_s27 + $0x8] sm:$0xf] %v7629_v60  ;;  %7632 = vst [vmem:[%s11081_s27 + $0x14] sm:$0xf] %v7631_v61  ;;  %v7635_v63 = vld [vmem:[%s11076_s26 + $0x2c] sm:$0xf] }
  0x43   : > { %7634 = vst [vmem:[%s11081_s27 + $0x20] sm:$0xf] %v7633_v62  ;;  %v7637_v0 = vld [vmem:[%s11076_s26 + $0x38] sm:$0xf]  ;;  %v7639_v1 = vld [vmem:[%s11076_s26 + $0x44] sm:$0xf] }
  0x44   : > { %7636 = vst [vmem:[%s11081_s27 + $0x2c] sm:$0xf] %v7635_v63  ;;  %7638 = vst [vmem:[%s11081_s27 + $0x38] sm:$0xf] %v7637_v0  ;;  %v7641_v2 = vld [vmem:[%s11076_s26 + $0x50] sm:$0xf] }
  0x45   : > { %7640 = vst [vmem:[%s11081_s27 + $0x44] sm:$0xf] %v7639_v1  ;;  %v7643_v3 = vld [vmem:[%s11076_s26 + $0x5c] sm:$0xf]  ;;  %v7645_v4 = vld [vmem:[%s11076_s26 + $0x68] sm:$0xf] }
  0x46   : > { %7642 = vst [vmem:[%s11081_s27 + $0x50] sm:$0xf] %v7641_v2  ;;  %7644 = vst [vmem:[%s11081_s27 + $0x5c] sm:$0xf] %v7643_v3  ;;  %v7647_v5 = vld [vmem:[%s11076_s26 + $0x74] sm:$0xf] }
  0x47   : > { %7646 = vst [vmem:[%s11081_s27 + $0x68] sm:$0xf] %v7645_v4  ;;  %v7649_v6 = vld [vmem:[%s11076_s26 + $0x80] sm:$0xf]  ;;  %v7651_v7 = vld [vmem:[%s11076_s26 + $0x8c] sm:$0xf] }
  0x48   : > { %7648 = vst [vmem:[%s11081_s27 + $0x74] sm:$0xf] %v7647_v5  ;;  %7650 = vst [vmem:[%s11081_s27 + $0x80] sm:$0xf] %v7649_v6  ;;  %v7653_v8 = vld [vmem:[%s11076_s26 + $0x98] sm:$0xf] }
  0x49   : > { %7652 = vst [vmem:[%s11081_s27 + $0x8c] sm:$0xf] %v7651_v7  ;;  %v7655_v9 = vld [vmem:[%s11076_s26 + $0xa4] sm:$0xf]  ;;  %v7657_v10 = vld [vmem:[%s11076_s26 + $0xb0] sm:$0xf] }
  0x4a   : > { %7654 = vst [vmem:[%s11081_s27 + $0x98] sm:$0xf] %v7653_v8  ;;  %7656 = vst [vmem:[%s11081_s27 + $0xa4] sm:$0xf] %v7655_v9  ;;  %v7659_v11 = vld [vmem:[%s11076_s26 + $0xbc] sm:$0xf] }
  0x4b   : > { %7658 = vst [vmem:[%s11081_s27 + $0xb0] sm:$0xf] %v7657_v10  ;;  %v7661_v12 = vld [vmem:[%s11076_s26 + $0xc8] sm:$0xf]  ;;  %v7663_v13 = vld [vmem:[%s11076_s26 + $0xd4] sm:$0xf] }
  0x4c   : > { %7660 = vst [vmem:[%s11081_s27 + $0xbc] sm:$0xf] %v7659_v11  ;;  %7662 = vst [vmem:[%s11081_s27 + $0xc8] sm:$0xf] %v7661_v12  ;;  %v7665_v14 = vld [vmem:[%s11076_s26 + $0xe0] sm:$0xf] }
  0x4d   : > { %7664 = vst [vmem:[%s11081_s27 + $0xd4] sm:$0xf] %v7663_v13  ;;  %v7667_v15 = vld [vmem:[%s11076_s26 + $0xec] sm:$0xf]  ;;  %v7669_v16 = vld [vmem:[%s11076_s26 + $0x1e8] sm:$0xf] }
  0x4e   : > { %7666 = vst [vmem:[%s11081_s27 + $0xe0] sm:$0xf] %v7665_v14  ;;  %7668 = vst [vmem:[%s11081_s27 + $0xec] sm:$0xf] %v7667_v15  ;;  %v7671_v17 = vld [vmem:[%s11076_s26 + $0x1f4] sm:$0xf] }
  0x4f   : > { %7670 = vst [vmem:[%s11081_s27 + $0xf8] sm:$0xf] %v7669_v16  ;;  %v7673_v18 = vld [vmem:[%s11076_s26 + $0x200] sm:$0xf]  ;;  %v7675_v19 = vld [vmem:[%s11076_s26 + $0x20c] sm:$0xf] }
  0x50   : > { %7672 = vst [vmem:[%s11081_s27 + $0x104] sm:$0xf] %v7671_v17  ;;  %7674 = vst [vmem:[%s11081_s27 + $0x110] sm:$0xf] %v7673_v18  ;;  %v7677_v20 = vld [vmem:[%s11076_s26 + $0x218] sm:$0xf] }
  0x51   : > { %7676 = vst [vmem:[%s11081_s27 + $0x11c] sm:$0xf] %v7675_v19  ;;  %v7679_v21 = vld [vmem:[%s11076_s26 + $0x224] sm:$0xf]  ;;  %v7681_v22 = vld [vmem:[%s11076_s26 + $0x230] sm:$0xf] }
  0x52   : > { %7678 = vst [vmem:[%s11081_s27 + $0x128] sm:$0xf] %v7677_v20  ;;  %7680 = vst [vmem:[%s11081_s27 + $0x134] sm:$0xf] %v7679_v21  ;;  %v7683_v23 = vld [vmem:[%s11076_s26 + $0x23c] sm:$0xf] }
  0x53   : > { %7682 = vst [vmem:[%s11081_s27 + $0x140] sm:$0xf] %v7681_v22  ;;  %v7685_v24 = vld [vmem:[%s11076_s26 + $0x248] sm:$0xf]  ;;  %v7687_v25 = vld [vmem:[%s11076_s26 + $0x254] sm:$0xf] }
  0x54   : > { %7684 = vst [vmem:[%s11081_s27 + $0x14c] sm:$0xf] %v7683_v23  ;;  %7686 = vst [vmem:[%s11081_s27 + $0x158] sm:$0xf] %v7685_v24  ;;  %v7689_v26 = vld [vmem:[%s11076_s26 + $0x260] sm:$0xf] }
  0x55   : > { %7688 = vst [vmem:[%s11081_s27 + $0x164] sm:$0xf] %v7687_v25  ;;  %v7691_v27 = vld [vmem:[%s11076_s26 + $0x26c] sm:$0xf]  ;;  %v7693_v28 = vld [vmem:[%s11076_s26 + $0x278] sm:$0xf] }
  0x56   : > { %7690 = vst [vmem:[%s11081_s27 + $0x170] sm:$0xf] %v7689_v26  ;;  %7692 = vst [vmem:[%s11081_s27 + $0x17c] sm:$0xf] %v7691_v27  ;;  %v7695_v29 = vld [vmem:[%s11076_s26 + $0x284] sm:$0xf] }
  0x57   : > { %7694 = vst [vmem:[%s11081_s27 + $0x188] sm:$0xf] %v7693_v28  ;;  %v7697_v30 = vld [vmem:[%s11076_s26 + $0x290] sm:$0xf]  ;;  %v7699_v31 = vld [vmem:[%s11076_s26 + $0x29c] sm:$0xf] }
  0x58   : > { %7696 = vst [vmem:[%s11081_s27 + $0x194] sm:$0xf] %v7695_v29  ;;  %7698 = vst [vmem:[%s11081_s27 + $0x1a0] sm:$0xf] %v7697_v30  ;;  %v7701_v32 = vld [vmem:[%s11076_s26 + $0x2a8] sm:$0xf] }
  0x59   : > { %7700 = vst [vmem:[%s11081_s27 + $0x1ac] sm:$0xf] %v7699_v31  ;;  %v7703_v33 = vld [vmem:[%s11076_s26 + $0x2b4] sm:$0xf]  ;;  %v7705_v34 = vld [vmem:[%s11076_s26 + $0x2c0] sm:$0xf] }
  0x5a   : > { %7702 = vst [vmem:[%s11081_s27 + $0x1b8] sm:$0xf] %v7701_v32  ;;  %7704 = vst [vmem:[%s11081_s27 + $0x1c4] sm:$0xf] %v7703_v33  ;;  %v7707_v35 = vld [vmem:[%s11076_s26 + $0x2cc] sm:$0xf] }
  0x5b   : > { %7706 = vst [vmem:[%s11081_s27 + $0x1d0] sm:$0xf] %v7705_v34  ;;  %v7709_v36 = vld [vmem:[%s11076_s26 + $0x3c8] sm:$0xf]  ;;  %v7711_v37 = vld [vmem:[%s11076_s26 + $0x3d4] sm:$0xf] }
  0x5c   : > { %7708 = vst [vmem:[%s11081_s27 + $0x1dc] sm:$0xf] %v7707_v35  ;;  %7710 = vst [vmem:[%s11081_s27 + $0x1e8] sm:$0xf] %v7709_v36  ;;  %v7713_v38 = vld [vmem:[%s11076_s26 + $0x3e0] sm:$0xf] }
  0x5d   : > { %7712 = vst [vmem:[%s11081_s27 + $0x1f4] sm:$0xf] %v7711_v37  ;;  %v7715_v39 = vld [vmem:[%s11076_s26 + $0x3ec] sm:$0xf]  ;;  %v7717_v40 = vld [vmem:[%s11076_s26 + $0x3f8] sm:$0xf] }
  0x5e   : > { %7714 = vst [vmem:[%s11081_s27 + $0x200] sm:$0xf] %v7713_v38  ;;  %7716 = vst [vmem:[%s11081_s27 + $0x20c] sm:$0xf] %v7715_v39  ;;  %v7719_v41 = vld [vmem:[%s11076_s26 + $0x404] sm:$0xf] }
  0x5f   : > { %7718 = vst [vmem:[%s11081_s27 + $0x218] sm:$0xf] %v7717_v40  ;;  %v7721_v42 = vld [vmem:[%s11076_s26 + $0x410] sm:$0xf]  ;;  %v7723_v43 = vld [vmem:[%s11076_s26 + $0x41c] sm:$0xf] }
  0x60   : > { %7720 = vst [vmem:[%s11081_s27 + $0x224] sm:$0xf] %v7719_v41  ;;  %7722 = vst [vmem:[%s11081_s27 + $0x230] sm:$0xf] %v7721_v42  ;;  %v7725_v44 = vld [vmem:[%s11076_s26 + $0x428] sm:$0xf] }
  0x61   : > { %7724 = vst [vmem:[%s11081_s27 + $0x23c] sm:$0xf] %v7723_v43  ;;  %v7727_v45 = vld [vmem:[%s11076_s26 + $0x434] sm:$0xf]  ;;  %v7729_v46 = vld [vmem:[%s11076_s26 + $0x440] sm:$0xf] }
  0x62   : > { %7726 = vst [vmem:[%s11081_s27 + $0x248] sm:$0xf] %v7725_v44  ;;  %7728 = vst [vmem:[%s11081_s27 + $0x254] sm:$0xf] %v7727_v45  ;;  %v7731_v47 = vld [vmem:[%s11076_s26 + $0x44c] sm:$0xf] }
  0x63   : > { %7730 = vst [vmem:[%s11081_s27 + $0x260] sm:$0xf] %v7729_v46  ;;  %v7733_v48 = vld [vmem:[%s11076_s26 + $0x458] sm:$0xf]  ;;  %v7735_v49 = vld [vmem:[%s11076_s26 + $0x464] sm:$0xf] }
  0x64   : > { %7732 = vst [vmem:[%s11081_s27 + $0x26c] sm:$0xf] %v7731_v47  ;;  %7734 = vst [vmem:[%s11081_s27 + $0x278] sm:$0xf] %v7733_v48  ;;  %v7737_v50 = vld [vmem:[%s11076_s26 + $0x470] sm:$0xf] }
  0x65   : > { %7736 = vst [vmem:[%s11081_s27 + $0x284] sm:$0xf] %v7735_v49  ;;  %v7739_v51 = vld [vmem:[%s11076_s26 + $0x47c] sm:$0xf]  ;;  %v7741_v52 = vld [vmem:[%s11076_s26 + $0x488] sm:$0xf] }
  0x66   : > { %7738 = vst [vmem:[%s11081_s27 + $0x290] sm:$0xf] %v7737_v50  ;;  %7740 = vst [vmem:[%s11081_s27 + $0x29c] sm:$0xf] %v7739_v51  ;;  %v7743_v53 = vld [vmem:[%s11076_s26 + $0x494] sm:$0xf] }
  0x67   : > { %7742 = vst [vmem:[%s11081_s27 + $0x2a8] sm:$0xf] %v7741_v52  ;;  %v7745_v54 = vld [vmem:[%s11076_s26 + $0x4a0] sm:$0xf]  ;;  %v7747_v55 = vld [vmem:[%s11076_s26 + $0x4ac] sm:$0xf] }
  0x68   : > { %7744 = vst [vmem:[%s11081_s27 + $0x2b4] sm:$0xf] %v7743_v53  ;;  %7746 = vst [vmem:[%s11081_s27 + $0x2c0] sm:$0xf] %v7745_v54 }
  0x69   : > { %7748 = vst [vmem:[%s11081_s27 + $0x2cc] sm:$0xf] %v7747_v55 }
  0x6a PF: > { %p7749_p11 = scmp.ge.s32.totalorder %s10960_s23, 1  ;;  %p457_p12 = scmp.lt.s32.totalorder %s10960_s23, 5 }
  0x6c   : > { %p458_p13 = pnand %p7749_p11, %p457_p12 }
  0x6e   : > { %461 = sbr.rel (%p458_p13) target bundleno = 1099 (0x44b), region = 50 }
  0x75   : > { %s486_s28 = sand.u32 1, %s10928_s15   ;;  %p501_p0 = scmp.lt.s32.totalorder %s10948_s20, 1  ;;  %v13180_v56 = vmov 0   ;;  %vm1025_vm0 = vcmask 1043456   ;;  %vm1012_vm1 = vcmask 64512  }
  0x76   : > { %s11324_s29 = smul.u32 96, %s486_s28  ;;  %1140 = vmatprep.mubr.bf16.mxu0 %v13180_v56  ;;  %s464_s30 = sand.u32 1, %s10936_s17  }
  0x77   : > { %s502_s5 = scalar_select %p501_p0, %s10948_s20, 1 }
  0x78   : > { %s10045_s6 = smul.u32 720, %s464_s30  ;;  %s12954_s0 = scalar_lea.vmem [#allocation3], %s11324_s29 }
  0x79   : > { %s10047_s10 = smul.u32 3564, %s502_s5  ;;  %p9076_p1 = scmp.ne.s32.totalorder %s10944_s19, 0 }
  0x7a   : > { %s10048_s11 = smul.u32 3, %s502_s5  ;;  %s466_s5 = scalar_lea.vmem [#allocation2], %s10045_s6 }
  0x7b   : > { %s11332_s14 = scalar_lea.vmem %s13176_s1, %s10047_s10  ;;  %s9114_s15 = smul.u32 48, %s10944_s19 }
  0x7c   : > { %s11338_s28 = scalar_lea.vmem %s13178_s3, %s10048_s11  ;;  %s11343_s30 = scalar_lea.vmem %s13179_s4, %s10048_s11  ;;  %v10126_v57 = vld [vmem:[%s11332_s14 + $0x190] ss:$12 sps:$4 sm:$0xff]   ;;  %v10129_v59 = vld [vmem:[%s11332_s14 + $0x18c] ss:$12 sps:$4 sm:$0xff]   ;;  %v10131_v62 = vld [vmem:[%s11332_s14 + $0x1a8] ss:$12 sps:$4 sm:$0xff]  }
  0x7d   : > { %v7835_v58 = vld [vmem:[%s11332_s14 + $0x30c] sm:$0xff]  ;;  %s11348_s10 = scalar_lea.vmem %s466_s5, %s9114_s15 [#allocation2]  ;;  %1035 = vmatprep.subr.bf16.mxu1 %v10126_v57  ;;  %v10134_v1 = vld [vmem:[%s11332_s14 + $0x314] ss:$0 sps:$4 sm:$0xff]   ;;  %v10138_v5 = vld [vmem:[%s11332_s14 + $0x1bc] ss:$12 sps:$4 sm:$0xff]  }
  0x7e   : > { %v7898_v60 = vcombine.high %v7835_v58, %v7835_v58  ;;  %v7897_v61 = vcombine.low %v7835_v58, %v7835_v58  ;;  %1036 = vmatpush1.bf16.msra.mxu1 %v10129_v59  ;;  %v10133_v63 = vld [vmem:[%s11348_s10 + $0xf8] ss:$12 sps:$4 sm:$0xff]   ;;  %v10136_v3 = vld [vmem:[%s11332_s14 + $0x1c0] ss:$12 sps:$4 sm:$0xff]   ;;  %v1033_v4 = vsel %vm1025_vm0, %v10134_v1, 0 }
  0x7f   : > { %1037 = vmatprep.subr.bf16.mxu1 %v10131_v62  ;;  %v10135_v2 = vld [vmem:[%s11332_s14 + $0x1a4] ss:$12 sps:$4 sm:$0xff]   ;;  %v10142_v8 = vld [vmem:[%s11332_s14 + $0x1d4] ss:$12 sps:$4 sm:$0xff]   ;;  %v10145_v10 = vld [vmem:[%s11332_s14 + $0x1ec] ss:$12 sps:$4 sm:$0xff]  }
  0x80   : > { %7900 = vmatprep.subr.msk.bf16.mxu0 %vm1025_vm0, %v7898_v60  ;;  %v1027_v0 = vsel %vm1025_vm0, %v7897_v61, 0  ;;  %v10139_v6 = vld [vmem:[%s11332_s14 + $0x1d8] ss:$12 sps:$4 sm:$0xff]   ;;  %v10141_v7 = vld [vmem:[%s11348_s10 + $0x110] ss:$12 sps:$4 sm:$0xff]  }
  0x81   : > { %1109 = vmatpush1.bf16.msra.mxu0 %v1027_v0  ;;  %v10143_v9 = vld [vmem:[%s11332_s14 + $0x1f0] ss:$12 sps:$4 sm:$0xff]   ;;  %v10146_v11 = vld [vmem:[%s11332_s14 + $0x208] ss:$12 sps:$4 sm:$0xff]   ;;  %v600_v12 = vld [vmem:[%s11332_s14 + $0x180] sm:$0xff] }
  0x82   : > { %10034 = vmatprep.subr.msk.bf16.mxu0 %vm1025_vm0, %v10134_v1  ;;  %1038 = vmatpush1.bf16.msra.mxu1 %v10135_v2  ;;  %v10148_v13 = vld [vmem:[%s11348_s10 + $0x170] ss:$12 sps:$4 sm:$0xff]   ;;  %v7970_v15 = vcombine.high %v600_v12, %v600_v12  ;;  %v10150_v16 = vld [vmem:[%s11332_s14 + $0x220] ss:$12 sps:$4 sm:$0xff]   ;;  %v10153_v18 = vld [vmem:[%s11332_s14 + $0x238] ss:$12 sps:$4 sm:$0xff]   ;;  %v7969_v25 = vcombine.low %v600_v12, %v600_v12 }
  0x83   : > { %1039 = vmatprep.subr.bf16.mxu1 %v10136_v3  ;;  %v10149_v14 = vld [vmem:[%s11332_s14 + $0x204] ss:$12 sps:$4 sm:$0xff]   ;;  %v10152_v17 = vld [vmem:[%s11332_s14 + $0x21c] ss:$12 sps:$4 sm:$0xff]   ;;  %v10156_v19 = vld [vmem:[%s11332_s14 + $0x234] ss:$12 sps:$4 sm:$0xff]  }
  0x84   : > { %7901 = vmatmul.mubr.msk.bf16.vlgmr.msra.gmra.mrb[0].mxu0 %vm1012_vm1, %v10133_v63  ;;  %v10155_v20 = vld [vmem:[%s11348_s10 + $0x188] ss:$12 sps:$4 sm:$0xff]   ;;  %v10157_v21 = vld [vmem:[%s11332_s14 + $0x250] ss:$12 sps:$4 sm:$0xff]   ;;  %v10159_v22 = vld [vmem:[%s11332_s14 + $0x24c] ss:$12 sps:$4 sm:$0xff]  }
  0x85   : > { %9537 = vmatpush3.bf16.msra.mxu0 %v1033_v4  ;;  %1150 = vmatprep.mubr.bf16.mxu0 %v13180_v56  ;;  %v10160_v23 = vld [vmem:[%s11332_s14 + $0x268] ss:$12 sps:$4 sm:$0xff]   ;;  %v10163_v26 = vld [vmem:[%s11332_s14 + $0x264] ss:$12 sps:$4 sm:$0xff]   ;;  %v10165_v27 = vld [vmem:[%s11332_s14 + $0x280] ss:$12 sps:$4 sm:$0xff]  }
  0x86   : > { %1040 = vmatpush1.bf16.msra.mxu1 %v10138_v5  ;;  %7972 = vmatprep.subr.msk.bf16.mxu0 %vm1025_vm0, %v7970_v15  ;;  %v11386_v24 = vld [vmem:[%s11348_s10 + $0xf4] ss:$12 sps:$4 sm:$0xff]   ;;  %v1648_v28 = vsel %vm1025_vm0, %v7969_v25, 0  ;;  %v10176_v29 = vld [vmem:[%s11332_s14 + $0x31c] ss:$12 sps:$4 sm:$0xff]  }
  0x87   : > { %1041 = vmatprep.subr.bf16.mxu1 %v10139_v6  ;;  %1067 = vmatprep.mubr.bf16.mxu1 %v11386_v24  ;;  %v10167_v30 = vld [vmem:[%s11332_s14 + $0x27c] ss:$12 sps:$4 sm:$0xff]   ;;  %v10168_v31 = vld [vmem:[%s11332_s14 + $0x298] ss:$12 sps:$4 sm:$0xff]   ;;  %v10170_v32 = vld [vmem:[%s11332_s14 + $0x294] ss:$12 sps:$4 sm:$0xff]  }
  0x88   : > { %v10171_v33 = vld [vmem:[%s11332_s14 + $0x2b0] ss:$12 sps:$4 sm:$0xff]   ;;  %v10173_v34 = vld [vmem:[%s11332_s14 + $0x2ac] ss:$12 sps:$4 sm:$0xff]   ;;  %v10177_v35 = vld [vmem:[%s11332_s14 + $0x2c8] ss:$12 sps:$4 sm:$0xff]  }
  0x89   : > { %v10179_v36 = vld [vmem:[%s11348_s10 + $0x8] ss:$12 sps:$4 sm:$0xff]   ;;  %v10180_v37 = vld [vmem:[%s11332_s14 + $0x2c4] ss:$12 sps:$4 sm:$0xff]   ;;  %v10184_v38 = vld [vmem:[%s11332_s14 + $0x2e0] ss:$12 sps:$4 sm:$0xff]  }
  0x8a   : > { %1042 = vmatpush1.bf16.msra.mxu1 %v10142_v8  ;;  %v10174_v39 = vld [vmem:[%s11332_s14 + $0x318] ss:$12 sps:$4 sm:$0xff]   ;;  %v10183_v40 = vld [vmem:[%s11332_s14 + $0x334] ss:$12 sps:$4 sm:$0xff]   ;;  %v10186_v41 = vld [vmem:[%s11332_s14 + $0x2dc] ss:$12 sps:$4 sm:$0xff]  }
  0x8b   : > { %1043 = vmatprep.subr.bf16.mxu1 %v10143_v9  ;;  %v10190_v42 = vld [vmem:[%s11332_s14 + $0x2f8] ss:$12 sps:$4 sm:$0xff]   ;;  %v10181_v43 = vld [vmem:[%s11332_s14 + $0x330] ss:$12 sps:$4 sm:$0xff]   ;;  %v10187_v45 = vld [vmem:[%s11332_s14 + $0x348] ss:$12 sps:$4 sm:$0xff]  }
  0x8c   : > { %7902 = vmatmul.mubr.msk.bf16.gmra.mrb[4].mxu0 %vm1012_vm1, %v10141_v7  ;;  %v10189_v44 = vld [vmem:[%s11332_s14 + $0x34c] ss:$12 sps:$4 sm:$0xff]   ;;  %v10192_v46 = vld [vmem:[%s11332_s14 + $0x2f4] ss:$12 sps:$4 sm:$0xff]   ;;  %v11418_v47 = vld [vmem:[%s11348_s10 + $0xf0] ss:$12 sps:$4 sm:$0xff]  }
  0x8d   : > { %1160 = vmatprep.mubr.bf16.mxu0 %v13180_v56  ;;  %v10199_v48 = vld [vmem:[%s11332_s14 + $0x254] ss:$12 sps:$4 sm:$0xff]   ;;  %v10198_v50 = vld [vmem:[%s11332_s14 + $0x364] ss:$12 sps:$4 sm:$0xff]   ;;  %v11425_v52 = vld [vmem:[%s11348_s10 + $0x10c] ss:$12 sps:$4 sm:$0xff]  }
  0x8e   : > { %1044 = vmatpush1.bf16.msra.mxu1 %v10145_v10  ;;  %v10240_v49 = vld [vmem:[%s11348_s10 + $0x20] ss:$12 sps:$4 sm:$0xff]   ;;  %v10203_v55 = vld [vmem:[%s11332_s14 + $0x37c] ss:$12 sps:$4 sm:$0xff]   ;;  %v10212_v58 = vld [vmem:[%s11332_s14 + $0x284] ss:$12 sps:$4 sm:$0xff]  }
  0x8f   : > { %1045 = vmatprep.subr.bf16.mxu1 %v10146_v11  ;;  %v10200_v51 = vld [vmem:[%s11332_s14 + $0x194] ss:$12 sps:$4 sm:$0xff]   ;;  %v10204_v53 = vld [vmem:[%s11332_s14 + $0x26c] ss:$12 sps:$4 sm:$0xff]   ;;  %v10217_v1 = vld [vmem:[%s11332_s14 + $0x29c] ss:$12 sps:$4 sm:$0xff]  }
  0x90   : > { %v10196_v54 = vld [vmem:[%s11332_s14 + $0x360] ss:$12 sps:$4 sm:$0xff]   ;;  %v10201_v60 = vld [vmem:[%s11332_s14 + $0x378] ss:$12 sps:$4 sm:$0xff]   ;;  %v11440_v62 = vld [vmem:[%s11348_s10 + $0x108] ss:$12 sps:$4 sm:$0xff]  }
  0x91   : > { %v10205_v57 = vld [vmem:[%s11332_s14 + $0x1ac] ss:$12 sps:$4 sm:$0xff]   ;;  %v10210_v61 = vld [vmem:[%s11332_s14 + $0x394] ss:$12 sps:$4 sm:$0xff]   ;;  %v10208_v2 = vld [vmem:[%s11332_s14 + $0x390] ss:$12 sps:$4 sm:$0xff]  }
  0x92   : > { %1046 = vmatpush1.bf16.msra.mxu1 %v10149_v14  ;;  %v10252_v59 = vld [vmem:[%s11348_s10 + $0x80] ss:$12 sps:$4 sm:$0xff]   ;;  %v10218_v4 = vld [vmem:[%s11332_s14 + $0x1dc] ss:$12 sps:$4 sm:$0xff]   ;;  %v10265_v6 = vld [vmem:[%s11348_s10 + $0x98] ss:$12 sps:$4 sm:$0xff]  }
  0x93   : > { %1047 = vmatprep.subr.bf16.mxu1 %v10150_v16  ;;  %v11444_v0 = vld [vmem:[%s11348_s10 + $0x16c] ss:$12 sps:$4 sm:$0xff]   ;;  %v10225_v5 = vld [vmem:[%s11332_s14 + $0x2b4] ss:$12 sps:$4 sm:$0xff]   ;;  %v10223_v8 = vld [vmem:[%s11332_s14 + $0x3c4] ss:$12 sps:$4 sm:$0xff]  }
  0x94   : > { %7903 = vmatmul.mubr.msk.bf16.gmra.mrb[8].mxu0 %vm1012_vm1, %v10148_v13  ;;  %v10216_v3 = vld [vmem:[%s11332_s14 + $0x3ac] ss:$12 sps:$4 sm:$0xff]   ;;  %v11459_v9 = vld [vmem:[%s11348_s10 + $0x168] ss:$12 sps:$4 sm:$0xff]   ;;  %v11464_v12 = vld [vmem:[%s11348_s10 + $0x184] ss:$12 sps:$4 sm:$0xff]  }
  0x95   : > { %1170 = vmatprep.mubr.bf16.mxu0 %v13180_v56  ;;  %v10221_v10 = vld [vmem:[%s11332_s14 + $0x3c0] ss:$12 sps:$4 sm:$0xff]   ;;  %v10280_v14 = vld [vmem:[%s11348_s10 + $0x1e4] ss:$12 sps:$4 sm:$0xff]   ;;  %v10229_v15 = vld [vmem:[%s11332_s14 + $0x3dc] ss:$12 sps:$4 sm:$0xff]  }
  0x96   : > { %1048 = vmatpush1.bf16.msra.mxu1 %v10152_v17  ;;  %v10226_v11 = vld [vmem:[%s11332_s14 + $0x1f4] ss:$12 sps:$4 sm:$0xff]   ;;  %v10231_v16 = vld [vmem:[%s11332_s14 + $0x20c] ss:$12 sps:$4 sm:$0xff]   ;;  %v10238_v17 = vld [vmem:[%s11332_s14 + $0x2e4] ss:$12 sps:$4 sm:$0xff]  }
  0x97   : > { %1049 = vmatprep.subr.bf16.mxu1 %v10153_v18  ;;  %v10227_v18 = vld [vmem:[%s11332_s14 + $0x3d8] ss:$12 sps:$4 sm:$0xff]  }
  0x98   : > { %v10243_v25 = vld [vmem:[%s11332_s14 + $0x40c] ss:$12 sps:$4 sm:$0xff]  }
  0x9a   : > { %1050 = vmatpush1.bf16.msra.mxu1 %v10156_v19  ;;  %v10236_v19 = vld [vmem:[%s11332_s14 + $0x3f4] ss:$12 sps:$4 sm:$0xff]  }
  0x9b   : > { %1051 = vmatprep.subr.bf16.mxu1 %v10157_v21  ;;  %v10239_v21 = vld [vmem:[%s11332_s14 + $0x224] ss:$12 sps:$4 sm:$0xff]  }
  0x9c   : > { %7904 = vmatmul.mubr.msk.bf16.gmra.mrb[12].mxu0 %vm1012_vm1, %v10155_v20 }
  0x9d   : > { %9538 = vmatprep.mubr.msk.bf16.mxu0 %vm1012_vm1, %v10133_v63  ;;  %v10213_v63 = vld [vmem:[%s11332_s14 + $0x1c4] ss:$12 sps:$4 sm:$0xff]  }
  0x9e   : > { %1052 = vmatpush1.bf16.msra.mxu1 %v10159_v22  ;;  %v10244_v22 = vld [vmem:[%s11332_s14 + $0x2fc] ss:$12 sps:$4 sm:$0xff]  }
  0x9f   : > { %1053 = vmatprep.subr.bf16.mxu1 %v10160_v23  ;;  %v10234_v23 = vld [vmem:[%s11332_s14 + $0x3f0] ss:$12 sps:$4 sm:$0xff]  }
  0xa2   : > { %1054 = vmatpush1.bf16.msra.mxu1 %v10163_v26  ;;  %v10245_v26 = vld [vmem:[%s11332_s14 + $0x23c] ss:$12 sps:$4 sm:$0xff]  }
  0xa3   : > { %1055 = vmatprep.subr.bf16.mxu1 %v10165_v27  ;;  %v10251_v27 = vld [vmem:[%s11332_s14 + $0x4] ss:$12 sps:$4 sm:$0xff]  }
  0xa4   : > { %9539 = vmatmul.mubr.msk.bf16.vlgmr.msra.gmra.mrb[16].mxu0 %vm1012_vm1, %v10141_v7  ;;  %v10214_v7 = vld [vmem:[%s11332_s14 + $0x3a8] ss:$12 sps:$4 sm:$0xff]  }
  0xa5   : > { %1730 = vmatpush1.bf16.msra.mxu0 %v1648_v28  ;;  %9542 = vmatprep.mubr.msk.bf16.mxu0 %vm1012_vm1, %v10148_v13  ;;  %v10230_v13 = vld [vmem:[%s11332_s14 + $0x2cc] ss:$12 sps:$4 sm:$0xff]   ;;  %v10241_v28 = vld [vmem:[%s11332_s14 + $0x408] ss:$12 sps:$4 sm:$0xff]  }
  0xa6   : > { %2363 = vmatprep.subr.bf16.mxu0 %v10176_v29  ;;  %1056 = vmatpush1.bf16.msra.mxu1 %v10167_v30  ;;  %v10248_v29 = vld [vmem:[%s11332_s14 + $0x424] ss:$12 sps:$4 sm:$0xff]   ;;  %v10249_v30 = vld [vmem:[%s11332_s14] ss:$12 sps:$4 sm:$0xff]  }
  0xa7   : > { %1057 = vmatprep.subr.bf16.mxu1 %v10168_v31  ;;  %v10258_v31 = vld [vmem:[%s11332_s14 + $0x1c] ss:$12 sps:$4 sm:$0xff]  }
  0xaa   : > { %1058 = vmatpush1.bf16.msra.mxu1 %v10170_v32  ;;  %v10246_v32 = vld [vmem:[%s11332_s14 + $0x420] ss:$12 sps:$4 sm:$0xff]  }
  0xab   : > { %1059 = vmatprep.subr.bf16.mxu1 %v10171_v33  ;;  %v10256_v33 = vld [vmem:[%s11332_s14 + $0x18] ss:$12 sps:$4 sm:$0xff]  }
  0xac   : > { %9543 = vmatmul.mubr.msk.bf16.gmra.mrb[20].mxu0 %vm1012_vm1, %v10155_v20  ;;  %v11477_v20 = vld [vmem:[%s11348_s10 + $0x180] ss:$12 sps:$4 sm:$0xff]  }
  0xad   : > { %1761 = vmatprep.mubr.bf16.mxu0 %v13180_v56 }
  0xae   : > { %1060 = vmatpush1.bf16.msra.mxu1 %v10173_v34  ;;  %v10264_v34 = vld [vmem:[%s11332_s14 + $0x34] ss:$12 sps:$4 sm:$0xff]  }
  0xaf   : > { %1061 = vmatprep.subr.bf16.mxu1 %v10177_v35  ;;  %v10253_v35 = vld [vmem:[%s11332_s14 + $0x438] ss:$12 sps:$4 sm:$0xff]  }
  0xb2   : > { %1062 = vmatpush1.bf16.msra.mxu1 %v10180_v37  ;;  %v10262_v37 = vld [vmem:[%s11332_s14 + $0x30] ss:$12 sps:$4 sm:$0xff]  }
  0xb3   : > { %1063 = vmatprep.subr.bf16.mxu1 %v10184_v38  ;;  %v10271_v38 = vld [vmem:[%s11332_s14 + $0x4c] ss:$12 sps:$4 sm:$0xff]  }
  0xb4   : > { %7973 = vmatmul.mubr.msk.bf16.vlgmr.msra.gmra.mrb[24].mxu0 %vm1012_vm1, %v10179_v36  ;;  %v10261_v36 = vld [vmem:[%s11332_s14 + $0x454] ss:$12 sps:$4 sm:$0xff]  }
  0xb5   : > { %2364 = vmatpush1.bf16.msra.mxu0 %v10174_v39  ;;  %1771 = vmatprep.mubr.bf16.mxu0 %v13180_v56  ;;  %v10259_v39 = vld [vmem:[%s11332_s14 + $0x450] ss:$12 sps:$4 sm:$0xff]  }
  0xb6   : > { %2365 = vmatprep.subr.bf16.mxu0 %v10183_v40  ;;  %1064 = vmatpush1.bf16.msra.mxu1 %v10186_v41  ;;  %v10268_v40 = vld [vmem:[%s11332_s14 + $0x46c] ss:$12 sps:$4 sm:$0xff]   ;;  %v10269_v41 = vld [vmem:[%s11332_s14 + $0x48] ss:$12 sps:$4 sm:$0xff]  }
  0xb7   : > { %1065 = vmatprep.subr.bf16.mxu1 %v10190_v42  ;;  %v10277_v42 = vld [vmem:[%s11332_s14 + $0x64] ss:$12 sps:$4 sm:$0xff]  }
  0xb9   : > { %2366 = vmatpush1.bf16.msra.mxu0 %v10181_v43  ;;  %v10266_v43 = vld [vmem:[%s11332_s14 + $0x468] ss:$12 sps:$4 sm:$0xff]  }
  0xba   : > { %2367 = vmatprep.subr.bf16.mxu0 %v10189_v44  ;;  %1066 = vmatpush1.bf16.msra.mxu1 %v10192_v46  ;;  %v10274_v44 = vld [vmem:[%s11332_s14 + $0x484] ss:$12 sps:$4 sm:$0xff]   ;;  %v10286_v46 = vld [vmem:[%s11332_s14 + $0x7c] ss:$12 sps:$4 sm:$0xff]  }
  0xbb   : > { %9131 = vmatprep.subr.bf16.mxu1 %v10199_v48  ;;  %v10278_v48 = vld [vmem:[%s11348_s10 + $0x1e0] ss:$12 sps:$4 sm:$0xff]  }
  0xbc   : > { %7974 = vmatmul.mubr.msk.bf16.gmra.mrb[28].mxu0 %vm1012_vm1, %v10240_v49  ;;  %v10283_v49 = vld [vmem:[%s11332_s14 + $0x4a8] ss:$12 sps:$4 sm:$0xff]  }
  0xbd   : > { %2368 = vmatpush1.bf16.msra.mxu0 %v10187_v45  ;;  %1781 = vmatprep.mubr.bf16.mxu0 %v13180_v56  ;;  %v10275_v45 = vld [vmem:[%s11332_s14 + $0x60] ss:$12 sps:$4 sm:$0xff]  }
  0xbe   : > { %2369 = vmatprep.subr.bf16.mxu0 %v10198_v50  ;;  %1068 = vmatmul.mubr.bf16.vlgmr.msra.gmra.mrb[0].mxu1 %v11418_v47  ;;  %v10284_v50 = vld [vmem:[%s11332_s14 + $0x78] ss:$12 sps:$4 sm:$0xff]  }
  0xbf   : > { %9132 = vmatpush3.bf16.msra.mxu1 %v10200_v51  ;;  %1077 = vmatprep.mubr.bf16.mxu1 %v11425_v52  ;;  %v10281_v51 = vld [vmem:[%s11332_s14 + $0x4a4] ss:$12 sps:$4 sm:$0xff]  }
  0xc0   : > { %9133 = vmatprep.subr.bf16.mxu1 %v10204_v53  ;;  %v11520_v53 = vld [vmem:[%s11348_s10] sm:$0xff] }
  0xc1   : > { %2370 = vmatpush1.bf16.msra.mxu0 %v10196_v54  ;;  %v11523_v54 = vld [vmem:[%s11348_s10 + $0xc] sm:$0xff] }
  0xc2   : > { %2371 = vmatprep.subr.bf16.mxu0 %v10203_v55  ;;  %v10293_v55 = vld [vmem:[%s11348_s10 + $0x1fc] ss:$12 sps:$4 sm:$0xff]  }
  0xc3   : > { %9134 = vmatpush3.bf16.msra.mxu1 %v10205_v57  ;;  %v10289_v57 = vld [vmem:[%s11332_s14 + $0x4c0] ss:$12 sps:$4 sm:$0xff]  }
  0xc4   : > { %9135 = vmatprep.subr.bf16.mxu1 %v10212_v58  ;;  %7975 = vmatmul.mubr.msk.bf16.gmra.mrb[32].mxu0 %vm1012_vm1, %v10252_v59  ;;  %v10290_v58 = vld [vmem:[%s11332_s14 + $0x90] ss:$12 sps:$4 sm:$0xff]   ;;  %v11530_v59 = vcombine.high %v11520_v53, %v11523_v54 }
  0xc5   : > { %2372 = vmatpush1.bf16.msra.mxu0 %v10201_v60  ;;  %1791 = vmatprep.mubr.bf16.mxu0 %v13180_v56  ;;  %v10301_v60 = vld [vmem:[%s11332_s14 + $0xac] ss:$12 sps:$4 sm:$0xff]  }
  0xc6   : > { %2373 = vmatprep.subr.bf16.mxu0 %v10210_v61  ;;  %1078 = vmatmul.mubr.bf16.gmra.mrb[4].mxu1 %v11440_v62  ;;  %v10287_v61 = vld [vmem:[%s11332_s14 + $0x4bc] ss:$12 sps:$4 sm:$0xff]  }
  0xc7   : > { %9136 = vmatpush3.bf16.msra.mxu1 %v10213_v63  ;;  %1087 = vmatprep.mubr.bf16.mxu1 %v11444_v0  ;;  %v10298_v63 = vld [vmem:[%s11332_s14 + $0x4d8] ss:$12 sps:$4 sm:$0xff]  }
  0xc8   : > { %9137 = vmatprep.subr.bf16.mxu1 %v10217_v1  ;;  %v10299_v1 = vld [vmem:[%s11332_s14 + $0xa8] ss:$12 sps:$4 sm:$0xff]  }
  0xc9   : > { %2374 = vmatpush1.bf16.msra.mxu0 %v10208_v2  ;;  %v10307_v2 = vld [vmem:[%s11332_s14 + $0xc4] ss:$12 sps:$4 sm:$0xff]  }
  0xca   : > { %2375 = vmatprep.subr.bf16.mxu0 %v10216_v3  ;;  %v10308_v3 = vld [vmem:[%s11348_s10 + $0x25c] ss:$12 sps:$4 sm:$0xff]  }
  0xcb   : > { %9138 = vmatpush3.bf16.msra.mxu1 %v10218_v4  ;;  %v10304_v4 = vld [vmem:[%s11332_s14 + $0x4f0] ss:$12 sps:$4 sm:$0xff]  }
  0xcc   : > { %9139 = vmatprep.subr.bf16.mxu1 %v10225_v5  ;;  %7976 = vmatmul.mubr.msk.bf16.gmra.mrb[36].mxu0 %vm1012_vm1, %v10265_v6  ;;  %v10305_v5 = vld [vmem:[%s11332_s14 + $0xc0] ss:$12 sps:$4 sm:$0xff]   ;;  %v10316_v6 = vld [vmem:[%s11332_s14 + $0xdc] ss:$12 sps:$4 sm:$0xff]  }
  0xcd   : > { %2376 = vmatpush1.bf16.msra.mxu0 %v10214_v7  ;;  %2395 = vmatprep.mubr.bf16.mxu0 %v10280_v14  ;;  %v10302_v7 = vld [vmem:[%s11332_s14 + $0x4ec] ss:$12 sps:$4 sm:$0xff]  }
  0xce   : > { %2377 = vmatprep.subr.bf16.mxu0 %v10223_v8  ;;  %1088 = vmatmul.mubr.bf16.gmra.mrb[8].mxu1 %v11459_v9  ;;  %v10310_v8 = vld [vmem:[%s11348_s10 + $0x258] ss:$12 sps:$4 sm:$0xff]   ;;  %v10319_v14 = vld [vmem:[%s11332_s14 + $0x520] ss:$12 sps:$4 sm:$0xff]  }
  0xcf   : > { %9140 = vmatpush3.bf16.msra.mxu1 %v10226_v11  ;;  %1097 = vmatprep.mubr.bf16.mxu1 %v11464_v12  ;;  %v10314_v11 = vld [vmem:[%s11332_s14 + $0xd8] ss:$12 sps:$4 sm:$0xff]  }
  0xd0   : > { %9141 = vmatprep.subr.bf16.mxu1 %v10230_v13  ;;  %v10323_v13 = vld [vmem:[%s11348_s10 + $0x274] ss:$12 sps:$4 sm:$0xff]  }
  0xd1   : > { %2378 = vmatpush1.bf16.msra.mxu0 %v10221_v10  ;;  %v10311_v10 = vld [vmem:[%s11332_s14 + $0x504] ss:$12 sps:$4 sm:$0xff]  }
  0xd2   : > { %2379 = vmatprep.subr.bf16.mxu0 %v10229_v15  ;;  %v10320_v15 = vld [vmem:[%s11332_s14 + $0xf0] ss:$12 sps:$4 sm:$0xff]  }
  0xd3   : > { %9142 = vmatpush3.bf16.msra.mxu1 %v10231_v16  ;;  %v10331_v16 = vld [vmem:[%s11332_s14 + $0x10c] ss:$12 sps:$4 sm:$0xff]  }
  0xd4   : > { %9143 = vmatprep.subr.bf16.mxu1 %v10238_v17  ;;  %v10317_v17 = vld [vmem:[%s11332_s14 + $0x51c] ss:$12 sps:$4 sm:$0xff]  }
  0xd5   : > { %2380 = vmatpush1.bf16.msra.mxu0 %v10227_v18  ;;  %v10325_v18 = vld [vmem:[%s11348_s10 + $0x270] ss:$12 sps:$4 sm:$0xff]  }
  0xd6   : > { %2381 = vmatprep.subr.bf16.mxu0 %v10236_v19  ;;  %1098 = vmatmul.mubr.bf16.gmra.mrb[12].mxu1 %v11477_v20  ;;  %v10328_v19 = vld [vmem:[%s11332_s14 + $0x538] ss:$12 sps:$4 sm:$0xff]  }
  0xd7   : > { %9144 = vmatpush3.bf16.msra.mxu1 %v10239_v21  ;;  %1213 = vmatprep.mubr.bf16.mxu1 %v11386_v24  ;;  %v10255_v24 = vld [vmem:[%s11332_s14 + $0x43c] ss:$12 sps:$4 sm:$0xff]   ;;  %v10337_v21 = vld [vmem:[%s11332_s14 + $0x124] ss:$12 sps:$4 sm:$0xff]  }
  0xd8   : > { %9145 = vmatprep.subr.bf16.mxu1 %v10244_v22  ;;  %v11561_v22 = vld [vmem:[%s11348_s10 + $0x18] sm:$0xff] }
  0xd9   : > { %2382 = vmatpush1.bf16.msra.mxu0 %v10234_v23  ;;  %v10326_v23 = vld [vmem:[%s11332_s14 + $0x534] ss:$12 sps:$4 sm:$0xff]  }
  0xda   : > { %2383 = vmatprep.subr.bf16.mxu0 %v10243_v25  ;;  %v11566_v25 = vcombine.high %v11523_v54, %v11561_v22 }
  0xdb   : > { %9146 = vmatpush3.bf16.msra.mxu1 %v10245_v26  ;;  %v10334_v26 = vld [vmem:[%s11332_s14 + $0x550] ss:$12 sps:$4 sm:$0xff]  }
  0xdc   : > { %1656 = vmatprep.subr.bf16.mxu1 %v10251_v27  ;;  %v10335_v27 = vld [vmem:[%s11332_s14 + $0x120] ss:$12 sps:$4 sm:$0xff]  }
  0xdd   : > { %2384 = vmatpush1.bf16.msra.mxu0 %v10241_v28  ;;  %v10343_v28 = vld [vmem:[%s11332_s14 + $0x13c] ss:$12 sps:$4 sm:$0xff]  }
  0xde   : > { %2385 = vmatprep.subr.bf16.mxu0 %v10248_v29  ;;  %1214 = vmatmul.mubr.bf16.vlgmr.msra.gmra.mrb[16].mxu1 %v11418_v47  ;;  %v10272_v47 = vld [vmem:[%s11332_s14 + $0x480] ss:$12 sps:$4 sm:$0xff]  }
  0xdf   : > { %1657 = vmatpush1.bf16.msra.mxu1 %v10249_v30  ;;  %1221 = vmatprep.mubr.bf16.mxu1 %v11425_v52  ;;  %v10292_v52 = vld [vmem:[%s11332_s14 + $0x94] ss:$12 sps:$4 sm:$0xff]   ;;  %v10332_v29 = vld [vmem:[%s11332_s14 + $0x54c] ss:$12 sps:$4 sm:$0xff]  }
  0xe0   : > { %1658 = vmatprep.subr.bf16.mxu1 %v10258_v31  ;;  %v10340_v30 = vld [vmem:[%s11332_s14 + $0x568] ss:$12 sps:$4 sm:$0xff]   ;;  %v10341_v31 = vld [vmem:[%s11332_s14 + $0x138] ss:$12 sps:$4 sm:$0xff]  }
  0xe1   : > { %2386 = vmatpush1.bf16.msra.mxu0 %v10246_v32  ;;  %v10349_v32 = vld [vmem:[%s11332_s14 + $0x154] ss:$12 sps:$4 sm:$0xff]  }
  0xe2   : > { %2387 = vmatprep.subr.bf16.mxu0 %v10255_v24  ;;  %v10338_v24 = vld [vmem:[%s11332_s14 + $0x564] ss:$12 sps:$4 sm:$0xff]  }
  0xe3   : > { %1659 = vmatpush1.bf16.msra.mxu1 %v10256_v33  ;;  %v10346_v33 = vld [vmem:[%s11332_s14 + $0x580] ss:$12 sps:$4 sm:$0xff]  }
  0xe4   : > { %1660 = vmatprep.subr.bf16.mxu1 %v10264_v34  ;;  %v10347_v34 = vld [vmem:[%s11332_s14 + $0x150] ss:$12 sps:$4 sm:$0xff]  }
  0xe5   : > { %2388 = vmatpush1.bf16.msra.mxu0 %v10253_v35  ;;  %v10355_v35 = vld [vmem:[%s11332_s14 + $0x16c] ss:$12 sps:$4 sm:$0xff]  }
  0xe6   : > { %2389 = vmatprep.subr.bf16.mxu0 %v10261_v36  ;;  %1222 = vmatmul.mubr.bf16.gmra.mrb[20].mxu1 %v11440_v62  ;;  %v10295_v62 = vld [vmem:[%s11348_s10 + $0x1f8] ss:$12 sps:$4 sm:$0xff]   ;;  %v10344_v36 = vld [vmem:[%s11332_s14 + $0x57c] ss:$12 sps:$4 sm:$0xff]  }
  0xe7   : > { %1661 = vmatpush1.bf16.msra.mxu1 %v10262_v37  ;;  %1229 = vmatprep.mubr.bf16.mxu1 %v11444_v0  ;;  %v10296_v0 = vld [vmem:[%s11332_s14 + $0x4d4] ss:$12 sps:$4 sm:$0xff]   ;;  %v10352_v37 = vld [vmem:[%s11332_s14 + $0x598] ss:$12 sps:$4 sm:$0xff]  }
  0xe8   : > { %1662 = vmatprep.subr.bf16.mxu1 %v10271_v38  ;;  %v10353_v38 = vld [vmem:[%s11332_s14 + $0x168] ss:$12 sps:$4 sm:$0xff]  }
  0xe9   : > { %2390 = vmatpush1.bf16.msra.mxu0 %v10259_v39  ;;  %v10361_v39 = vld [vmem:[%s11332_s14 + $0xc8] ss:$12 sps:$4 sm:$0xff]  }
  0xea   : > { %2391 = vmatprep.subr.bf16.mxu0 %v10268_v40  ;;  %v11585_v40 = vld [vmem:[%s11348_s10 + $0x24] sm:$0xff] }
  0xeb   : > { %1663 = vmatpush1.bf16.msra.mxu1 %v10269_v41  ;;  %v10350_v41 = vld [vmem:[%s11332_s14 + $0x594] ss:$12 sps:$4 sm:$0xff]  }
  0xec   : > { %1664 = vmatprep.subr.bf16.mxu1 %v10277_v42  ;;  %v11590_v42 = vcombine.low %v11520_v53, %v11523_v54  ;;  %v10363_v53 = vld [vmem:[%s11332_s14 + $0x5c4] ss:$12 sps:$4 sm:$0xff]  }
  0xed   : > { %2392 = vmatpush1.bf16.msra.mxu0 %v10266_v43  ;;  %v10360_v43 = vld [vmem:[%s11332_s14 + $0x5b0] ss:$12 sps:$4 sm:$0xff]  }
  0xee   : > { %2393 = vmatprep.subr.bf16.mxu0 %v10274_v44  ;;  %1230 = vmatmul.mubr.bf16.gmra.mrb[24].mxu1 %v11459_v9  ;;  %v10313_v9 = vld [vmem:[%s11332_s14 + $0x508] ss:$12 sps:$4 sm:$0xff]  }
  0xef   : > { %1665 = vmatpush1.bf16.msra.mxu1 %v10275_v45  ;;  %1237 = vmatprep.mubr.bf16.mxu1 %v11464_v12  ;;  %v10322_v12 = vld [vmem:[%s11332_s14 + $0xf4] ss:$12 sps:$4 sm:$0xff]   ;;  %v11596_v45 = vcombine.high %v11561_v22, %v11585_v40 }
  0xf0   : > { %1666 = vmatprep.subr.bf16.mxu1 %v10286_v46  ;;  %v10362_v44 = vld [vmem:[%s11332_s14 + $0x8] ss:$12 sps:$4 sm:$0xff]   ;;  %v10366_v46 = vld [vmem:[%s11332_s14 + $0xe0] ss:$12 sps:$4 sm:$0xff]  }
  0xf1   : > { %2394 = vmatpush1.bf16.msra.mxu0 %v10272_v47  ;;  %v10358_v47 = vld [vmem:[%s11332_s14 + $0x5ac] ss:$12 sps:$4 sm:$0xff]  }
  0xf2   : > { %3095 = vmatprep.subr.bf16.mxu0 %v10283_v49  ;;  %v10367_v49 = vld [vmem:[%s11332_s14 + $0x20] ss:$12 sps:$4 sm:$0xff]  }
  0xf3   : > { %1667 = vmatpush1.bf16.msra.mxu1 %v10284_v50  ;;  %v10373_v50 = vld [vmem:[%s11332_s14 + $0xf8] ss:$12 sps:$4 sm:$0xff]  }
  0xf4   : > { %2396 = vmatmul.mubr.bf16.vlgmr.msra.gmra.mrb[24].mxu0 %v10278_v48  ;;  %1668 = vmatprep.subr.bf16.mxu1 %v10292_v52  ;;  %v10365_v48 = vld [vmem:[%s11332_s14 + $0x5c8] ss:$12 sps:$4 sm:$0xff]  }
  0xf5   : > { %3096 = vmatpush1.bf16.msra.mxu0 %v10281_v51  ;;  %2405 = vmatprep.mubr.bf16.mxu0 %v10293_v55  ;;  %v528_v51 = vld [vmem:[%s11348_s10 + $0x78] sm:$0xff]  ;;  %v11607_v52 = vld [vmem:[%s11348_s10 + $0x84] sm:$0xff]  ;;  %v10371_v55 = vld [vmem:[%s11332_s14 + $0x5e0] ss:$12 sps:$4 sm:$0xff]  }
  0xf6   : > { %3097 = vmatprep.subr.bf16.mxu0 %v10289_v57  ;;  %1238 = vmatmul.mubr.bf16.gmra.mrb[28].mxu1 %v11477_v20  ;;  %v10329_v20 = vld [vmem:[%s11332_s14 + $0x108] ss:$12 sps:$4 sm:$0xff]   ;;  %v11613_v57 = vcombine.low %v11561_v22, %v11585_v40 }
  0xf7   : > { %1669 = vmatpush1.bf16.msra.mxu1 %v10290_v58  ;;  %1688 = vmatprep.mubr.bf16.mxu1 %v11530_v59  ;;  %v10369_v58 = vld [vmem:[%s11332_s14 + $0x5dc] ss:$12 sps:$4 sm:$0xff]  }
  0xf8   : > { %1670 = vmatprep.subr.bf16.mxu1 %v10301_v60  ;;  %v10374_v60 = vld [vmem:[%s11332_s14 + $0x38] ss:$12 sps:$4 sm:$0xff]  }
  0xf9   : > { %3098 = vmatpush1.bf16.msra.mxu0 %v10287_v61  ;;  %v11618_v61 = vcombine.high %v528_v51, %v11607_v52 }
  0xfa   : > { %3099 = vmatprep.subr.bf16.mxu0 %v10298_v63  ;;  %v10378_v63 = vld [vmem:[%s11332_s14 + $0x110] ss:$12 sps:$4 sm:$0xff]  }
  0xfb   : > { %1671 = vmatpush1.bf16.msra.mxu1 %v10299_v1  ;;  %v10385_v1 = vld [vmem:[%s11332_s14 + $0x128] ss:$12 sps:$4 sm:$0xff]  }
  0xfc   : > { %2406 = vmatmul.mubr.bf16.gmra.mrb[28].mxu0 %v10295_v62  ;;  %1672 = vmatprep.subr.bf16.mxu1 %v10307_v2  ;;  %v10377_v62 = vld [vmem:[%s11332_s14 + $0x5f8] ss:$12 sps:$4 sm:$0xff]   ;;  %v11627_v2 = vld [vmem:[%s11348_s10 + $0x90] sm:$0xff] }
  0xfd   : > { %3100 = vmatpush1.bf16.msra.mxu0 %v10296_v0  ;;  %2415 = vmatprep.mubr.bf16.mxu0 %v10308_v3  ;;  %v10379_v0 = vld [vmem:[%s11332_s14 + $0x50] ss:$12 sps:$4 sm:$0xff]  }
  0xfe   : > { %3101 = vmatprep.subr.bf16.mxu0 %v10304_v4  ;;  %v11630_v3 = vld [vmem:[%s11348_s10 + $0x9c] sm:$0xff] }
  0xff   : > { %1673 = vmatpush1.bf16.msra.mxu1 %v10305_v5  ;;  %v10375_v4 = vld [vmem:[%s11332_s14 + $0x5f4] ss:$12 sps:$4 sm:$0xff]   ;;  %v10383_v5 = vld [vmem:[%s11332_s14 + $0x610] ss:$12 sps:$4 sm:$0xff]  }
 0x100   : > { %1674 = vmatprep.subr.bf16.mxu1 %v10316_v6  ;;  %v11635_v6 = vcombine.low %v528_v51, %v11607_v52 }
 0x101   : > { %3102 = vmatpush1.bf16.msra.mxu0 %v10302_v7  ;;  %v10381_v7 = vld [vmem:[%s11332_s14 + $0x60c] ss:$12 sps:$4 sm:$0xff]  }
 0x102   : > { %3103 = vmatprep.subr.bf16.mxu0 %v10313_v9  ;;  %v11641_v9 = vcombine.high %v11627_v2, %v11630_v3 }
 0x103   : > { %1675 = vmatpush1.bf16.msra.mxu1 %v10314_v11  ;;  %v10391_v11 = vld [vmem:[%s11332_s14 + $0x634] ss:$12 sps:$4 sm:$0xff]  }
 0x104   : > { %2416 = vmatmul.mubr.bf16.gmra.mrb[32].mxu0 %v10310_v8  ;;  %1676 = vmatprep.subr.bf16.mxu1 %v10322_v12  ;;  %v10386_v8 = vld [vmem:[%s11332_s14 + $0x68] ss:$12 sps:$4 sm:$0xff]  }
 0x105   : > { %3104 = vmatpush1.bf16.msra.mxu0 %v10311_v10  ;;  %2425 = vmatprep.mubr.bf16.mxu0 %v10323_v13  ;;  %v10392_v10 = vld [vmem:[%s11332_s14 + $0x140] ss:$12 sps:$4 sm:$0xff]   ;;  %v8144_v12 = vld [vmem:[%s11348_s10 + $0x30] sm:$0xff] }
 0x106   : > { %3105 = vmatprep.subr.bf16.mxu0 %v10319_v14  ;;  %v10393_v13 = vld [vmem:[%s11332_s14 + $0x80] ss:$12 sps:$4 sm:$0xff]   ;;  %v11651_v14 = vcombine.low %v11523_v54, %v11561_v22  ;;  %v10400_v54 = vld [vmem:[%s11332_s14 + $0x98] ss:$12 sps:$4 sm:$0xff]  }
 0x107   : > { %1677 = vmatpush1.bf16.msra.mxu1 %v10320_v15  ;;  %v10399_v15 = vld [vmem:[%s11332_s14 + $0x158] ss:$12 sps:$4 sm:$0xff]  }
 0x108   : > { %1678 = vmatprep.subr.bf16.mxu1 %v10331_v16  ;;  %v10389_v16 = vld [vmem:[%s11332_s14 + $0x630] ss:$12 sps:$4 sm:$0xff]  }
 0x109   : > { %3106 = vmatpush1.bf16.msra.mxu0 %v10317_v17  ;;  %v11656_v17 = vcombine.high %v11585_v40, %v8144_v12  ;;  %v10403_v22 = vld [vmem:[%s11332_s14 + $0x664] ss:$12 sps:$4 sm:$0xff]  }
 0x10a   : > { %3107 = vmatprep.subr.bf16.mxu0 %v10328_v19  ;;  %v11661_v19 = vcombine.low %v11627_v2, %v11630_v3 }
 0x10b   : > { %1679 = vmatpush1.bf16.msra.mxu1 %v10329_v20  ;;  %v10404_v20 = vld [vmem:[%s11332_s14 + $0x170] ss:$12 sps:$4 sm:$0xff]  }
 0x10c   : > { %2426 = vmatmul.mubr.bf16.gmra.mrb[36].mxu0 %v10325_v18  ;;  %1680 = vmatprep.subr.bf16.mxu1 %v10337_v21  ;;  %v10397_v18 = vld [vmem:[%s11332_s14 + $0x64c] ss:$12 sps:$4 sm:$0xff]   ;;  %v10395_v21 = vld [vmem:[%s11332_s14 + $0x648] ss:$12 sps:$4 sm:$0xff]  }
 0x10d   : > { %3108 = vmatpush1.bf16.msra.mxu0 %v10326_v23  ;;  %3127 = vmatprep.mubr.bf16.mxu0 %v11566_v25  ;;  %v10401_v23 = vld [vmem:[%s11332_s14 + $0x660] ss:$12 sps:$4 sm:$0xff]  }
 0x10e   : > { %3109 = vmatprep.subr.bf16.mxu0 %v10334_v26  ;;  %v10405_v26 = vld [vmem:[%s11332_s14 + $0xb0] ss:$12 sps:$4 sm:$0xff]  }
 0x10f   : > { %1681 = vmatpush1.bf16.msra.mxu1 %v10335_v27  ;;  %v10409_v27 = vld [vmem:[%s11332_s14 + $0x188] ss:$0 sps:$4 sm:$0xff]  }
 0x110   : > { %1682 = vmatprep.subr.bf16.mxu1 %v10343_v28  ;;  %v11675_v28 = vcombine.low %v11585_v40, %v8144_v12  ;;  %v10418_v40 = vld [vmem:[%s11332_s14 + $0x6c4] ss:$12 sps:$4 sm:$0xff]  }
 0x111   : > { %3110 = vmatpush1.bf16.msra.mxu0 %v10332_v29  ;;  %v11679_v29 = vcombine.high %v11607_v52, %v11627_v2  ;;  %v10450_v12 = vld [vmem:[%s11332_s14 + $0x784] ss:$12 sps:$4 sm:$0xff]  }
 0x112   : > { %3111 = vmatprep.subr.bf16.mxu0 %v10340_v30  ;;  %v11682_v30 = vld [vmem:[%s11332_s14 + $0x498] sm:$0xff] }
 0x113   : > { %1683 = vmatpush1.bf16.msra.mxu1 %v10341_v31  ;;  %v10408_v31 = vld [vmem:[%s11332_s14 + $0x67c] ss:$12 sps:$4 sm:$0xff]  }
 0x114   : > { %1684 = vmatprep.subr.bf16.mxu1 %v10349_v32  ;;  %v10406_v32 = vld [vmem:[%s11332_s14 + $0x678] ss:$12 sps:$4 sm:$0xff]  }
 0x115   : > { %3112 = vmatpush1.bf16.msra.mxu0 %v10338_v24  ;;  %v8125_v24 = vcombine.high %v11682_v30, %v11682_v30 }
 0x116   : > { %3113 = vmatprep.subr.bf16.mxu0 %v10346_v33  ;;  %v10412_v33 = vld [vmem:[%s11332_s14 + $0x694] ss:$12 sps:$4 sm:$0xff]  }
 0x117   : > { %1685 = vmatpush1.bf16.msra.mxu1 %v10347_v34  ;;  %v8152_v34 = vld [vmem:[%s11348_s10 + $0xa8] sm:$0xff] }
 0x118   : > { %1686 = vmatprep.subr.bf16.mxu1 %v10355_v35  ;;  %v11699_v35 = vcombine.low %v11607_v52, %v11627_v2  ;;  %v10865_v52 = vld [vmem:[%s11348_s10 + $0x8] ss:$12 sps:$4 sm:$0xff]  }
 0x119   : > { %3114 = vmatpush1.bf16.msra.mxu0 %v10344_v36  ;;  %v10410_v36 = vld [vmem:[%s11332_s14 + $0x690] ss:$12 sps:$4 sm:$0xff]   ;;  %v10442_v2 = vld [vmem:[%s11332_s14 + $0x754] ss:$12 sps:$4 sm:$0xff]  }
 0x11a   : > { %3115 = vmatprep.subr.bf16.mxu0 %v10352_v37  ;;  %v11703_v37 = vcombine.high %v11630_v3, %v8152_v34 }
 0x11b   : > { %1687 = vmatpush1.bf16.msra.mxu1 %v10353_v38  ;;  %v10415_v38 = vld [vmem:[%s11332_s14 + $0x6ac] ss:$12 sps:$4 sm:$0xff]  }
 0x11c   : > { %9176 = vmatprep.subr.bf16.mxu1 %v10361_v39  ;;  %v10413_v39 = vld [vmem:[%s11332_s14 + $0x6a8] ss:$12 sps:$4 sm:$0xff]  }
 0x11d   : > { %3116 = vmatpush1.bf16.msra.mxu0 %v10350_v41  ;;  %v11713_v41 = vcombine.low %v11630_v3, %v8152_v34 }
 0x11e   : > { %3117 = vmatprep.subr.bf16.mxu0 %v10360_v43  ;;  %1689 = vmatmul.mubr.bf16.vlgmr.msra.gmra.mrb[32].mxu1 %v11590_v42  ;;  %v10459_v43 = vld [vmem:[%s11348_s10 + $0x100] ss:$12 sps:$4 sm:$0xff]  }
 0x11f   : > { %9177 = vmatpush3.bf16.msra.mxu1 %v10362_v44  ;;  %1698 = vmatprep.mubr.bf16.mxu1 %v11596_v45  ;;  %v10421_v44 = vld [vmem:[%s11332_s14 + $0x6dc] ss:$12 sps:$4 sm:$0xff]  }
 0x120   : > { %9178 = vmatprep.subr.bf16.mxu1 %v10366_v46  ;;  %v10424_v46 = vld [vmem:[%s11332_s14 + $0x6f4] ss:$12 sps:$4 sm:$0xff]  }
 0x121   : > { %3118 = vmatpush1.bf16.msra.mxu0 %v10358_v47  ;;  %v10422_v47 = vld [vmem:[%s11332_s14 + $0x6f0] ss:$12 sps:$4 sm:$0xff]  }
 0x122   : > { %3119 = vmatprep.subr.bf16.mxu0 %v10365_v48  ;;  %v10428_v48 = vld [vmem:[%s11332_s14 + $0x70c] ss:$12 sps:$4 sm:$0xff]  }
 0x123   : > { %9179 = vmatpush3.bf16.msra.mxu1 %v10367_v49  ;;  %v10426_v49 = vld [vmem:[%s11332_s14 + $0x708] ss:$12 sps:$4 sm:$0xff]  }
 0x124   : > { %9180 = vmatprep.subr.bf16.mxu1 %v10373_v50  ;;  %v10432_v50 = vld [vmem:[%s11332_s14 + $0x724] ss:$12 sps:$4 sm:$0xff]  }
 0x125   : > { %3120 = vmatpush1.bf16.msra.mxu0 %v10363_v53 }
 0x126   : > { %3121 = vmatprep.subr.bf16.mxu0 %v10371_v55  ;;  %1699 = vmatmul.mubr.bf16.gmra.mrb[36].mxu1 %v11613_v57  ;;  %v8124_v55 = vcombine.low %v11682_v30, %v11682_v30  ;;  %v10457_v30 = vld [vmem:[%s11348_s10 + $0xfc] ss:$12 sps:$4 sm:$0xff]  }
 0x127   : > { %9181 = vmatpush3.bf16.msra.mxu1 %v10374_v60  ;;  %1708 = vmatprep.mubr.bf16.mxu1 %v11618_v61  ;;  %v10436_v60 = vld [vmem:[%s11332_s14 + $0x73c] ss:$12 sps:$4 sm:$0xff]  }
 0x128   : > { %9182 = vmatprep.subr.bf16.mxu1 %v10378_v63  ;;  %v10455_v63 = vld [vmem:[%s11332_s14 + $0x3e0] ss:$12 sps:$4 sm:$0xff]  }
 0x129   : > { %3122 = vmatpush1.bf16.msra.mxu0 %v10369_v58  ;;  %v10430_v58 = vld [vmem:[%s11332_s14 + $0x720] ss:$12 sps:$4 sm:$0xff]  }
 0x12a   : > { %3123 = vmatprep.subr.bf16.mxu0 %v10377_v62  ;;  %v2355_v62 = vsel %vm1025_vm0, %v8124_v55, 0  ;;  %v10474_v55 = vld [vmem:[%s11332_s14 + $0x380] ss:$12 sps:$4 sm:$0xff]  }
 0x12b   : > { %9183 = vmatpush3.bf16.msra.mxu1 %v10379_v0  ;;  %v10434_v0 = vld [vmem:[%s11332_s14 + $0x738] ss:$12 sps:$4 sm:$0xff]  }
 0x12c   : > { %9184 = vmatprep.subr.bf16.mxu1 %v10385_v1  ;;  %v10866_v1 = vld [vmem:[%s11348_s10 + $0x20] ss:$12 sps:$4 sm:$0xff]  }
 0x12d   : > { %3124 = vmatpush1.bf16.msra.mxu0 %v10375_v4  ;;  %v10867_v4 = vld [vmem:[%s11348_s10 + $0x80] ss:$12 sps:$4 sm:$0xff]  }
 0x12e   : > { %3125 = vmatprep.subr.bf16.mxu0 %v10383_v5  ;;  %1709 = vmatmul.mubr.bf16.gmra.mrb[40].mxu1 %v11635_v6 }
 0x12f   : > { %9185 = vmatpush3.bf16.msra.mxu1 %v10386_v8  ;;  %1718 = vmatprep.mubr.bf16.mxu1 %v11641_v9 }
 0x130   : > { %9186 = vmatprep.subr.bf16.mxu1 %v10392_v10  ;;  %v10444_v10 = vld [vmem:[%s11332_s14 + $0x768] ss:$12 sps:$4 sm:$0xff]  }
 0x131   : > { %3126 = vmatpush1.bf16.msra.mxu0 %v10381_v7  ;;  %v10440_v7 = vld [vmem:[%s11332_s14 + $0x750] ss:$12 sps:$4 sm:$0xff]  }
 0x132   : > { %3826 = vmatprep.subr.bf16.mxu0 %v10391_v11  ;;  %v10868_v11 = vld [vmem:[%s11348_s10 + $0x98] ss:$12 sps:$4 sm:$0xff]  }
 0x133   : > { %9187 = vmatpush3.bf16.msra.mxu1 %v10393_v13 }
 0x134   : > { %3128 = vmatmul.mubr.bf16.vlgmr.msra.gmra.mrb[40].mxu0 %v11651_v14  ;;  %9188 = vmatprep.subr.bf16.mxu1 %v10399_v15  ;;  %v10448_v15 = vld [vmem:[%s11332_s14 + $0x780] ss:$12 sps:$4 sm:$0xff]  }
 0x135   : > { %3827 = vmatpush1.bf16.msra.mxu0 %v10389_v16  ;;  %3137 = vmatprep.mubr.bf16.mxu0 %v11656_v17 }
 0x136   : > { %3828 = vmatprep.subr.bf16.mxu0 %v10397_v18  ;;  %1719 = vmatmul.mubr.bf16.gmra.mrb[44].mxu1 %v11661_v19  ;;  %v10453_v18 = vld [vmem:[%s11332_s14 + $0x79c] ss:$12 sps:$4 sm:$0xff]  }
 0x137   : > { %9189 = vmatpush3.bf16.msra.mxu1 %v10400_v54  ;;  %1834 = vmatprep.mubr.bf16.mxu1 %v11530_v59  ;;  %v1654_v59 = vsel %vm1025_vm0, %v10409_v27, 0 }
 0x138   : > { %9190 = vmatprep.subr.bf16.mxu1 %v10404_v20  ;;  %v8375_v20 = vld [vmem:[%s11332_s14 + $0x7b0] sm:$0xff] }
 0x139   : > { %3829 = vmatpush1.bf16.msra.mxu0 %v10395_v21 }
 0x13a   : > { %3830 = vmatprep.subr.bf16.mxu0 %v10403_v22  ;;  %v10456_v22 = vld [vmem:[%s11332_s14 + $0x320] ss:$12 sps:$4 sm:$0xff]  }
 0x13b   : > { %9191 = vmatpush3.bf16.msra.mxu1 %v10405_v26  ;;  %v10451_v26 = vld [vmem:[%s11332_s14 + $0x798] ss:$12 sps:$4 sm:$0xff]  }
 0x13c   : > { %10035 = vmatprep.subr.msk.bf16.mxu1 %vm1025_vm0, %v10409_v27  ;;  %3138 = vmatmul.mubr.bf16.gmra.mrb[44].mxu0 %v11675_v28  ;;  %v8437_v27 = vcombine.low %v8375_v20, %v8375_v20 }
 0x13d   : > { %3831 = vmatpush1.bf16.msra.mxu0 %v10401_v23  ;;  %3147 = vmatprep.mubr.bf16.mxu0 %v11679_v29  ;;  %v10461_v23 = vld [vmem:[%s11332_s14 + $0x3f8] ss:$12 sps:$4 sm:$0xff]  }
 0x13e   : > { %3832 = vmatprep.subr.bf16.mxu0 %v10408_v31  ;;  %1835 = vmatmul.mubr.bf16.vlgmr.msra.gmra.mrb[48].mxu1 %v11590_v42  ;;  %v10416_v42 = vld [vmem:[%s11332_s14 + $0x6c0] ss:$12 sps:$4 sm:$0xff]   ;;  %v8438_v31 = vcombine.high %v8375_v20, %v8375_v20 }
 0x13f   : > { %9547 = vmatpush3.bf16.msra.mxu1 %v1654_v59  ;;  %1842 = vmatprep.mubr.bf16.mxu1 %v11596_v45  ;;  %v10419_v45 = vld [vmem:[%s11332_s14 + $0x6d8] ss:$12 sps:$4 sm:$0xff]   ;;  %v10465_v59 = vld [vmem:[%s11332_s14 + $0x410] ss:$12 sps:$4 sm:$0xff]  }
 0x140   : > { %8127 = vmatprep.subr.msk.bf16.mxu1 %vm1025_vm0, %v8125_v24  ;;  %v10485_v20 = vld [vmem:[%s11348_s10 + $0x18c] ss:$12 sps:$4 sm:$0xff]  }
 0x141   : > { %3833 = vmatpush1.bf16.msra.mxu0 %v10406_v32  ;;  %v10463_v32 = vld [vmem:[%s11332_s14 + $0x338] ss:$12 sps:$4 sm:$0xff]  }
 0x142   : > { %3834 = vmatprep.subr.bf16.mxu0 %v10412_v33  ;;  %v10467_v33 = vld [vmem:[%s11348_s10 + $0x118] ss:$12 sps:$4 sm:$0xff]  }
 0x144   : > { %3148 = vmatmul.mubr.bf16.gmra.mrb[48].mxu0 %v11699_v35 }
 0x145   : > { %3835 = vmatpush1.bf16.msra.mxu0 %v10410_v36  ;;  %3157 = vmatprep.mubr.bf16.mxu0 %v11703_v37  ;;  %v11794_v36 = vld [vmem:[%s11348_s10 + $0x200] ss:$12 sps:$4 sm:$0xff]  }
 0x146   : > { %3836 = vmatprep.subr.bf16.mxu0 %v10415_v38  ;;  %1843 = vmatmul.mubr.bf16.gmra.mrb[52].mxu1 %v11613_v57  ;;  %v10491_v38 = vld [vmem:[%s11332_s14 + $0x7c0] ss:$12 sps:$4 sm:$0xff]  }
 0x147   : > { %1850 = vmatprep.mubr.bf16.mxu1 %v11618_v61 }
 0x149   : > { %3837 = vmatpush1.bf16.msra.mxu0 %v10413_v39 }
 0x14a   : > { %3838 = vmatprep.subr.bf16.mxu0 %v10418_v40  ;;  %v3818_v40 = vsel %vm1025_vm0, %v8437_v27, 0 }
 0x14c   : > { %3158 = vmatmul.mubr.bf16.gmra.mrb[52].mxu0 %v11713_v41 }
 0x14d   : > { %3839 = vmatpush1.bf16.msra.mxu0 %v10416_v42  ;;  %3858 = vmatprep.mubr.bf16.mxu0 %v10459_v43  ;;  %v10466_v42 = vld [vmem:[%s11332_s14 + $0x350] ss:$12 sps:$4 sm:$0xff]  }
 0x14e   : > { %3840 = vmatprep.subr.bf16.mxu0 %v10421_v44  ;;  %1851 = vmatmul.mubr.bf16.gmra.mrb[56].mxu1 %v11635_v6  ;;  %v10470_v44 = vld [vmem:[%s11332_s14 + $0x428] ss:$12 sps:$4 sm:$0xff]  }
 0x14f   : > { %1858 = vmatprep.mubr.bf16.mxu1 %v11641_v9  ;;  %v10446_v9 = vld [vmem:[%s11332_s14 + $0x76c] ss:$12 sps:$4 sm:$0xff]  }
 0x151   : > { %3841 = vmatpush1.bf16.msra.mxu0 %v10419_v45  ;;  %v10471_v45 = vld [vmem:[%s11332_s14 + $0x368] ss:$12 sps:$4 sm:$0xff]  }
 0x152   : > { %3842 = vmatprep.subr.bf16.mxu0 %v10424_v46  ;;  %v10469_v46 = vld [vmem:[%s11348_s10 + $0x114] ss:$12 sps:$4 sm:$0xff]  }
 0x155   : > { %3843 = vmatpush1.bf16.msra.mxu0 %v10422_v47  ;;  %v10473_v47 = vld [vmem:[%s11332_s14 + $0x440] ss:$12 sps:$4 sm:$0xff]  }
 0x156   : > { %3844 = vmatprep.subr.bf16.mxu0 %v10428_v48  ;;  %1859 = vmatmul.mubr.bf16.gmra.mrb[60].mxu1 %v11661_v19  ;;  %v11772_v19 = vld [vmem:[%s11348_s10 + $0x1e8] ss:$12 sps:$4 sm:$0xff]  }
 0x157   : > { %v11728_v51 = vpop.f32.mrb[0].mxu0  ;;  %9548 = vmatprep.mubr.msk.bf16.mxu1 %vm1012_vm1, %v10865_v52 }
 0x158   : > { %v11732_v53 = vpop.f32.mrb[1].mxu0 }
 0x159   : > { %3845 = vmatpush1.bf16.msra.mxu0 %v10426_v49  ;;  %v11736_v57 = vpop.f32.mrb[2].mxu0 }
 0x15a   : > { %v11740_v61 = vpop.f32.mrb[3].mxu0  ;;  %3846 = vmatprep.subr.bf16.mxu0 %v10432_v50  ;;  %v11816_v50 = vld [vmem:[%s11348_s10 + $0x260] ss:$12 sps:$4 sm:$0xff]  }
 0x15d   : > { %3847 = vmatpush1.bf16.msra.mxu0 %v10430_v58  ;;  %v10475_v58 = vld [vmem:[%s11348_s10 + $0x178] ss:$12 sps:$4 sm:$0xff]  }
 0x15e   : > { %3848 = vmatprep.subr.bf16.mxu0 %v10436_v60  ;;  %9549 = vmatmul.mubr.msk.bf16.vlgmr.msra.gmra.mrb[64].mxu1 %vm1012_vm1, %v10866_v1  ;;  %v10479_v1 = vld [vmem:[%s11332_s14 + $0x398] ss:$12 sps:$4 sm:$0xff]  }
 0x15f   : > { %v11748_v3 = vpop.f32.mrb[4].mxu0  ;;  %2437 = vmatpush1.bf16.msra.mxu1 %v2355_v62  ;;  %9552 = vmatprep.mubr.msk.bf16.mxu1 %vm1012_vm1, %v10867_v4  ;;  %v10478_v62 = vld [vmem:[%s11332_s14 + $0x458] ss:$12 sps:$4 sm:$0xff]   ;;  %v10481_v4 = vld [vmem:[%s11332_s14 + $0x470] ss:$12 sps:$4 sm:$0xff]  }
 0x160   : > { %v11752_v5 = vpop.f32.mrb[5].mxu0  ;;  %9221 = vmatprep.subr.bf16.mxu1 %v10455_v63  ;;  %v10477_v63 = vld [vmem:[%s11348_s10 + $0x174] ss:$12 sps:$4 sm:$0xff]  }
 0x161   : > { %3849 = vmatpush1.bf16.msra.mxu0 %v10434_v0  ;;  %v11754_v6 = vpop.f32.mrb[6].mxu0 }
 0x162   : > { %v11757_v8 = vpop.f32.mrb[7].mxu0  ;;  %3850 = vmatprep.subr.bf16.mxu0 %v10442_v2 }
 0x165   : > { %3851 = vmatpush1.bf16.msra.mxu0 %v10440_v7 }
 0x166   : > { %3852 = vmatprep.subr.bf16.mxu0 %v10446_v9  ;;  %9553 = vmatmul.mubr.msk.bf16.gmra.mrb[68].mxu1 %vm1012_vm1, %v10868_v11  ;;  %v11838_v9 = vld [vmem:[%s11348_s10 + $0x278] ss:$12 sps:$4 sm:$0xff]  }
 0x167   : > { %v11764_v13 = vpop.f32.mrb[8].mxu0  ;;  %2468 = vmatprep.mubr.bf16.mxu1 %v13180_v56 }
 0x168   : > { %v11768_v16 = vpop.f32.mrb[9].mxu0 }
 0x169   : > { %3853 = vmatpush1.bf16.msra.mxu0 %v10444_v10  ;;  %v11774_v54 = vpop.f32.mrb[10].mxu0  ;;  %v10483_v10 = vld [vmem:[%s11348_s10 + $0x190] ss:$12 sps:$4 sm:$0xff]  }
 0x16a   : > { %v11777_v21 = vpop.f32.mrb[11].mxu0  ;;  %3854 = vmatprep.subr.bf16.mxu0 %v10450_v12  ;;  %v10482_v12 = vld [vmem:[%s11332_s14 + $0x3b0] ss:$12 sps:$4 sm:$0xff]  }
 0x16d   : > { %3855 = vmatpush1.bf16.msra.mxu0 %v10448_v15  ;;  %v10486_v15 = vld [vmem:[%s11332_s14 + $0x488] ss:$12 sps:$4 sm:$0xff]  }
 0x16e   : > { %3856 = vmatprep.subr.bf16.mxu0 %v10453_v18  ;;  %8128 = vmatmul.mubr.msk.bf16.vlgmr.msra.gmra.mrb[72].mxu1 %vm1012_vm1, %v11772_v19  ;;  %v10487_v18 = vld [vmem:[%s11332_s14 + $0x3c8] ss:$12 sps:$4 sm:$0xff]  }
 0x16f   : > { %v11787_v24 = vpop.f32.mrb[12].mxu0  ;;  %9222 = vmatpush3.bf16.msra.mxu1 %v10456_v22  ;;  %2478 = vmatprep.mubr.bf16.mxu1 %v13180_v56  ;;  %v10869_v22 = vld [vmem:[%s11348_s10 + $0x1e4] ss:$12 sps:$4 sm:$0xff]  }
 0x170   : > { %v11791_v34 = vpop.f32.mrb[13].mxu0  ;;  %9223 = vmatprep.subr.bf16.mxu1 %v10461_v23  ;;  %v10488_v23 = vld [vmem:[%s11332_s14 + $0x4a0] ss:$0 sps:$4 sm:$0xff]  }
 0x171   : > { %3857 = vmatpush1.bf16.msra.mxu0 %v10451_v26  ;;  %v11797_v39 = vpop.f32.mrb[14].mxu0  ;;  %v11852_v26 = vld [vmem:[%s11332_s14 + $0x624] sm:$0xff]  ;;  %v2361_v27 = vsel %vm1025_vm0, %v10488_v23, 0 }
 0x172   : > { %v11801_v43 = vpop.f32.mrb[15].mxu0  ;;  %8440 = vmatprep.subr.msk.bf16.mxu0 %vm1025_vm0, %v8438_v31  ;;  %v10870_v31 = vld [vmem:[%s11348_s10 + $0x1e0] ss:$12 sps:$4 sm:$0xff]  }
 0x173   : > { %9224 = vmatpush3.bf16.msra.mxu1 %v10463_v32  ;;  %v10871_v32 = vld [vmem:[%s11348_s10 + $0x1fc] ss:$12 sps:$4 sm:$0xff]  }
 0x174   : > { %3859 = vmatmul.mubr.bf16.vlgmr.msra.gmra.mrb[56].mxu0 %v10457_v30  ;;  %9225 = vmatprep.subr.bf16.mxu1 %v10465_v59  ;;  %v8281_v30 = vcombine.high %v11852_v26, %v11852_v26  ;;  %v10492_v59 = vld [vmem:[%s11348_s10 + $0x104] ss:$12 sps:$4 sm:$0xff]  }
 0x175   : > { %3900 = vmatpush1.bf16.msra.mxu0 %v3818_v40  ;;  %3868 = vmatprep.mubr.bf16.mxu0 %v10467_v33  ;;  %v10489_v33 = vld [vmem:[%s11332_s14 + $0x7bc] ss:$12 sps:$4 sm:$0xff]   ;;  %v10495_v40 = vld [vmem:[%s11332_s14 + $0x7d8] ss:$12 sps:$4 sm:$0xff]  }
 0x176   : > { %8129 = vmatmul.mubr.msk.bf16.gmra.mrb[76].mxu1 %vm1012_vm1, %v11794_v36  ;;  %4557 = vmatprep.subr.bf16.mxu0 %v10491_v38 }
 0x177   : > { %v11810_v48 = vpop.f32.mrb[16].mxu0  ;;  %9226 = vmatpush3.bf16.msra.mxu1 %v10466_v42  ;;  %2488 = vmatprep.mubr.bf16.mxu1 %v13180_v56 }
 0x178   : > { %v11813_v49 = vpop.f32.mrb[17].mxu0  ;;  %9227 = vmatprep.subr.bf16.mxu1 %v10470_v44 }
 0x179   : > { %v11818_v52 = vpop.f32.mrb[18].mxu0 }
 0x17a   : > { %v11822_v60 = vpop.f32.mrb[19].mxu0 }
 0x17b   : > { %9228 = vmatpush3.bf16.msra.mxu1 %v10471_v45 }
 0x17c   : > { %3869 = vmatmul.mubr.bf16.gmra.mrb[60].mxu0 %v10469_v46  ;;  %9229 = vmatprep.subr.bf16.mxu1 %v10473_v47 }
 0x17d   : > { %3878 = vmatprep.mubr.bf16.mxu0 %v10475_v58 }
 0x17e   : > { %8130 = vmatmul.mubr.msk.bf16.gmra.mrb[80].mxu1 %vm1012_vm1, %v11816_v50 }
 0x17f   : > { %v11828_v0 = vpop.f32.mrb[20].mxu0  ;;  %9230 = vmatpush3.bf16.msra.mxu1 %v10474_v55  ;;  %2498 = vmatprep.mubr.bf16.mxu1 %v13180_v56 }
 0x180   : > { %v11832_v2 = vpop.f32.mrb[21].mxu0  ;;  %9231 = vmatprep.subr.bf16.mxu1 %v10478_v62  ;;  %v10498_v62 = vld [vmem:[%s11332_s14 + $0x7f0] ss:$12 sps:$4 sm:$0xff]  }
 0x181   : > { %v11835_v7 = vpop.f32.mrb[22].mxu0 }
 0x182   : > { %v11841_v11 = vpop.f32.mrb[23].mxu0 }
 0x183   : > { %9232 = vmatpush3.bf16.msra.mxu1 %v10479_v1  ;;  %v10522_v1 = vld [vmem:[%s11348_s10 + $0x11c] ss:$12 sps:$4 sm:$0xff]  }
 0x184   : > { %3879 = vmatmul.mubr.bf16.gmra.mrb[64].mxu0 %v10477_v63  ;;  %9233 = vmatprep.subr.bf16.mxu1 %v10481_v4  ;;  %v10873_v63 = vld [vmem:[%s11348_s10 + $0x25c] ss:$12 sps:$4 sm:$0xff]  }
 0x185   : > { %3888 = vmatprep.mubr.bf16.mxu0 %v10483_v10 }
 0x186   : > { %8131 = vmatmul.mubr.msk.bf16.gmra.mrb[84].mxu1 %vm1012_vm1, %v11838_v9 }
 0x187   : > { %9234 = vmatpush3.bf16.msra.mxu1 %v10482_v12  ;;  %2541 = vmatprep.mubr.bf16.mxu1 %v10869_v22  ;;  %v10501_v12 = vld [vmem:[%s11332_s14 + $0x808] ss:$12 sps:$4 sm:$0xff]  }
 0x188   : > { %9235 = vmatprep.subr.bf16.mxu1 %v10486_v15 }
 0x18b   : > { %9236 = vmatpush3.bf16.msra.mxu1 %v10487_v18 }
 0x18c   : > { %3889 = vmatmul.mubr.bf16.gmra.mrb[68].mxu0 %v10485_v20  ;;  %10036 = vmatprep.subr.msk.bf16.mxu1 %vm1025_vm0, %v10488_v23 }
 0x18d   : > { %3931 = vmatprep.mubr.bf16.mxu0 %v13180_v56 }
 0x18e   : > { %2542 = vmatmul.mubr.bf16.vlgmr.msra.gmra.mrb[88].mxu1 %v10870_v31  ;;  %v10875_v31 = vld [vmem:[%s11348_s10 + $0x274] ss:$12 sps:$4 sm:$0xff]  }
 0x18f   : > { %9557 = vmatpush3.bf16.msra.mxu1 %v2361_v27  ;;  %2549 = vmatprep.mubr.bf16.mxu1 %v10871_v32  ;;  %v10504_v27 = vld [vmem:[%s11332_s14 + $0x820] ss:$12 sps:$4 sm:$0xff]  }
 0x190   : > { %8283 = vmatprep.subr.msk.bf16.mxu1 %vm1025_vm0, %v8281_v30  ;;  %v10532_v30 = vld [vmem:[%s11348_s10 + $0x17c] ss:$12 sps:$4 sm:$0xff]  }
 0x191   : > { %v1069_v38 = vpop.f32.mrb[0].mxu1 }
 0x192   : > { %v11866_v42 = vadd.f32 %v11728_v51, %v1069_v38  ;;  %v1071_v44 = vpop.f32.mrb[1].mxu1  ;;  %v10493_v51 = vld [vmem:[%s11332_s14 + $0x7d4] ss:$12 sps:$4 sm:$0xff]  }
 0x193   : > { %v11869_v45 = vadd.f32 %v11732_v53, %v1071_v44  ;;  %v1073_v46 = vpop.f32.mrb[2].mxu1  ;;  %v10872_v53 = vld [vmem:[%s11348_s10 + $0x1f8] ss:$12 sps:$4 sm:$0xff]  }
 0x194   : > { %8441 = vmatmul.mubr.msk.bf16.vlgmr.msra.gmra.mrb[56].mxu0 %vm1012_vm1, %v10492_v59  ;;  %v11873_v47 = vadd.f32 %v11736_v57, %v1073_v46  ;;  %v1075_v55 = vpop.f32.mrb[3].mxu1  ;;  %v10496_v57 = vld [vmem:[%s11332_s14 + $0x7ec] ss:$12 sps:$4 sm:$0xff]  }
 0x195   : > { %4558 = vmatpush1.bf16.msra.mxu0 %v10489_v33  ;;  %v11876_v58 = vadd.f32 %v11740_v61, %v1075_v55  ;;  %3941 = vmatprep.mubr.bf16.mxu0 %v13180_v56  ;;  %v10507_v33 = vld [vmem:[%s11332_s14 + $0x838] ss:$12 sps:$4 sm:$0xff]   ;;  %v10505_v55 = vld [vmem:[%s11332_s14 + $0x834] ss:$12 sps:$4 sm:$0xff]  }
 0x196   : > { %4559 = vmatprep.subr.bf16.mxu0 %v10495_v40  ;;  %2550 = vmatmul.mubr.bf16.gmra.mrb[92].mxu1 %v10872_v53  ;;  %v8280_v53 = vcombine.low %v11852_v26, %v11852_v26 }
 0x197   : > { %2557 = vmatprep.mubr.bf16.mxu1 %v10873_v63  ;;  %v10513_v63 = vld [vmem:[%s11332_s14 + $0x868] ss:$12 sps:$4 sm:$0xff]  }
 0x199   : > { %4560 = vmatpush1.bf16.msra.mxu0 %v10493_v51  ;;  %v1079_v4 = vpop.f32.mrb[4].mxu1  ;;  %v10510_v51 = vld [vmem:[%s11332_s14 + $0x850] ss:$12 sps:$4 sm:$0xff]  }
 0x19a   : > { %4561 = vmatprep.subr.bf16.mxu0 %v10498_v62  ;;  %v11886_v61 = vadd.f32 %v11748_v3, %v1079_v4  ;;  %v1081_v10 = vpop.f32.mrb[5].mxu1  ;;  %v10499_v3 = vld [vmem:[%s11332_s14 + $0x804] ss:$12 sps:$4 sm:$0xff]   ;;  %v10544_v62 = vld [vmem:[%s11348_s10 + $0x194] ss:$12 sps:$4 sm:$0xff]  }
 0x19b   : > { %v11890_v15 = vadd.f32 %v11752_v5, %v1081_v10  ;;  %v1083_v18 = vpop.f32.mrb[6].mxu1  ;;  %v10874_v5 = vld [vmem:[%s11348_s10 + $0x258] ss:$12 sps:$4 sm:$0xff]  }
 0x19c   : > { %v11893_v20 = vadd.f32 %v11754_v6, %v1083_v18  ;;  %v1085_v22 = vpop.f32.mrb[7].mxu1  ;;  %8442 = vmatmul.mubr.msk.bf16.gmra.mrb[60].mxu0 %vm1012_vm1, %v10522_v1  ;;  %v10502_v6 = vld [vmem:[%s11332_s14 + $0x81c] ss:$12 sps:$4 sm:$0xff]   ;;  %v10530_v10 = vld [vmem:[%s11332_s14 + $0x56c] ss:$12 sps:$4 sm:$0xff]  }
 0x19d   : > { %4562 = vmatpush1.bf16.msra.mxu0 %v10496_v57  ;;  %v11897_v23 = vadd.f32 %v11757_v8, %v1085_v22  ;;  %3951 = vmatprep.mubr.bf16.mxu0 %v13180_v56  ;;  %v10558_v1 = vld [vmem:[%s11348_s10 + $0x1f0] ss:$12 sps:$4 sm:$0xff]  }
 0x19e   : > { %4563 = vmatprep.subr.bf16.mxu0 %v10501_v12  ;;  %2558 = vmatmul.mubr.bf16.gmra.mrb[96].mxu1 %v10874_v5 }
 0x19f   : > { %2565 = vmatprep.mubr.bf16.mxu1 %v10875_v31 }
 0x1a1   : > { %4564 = vmatpush1.bf16.msra.mxu0 %v10499_v3  ;;  %v1089_v32 = vpop.f32.mrb[8].mxu1  ;;  %v10511_v3 = vld [vmem:[%s11332_s14 + $0x864] ss:$12 sps:$4 sm:$0xff]  }
 0x1a2   : > { %4565 = vmatprep.subr.bf16.mxu0 %v10504_v27  ;;  %v11907_v8 = vadd.f32 %v11764_v13, %v1089_v32  ;;  %v1091_v59 = vpop.f32.mrb[9].mxu1  ;;  %v10518_v27 = vld [vmem:[%s11332_s14 + $0x880] ss:$12 sps:$4 sm:$0xff]  }
 0x1a3   : > { %v11911_v38 = vadd.f32 %v11768_v16, %v1091_v59  ;;  %v1093_v40 = vpop.f32.mrb[10].mxu1  ;;  %v10876_v16 = vld [vmem:[%s11348_s10 + $0x270] ss:$12 sps:$4 sm:$0xff]  }
 0x1a4   : > { %v11914_v44 = vadd.f32 %v11774_v54, %v1093_v40  ;;  %v1095_v46 = vpop.f32.mrb[11].mxu1  ;;  %8443 = vmatmul.mubr.msk.bf16.gmra.mrb[64].mxu0 %vm1012_vm1, %v10532_v30  ;;  %v10508_v54 = vld [vmem:[%s11332_s14 + $0x84c] ss:$12 sps:$4 sm:$0xff]   ;;  %v10525_v59 = vld [vmem:[%s11332_s14 + $0x8b0] ss:$12 sps:$4 sm:$0xff]  }
 0x1a5   : > { %4566 = vmatpush1.bf16.msra.mxu0 %v10502_v6  ;;  %v11918_v13 = vadd.f32 %v11777_v21, %v1095_v46  ;;  %3961 = vmatprep.mubr.bf16.mxu0 %v13180_v56  ;;  %v10519_v6 = vld [vmem:[%s11332_s14 + $0x894] ss:$12 sps:$4 sm:$0xff]   ;;  %v10523_v40 = vld [vmem:[%s11332_s14 + $0x8ac] ss:$12 sps:$4 sm:$0xff]  }
 0x1a6   : > { %4567 = vmatprep.subr.bf16.mxu0 %v10507_v33  ;;  %2566 = vmatmul.mubr.bf16.gmra.mrb[100].mxu1 %v10876_v16  ;;  %v10528_v46 = vld [vmem:[%s11332_s14 + $0x8c8] ss:$12 sps:$4 sm:$0xff]  }
 0x1a7   : > { %9558 = vmatprep.mubr.msk.bf16.mxu1 %vm1012_vm1, %v11772_v19  ;;  %v3087_v19 = vsel %vm1025_vm0, %v8280_v53, 0  ;;  %v10536_v53 = vld [vmem:[%s11332_s14 + $0x584] ss:$12 sps:$4 sm:$0xff]  }
 0x1a9   : > { %4568 = vmatpush1.bf16.msra.mxu0 %v10505_v55  ;;  %v1099_v21 = vpop.f32.mrb[12].mxu1  ;;  %v11969_v55 = vld [vmem:[%s11348_s10 + $0x14] ss:$12 sps:$4 sm:$0xff]  }
 0x1aa   : > { %4569 = vmatprep.subr.bf16.mxu0 %v10510_v51  ;;  %v11933_v57 = vadd.f32 %v11787_v24, %v1099_v21  ;;  %v1101_v4 = vpop.f32.mrb[13].mxu1  ;;  %v10531_v51 = vld [vmem:[%s11332_s14 + $0x4ac] ss:$12 sps:$4 sm:$0xff]  }
 0x1ab   : > { %v11937_v12 = vadd.f32 %v11791_v34, %v1101_v4  ;;  %v1103_v18 = vpop.f32.mrb[14].mxu1  ;;  %v10516_v34 = vld [vmem:[%s11332_s14 + $0x87c] ss:$12 sps:$4 sm:$0xff]  }
 0x1ac   : > { %v11941_v26 = vadd.f32 %v11797_v39, %v1103_v18  ;;  %v1105_v22 = vpop.f32.mrb[15].mxu1  ;;  %8444 = vmatmul.mubr.msk.bf16.gmra.mrb[68].mxu0 %vm1012_vm1, %v10544_v62  ;;  %v10537_v18 = vld [vmem:[%s11332_s14 + $0x4c4] ss:$12 sps:$4 sm:$0xff]  }
 0x1ad   : > { %4570 = vmatpush1.bf16.msra.mxu0 %v10508_v54  ;;  %v11945_v24 = vadd.f32 %v11801_v43, %v1105_v22  ;;  %4589 = vmatprep.mubr.bf16.mxu0 %v10558_v1  ;;  %v10521_v43 = vld [vmem:[%s11332_s14 + $0x898] ss:$12 sps:$4 sm:$0xff]   ;;  %v10535_v1 = vld [vmem:[%s11332_s14 + $0x8e0] ss:$12 sps:$4 sm:$0xff]  }
 0x1ae   : > { %4571 = vmatprep.subr.bf16.mxu0 %v10513_v63  ;;  %9559 = vmatmul.mubr.msk.bf16.vlgmr.msra.gmra.mrb[64].mxu1 %vm1012_vm1, %v11794_v36  ;;  %v10526_v54 = vld [vmem:[%s11332_s14 + $0x8c4] ss:$12 sps:$4 sm:$0xff]   ;;  %v11989_v22 = vld [vmem:[%s11348_s10 + $0x2c] ss:$12 sps:$4 sm:$0xff]  }
 0x1af   : > { %3169 = vmatpush1.bf16.msra.mxu1 %v3087_v19  ;;  %9562 = vmatprep.mubr.msk.bf16.mxu1 %vm1012_vm1, %v11816_v50  ;;  %v10542_v19 = vld [vmem:[%s11332_s14 + $0x59c] ss:$12 sps:$4 sm:$0xff]  }
 0x1b0   : > { %9266 = vmatprep.subr.bf16.mxu1 %v10530_v10  ;;  %v10533_v10 = vld [vmem:[%s11332_s14 + $0x8dc] ss:$12 sps:$4 sm:$0xff]  }
 0x1b1   : > { %4572 = vmatpush1.bf16.msra.mxu0 %v10511_v3  ;;  %v9147_v39 = vpop.f32.mrb[16].mxu1 }
 0x1b2   : > { %4573 = vmatprep.subr.bf16.mxu0 %v10518_v27  ;;  %v9148_v5 = vpop.f32.mrb[17].mxu1 }
 0x1b3   : > { %v9149_v30 = vadd.f32 %v9148_v5, %v9147_v39  ;;  %v9150_v31 = vpop.f32.mrb[18].mxu1  ;;  %v10548_v5 = vld [vmem:[%s11332_s14 + $0x5b4] ss:$12 sps:$4 sm:$0xff]  }
 0x1b4   : > { %v9151_v36 = vpop.f32.mrb[19].mxu1 }
 0x1b5   : > { %4574 = vmatpush1.bf16.msra.mxu0 %v10516_v34  ;;  %v11957_v32 = vadd.f32 %v9149_v30, %v11813_v49  ;;  %v9152_v50 = vadd.f32 %v9151_v36, %v9150_v31  ;;  %v10547_v36 = vld [vmem:[%s11332_s14 + $0x910] ss:$12 sps:$4 sm:$0xff]  }
 0x1b6   : > { %4575 = vmatprep.subr.bf16.mxu0 %v10521_v43  ;;  %9563 = vmatmul.mubr.msk.bf16.gmra.mrb[68].mxu1 %vm1012_vm1, %v11838_v9  ;;  %v10538_v43 = vld [vmem:[%s11332_s14 + $0x8f4] ss:$12 sps:$4 sm:$0xff]  }
 0x1b7   : > { %v11963_v33 = vadd.f32 %v9152_v50, %v11822_v60  ;;  %3200 = vmatprep.mubr.bf16.mxu1 %v13180_v56  ;;  %v10549_v50 = vld [vmem:[%s11332_s14 + $0x4f4] ss:$12 sps:$4 sm:$0xff]  }
 0x1b9   : > { %4576 = vmatpush1.bf16.msra.mxu0 %v10519_v6  ;;  %v9153_v49 = vpop.f32.mrb[20].mxu1 }
 0x1ba   : > { %4577 = vmatprep.subr.bf16.mxu0 %v10525_v59  ;;  %v9154_v16 = vpop.f32.mrb[21].mxu1 }
 0x1bb   : > { %v9155_v9 = vadd.f32 %v9154_v16, %v9153_v49  ;;  %v9156_v62 = vpop.f32.mrb[22].mxu1  ;;  %v8532_v49 = vld [vmem:[%s11332_s14 + $0x93c] sm:$0xff]  ;;  %v10552_v16 = vld [vmem:[%s11332_s14 + $0x928] ss:$12 sps:$4 sm:$0xff]  }
 0x1bc   : > { %v9157_v60 = vpop.f32.mrb[23].mxu1 }
 0x1bd   : > { %4578 = vmatpush1.bf16.msra.mxu0 %v10523_v40  ;;  %v11975_v21 = vadd.f32 %v11810_v48, %v9155_v9  ;;  %v9158_v63 = vadd.f32 %v9157_v60, %v9156_v62  ;;  %v10540_v48 = vld [vmem:[%s11332_s14 + $0x8f8] ss:$12 sps:$4 sm:$0xff]  }
 0x1be   : > { %4579 = vmatprep.subr.bf16.mxu0 %v10528_v46  ;;  %8284 = vmatmul.mubr.msk.bf16.vlgmr.msra.gmra.mrb[104].mxu1 %vm1012_vm1, %v11969_v55  ;;  %v10545_v46 = vld [vmem:[%s11332_s14 + $0x90c] ss:$12 sps:$4 sm:$0xff]  }
 0x1bf   : > { %v11981_v4 = vadd.f32 %v11818_v52, %v9158_v63  ;;  %9267 = vmatpush3.bf16.msra.mxu1 %v10531_v51  ;;  %3210 = vmatprep.mubr.bf16.mxu1 %v13180_v56  ;;  %v10543_v52 = vld [vmem:[%s11332_s14 + $0x4dc] ss:$12 sps:$4 sm:$0xff]   ;;  %v12014_v9 = vld [vmem:[%s11348_s10 + $0x8c] ss:$12 sps:$4 sm:$0xff]   ;;  %v8594_v63 = vcombine.low %v8532_v49, %v8532_v49 }
 0x1c0   : > { %9268 = vmatprep.subr.bf16.mxu1 %v10536_v53  ;;  %v10555_v53 = vld [vmem:[%s11332_s14 + $0x50c] ss:$12 sps:$4 sm:$0xff]  }
 0x1c1   : > { %4580 = vmatpush1.bf16.msra.mxu0 %v10526_v54  ;;  %v9159_v3 = vpop.f32.mrb[24].mxu1 }
 0x1c2   : > { %4581 = vmatprep.subr.bf16.mxu0 %v10535_v1  ;;  %v9160_v27 = vpop.f32.mrb[25].mxu1 }
 0x1c3   : > { %v9161_v34 = vadd.f32 %v9160_v27, %v9159_v3  ;;  %v9162_v39 = vpop.f32.mrb[26].mxu1  ;;  %9269 = vmatpush3.bf16.msra.mxu1 %v10537_v18  ;;  %v10561_v18 = vld [vmem:[%s11332_s14 + $0x5e4] ss:$12 sps:$4 sm:$0xff]  }
 0x1c4   : > { %v9163_v30 = vpop.f32.mrb[27].mxu1  ;;  %9270 = vmatprep.subr.bf16.mxu1 %v10542_v19  ;;  %v10550_v27 = vld [vmem:[%s11332_s14 + $0x924] ss:$12 sps:$4 sm:$0xff]  }
 0x1c5   : > { %4582 = vmatpush1.bf16.msra.mxu0 %v10533_v10  ;;  %v11995_v31 = vadd.f32 %v9161_v34, %v11832_v2  ;;  %v9164_v6 = vadd.f32 %v9163_v30, %v9162_v39  ;;  %v10554_v2 = vld [vmem:[%s11332_s14 + $0x5cc] ss:$12 sps:$4 sm:$0xff]   ;;  %v8595_v39 = vcombine.high %v8532_v49, %v8532_v49  ;;  %v10564_v30 = vld [vmem:[%s11332_s14 + $0x5fc] ss:$12 sps:$4 sm:$0xff]  }
 0x1c6   : > { %4583 = vmatprep.subr.bf16.mxu0 %v10540_v48  ;;  %8285 = vmatmul.mubr.msk.bf16.gmra.mrb[108].mxu1 %vm1012_vm1, %v11989_v22  ;;  %v12030_v34 = vld [vmem:[%s11348_s10 + $0x1ec] ss:$12 sps:$4 sm:$0xff]   ;;  %v10565_v49 = vld [vmem:[%s11332_s14 + $0x53c] ss:$12 sps:$4 sm:$0xff]  }
 0x1c7   : > { %v12002_v59 = vadd.f32 %v9164_v6, %v11841_v11  ;;  %v12004_v40 = vpop.f32.mrb[24].mxu0  ;;  %9271 = vmatpush3.bf16.msra.mxu1 %v10543_v52  ;;  %3220 = vmatprep.mubr.bf16.mxu1 %v13180_v56  ;;  %v10562_v52 = vld [vmem:[%s11332_s14 + $0x524] ss:$12 sps:$4 sm:$0xff]   ;;  %v12041_v6 = vld [vmem:[%s11348_s10 + $0x208] ss:$12 sps:$4 sm:$0xff]  }
 0x1c8   : > { %v12010_v51 = vpop.f32.mrb[25].mxu0  ;;  %9272 = vmatprep.subr.bf16.mxu1 %v10548_v5 }
 0x1c9   : > { %4584 = vmatpush1.bf16.msra.mxu0 %v10538_v43  ;;  %v12016_v62 = vpop.f32.mrb[26].mxu0  ;;  %v9165_v11 = vpop.f32.mrb[28].mxu1  ;;  %v4549_v43 = vsel %vm1025_vm0, %v8594_v63, 0 }
 0x1ca   : > { %v12018_v54 = vpop.f32.mrb[27].mxu0  ;;  %4585 = vmatprep.subr.bf16.mxu0 %v10547_v36  ;;  %v9166_v60 = vpop.f32.mrb[29].mxu1 }
 0x1cb   : > { %v9167_v1 = vadd.f32 %v9166_v60, %v9165_v11  ;;  %v9168_v10 = vpop.f32.mrb[30].mxu1  ;;  %9273 = vmatpush3.bf16.msra.mxu1 %v10549_v50  ;;  %v12046_v50 = vld [vmem:[%s11348_s10 + $0xa4] ss:$12 sps:$4 sm:$0xff]   ;;  %v10570_v11 = vld [vmem:[%s11332_s14 + $0x554] ss:$12 sps:$4 sm:$0xff]  }
 0x1cc   : > { %v9169_v19 = vpop.f32.mrb[31].mxu1  ;;  %9274 = vmatprep.subr.bf16.mxu1 %v10554_v2 }
 0x1cd   : > { %4586 = vmatpush1.bf16.msra.mxu0 %v10545_v46  ;;  %v12023_v48 = vadd.f32 %v11828_v0, %v9167_v1  ;;  %v9170_v3 = vadd.f32 %v9169_v19, %v9168_v10  ;;  %v10580_v46 = vld [vmem:[%s11332_s14 + $0x94c] ss:$12 sps:$4 sm:$0xff]   ;;  %v12068_v1 = vld [vmem:[%s11348_s10 + $0x204] ss:$12 sps:$4 sm:$0xff]  }
 0x1ce   : > { %4587 = vmatprep.subr.bf16.mxu0 %v10552_v16  ;;  %8286 = vmatmul.mubr.msk.bf16.gmra.mrb[112].mxu1 %vm1012_vm1, %v12014_v9  ;;  %v10569_v16 = vld [vmem:[%s11332_s14 + $0x614] ss:$12 sps:$4 sm:$0xff]  }
 0x1cf   : > { %v12034_v5 = vadd.f32 %v11835_v7, %v9170_v3  ;;  %v12036_v0 = vpop.f32.mrb[28].mxu0  ;;  %9275 = vmatpush3.bf16.msra.mxu1 %v10555_v53  ;;  %3230 = vmatprep.mubr.bf16.mxu1 %v13180_v56  ;;  %v10571_v53 = vld [vmem:[%s11332_s14 + $0x62c] ss:$0 sps:$4 sm:$0xff]  }
 0x1d0   : > { %v12043_v36 = vpop.f32.mrb[29].mxu0  ;;  %9276 = vmatprep.subr.bf16.mxu1 %v10561_v18  ;;  %v12073_v18 = vld [vmem:[%s11348_s10 + $0x268] ss:$12 sps:$4 sm:$0xff]   ;;  %v3093_v3 = vsel %vm1025_vm0, %v10571_v53, 0 }
 0x1d1   : > { %4588 = vmatpush1.bf16.msra.mxu0 %v10550_v27  ;;  %v12049_v2 = vpop.f32.mrb[30].mxu0  ;;  %v12084_v27 = vld [vmem:[%s11348_s10 + $0x264] ss:$12 sps:$4 sm:$0xff]  }
 0x1d2   : > { %v12051_v7 = vpop.f32.mrb[31].mxu0  ;;  %8597 = vmatprep.subr.msk.bf16.mxu0 %vm1025_vm0, %v8595_v39 }
 0x1d3   : > { %9277 = vmatpush3.bf16.msra.mxu1 %v10562_v52 }
 0x1d4   : > { %4590 = vmatmul.mubr.bf16.vlgmr.msra.gmra.mrb[56].mxu0 %v12030_v34  ;;  %9278 = vmatprep.subr.bf16.mxu1 %v10564_v30  ;;  %v12094_v30 = vld [vmem:[%s11348_s10 + $0x280] ss:$12 sps:$4 sm:$0xff]  }
 0x1d5   : > { %4631 = vmatpush1.bf16.msra.mxu0 %v4549_v43  ;;  %4599 = vmatprep.mubr.bf16.mxu0 %v12041_v6 }
 0x1d6   : > { %8287 = vmatmul.mubr.msk.bf16.gmra.mrb[116].mxu1 %vm1012_vm1, %v12046_v50  ;;  %5289 = vmatprep.subr.bf16.mxu0 %v10580_v46 }
 0x1d7   : > { %v12061_v60 = vpop.f32.mrb[32].mxu0  ;;  %9279 = vmatpush3.bf16.msra.mxu1 %v10565_v49  ;;  %3273 = vmatprep.mubr.bf16.mxu1 %v11566_v25  ;;  %v10591_v25 = vld [vmem:[%s11332_s14 + $0x6f8] ss:$12 sps:$4 sm:$0xff]   ;;  %v10578_v49 = vld [vmem:[%s11332_s14 + $0x948] ss:$12 sps:$4 sm:$0xff]  }
 0x1d8   : > { %v12065_v63 = vpop.f32.mrb[33].mxu0  ;;  %9280 = vmatprep.subr.bf16.mxu1 %v10569_v16 }
 0x1d9   : > { %v12070_v10 = vpop.f32.mrb[34].mxu0 }
 0x1da   : > { %v12075_v19 = vpop.f32.mrb[35].mxu0 }
 0x1db   : > { %9281 = vmatpush3.bf16.msra.mxu1 %v10570_v11  ;;  %v10584_v11 = vld [vmem:[%s11332_s14 + $0x964] ss:$12 sps:$4 sm:$0xff]  }
 0x1dc   : > { %4600 = vmatmul.mubr.bf16.gmra.mrb[60].mxu0 %v12068_v1  ;;  %10037 = vmatprep.subr.msk.bf16.mxu1 %vm1025_vm0, %v10571_v53 }
 0x1dd   : > { %4609 = vmatprep.mubr.bf16.mxu0 %v12073_v18 }
 0x1de   : > { %3274 = vmatmul.mubr.bf16.vlgmr.msra.gmra.mrb[120].mxu1 %v11651_v14  ;;  %v12102_v14 = vld [vmem:[%s11348_s10 + $0x27c] ss:$12 sps:$4 sm:$0xff]  }
 0x1df   : > { %v12086_v52 = vpop.f32.mrb[36].mxu0  ;;  %9567 = vmatpush3.bf16.msra.mxu1 %v3093_v3  ;;  %3281 = vmatprep.mubr.bf16.mxu1 %v11656_v17  ;;  %13201 = vst [vmem:[#allocation4_spill] sm:$0xff] %v12102_v14  ;;  %v12109_v17 = vld [vmem:[%s11348_s10 + $0x1f4] ss:$12 sps:$4 sm:$0xff]  }
 0x1e0   : > { %v12089_v39 = vpop.f32.mrb[37].mxu0  ;;  %9311 = vmatprep.subr.bf16.mxu1 %v10591_v25 }
 0x1e1   : > { %v12091_v43 = vpop.f32.mrb[38].mxu0 }
 0x1e2   : > { %v12096_v46 = vpop.f32.mrb[39].mxu0 }
 0x1e4   : > { %4610 = vmatmul.mubr.bf16.gmra.mrb[64].mxu0 %v12084_v27 }
 0x1e5   : > { %4619 = vmatprep.mubr.bf16.mxu0 %v12094_v30 }
 0x1e6   : > { %3282 = vmatmul.mubr.bf16.gmra.mrb[124].mxu1 %v11675_v28 }
 0x1e7   : > { %3289 = vmatprep.mubr.bf16.mxu1 %v11679_v29 }
 0x1ec   : > { %4620 = vmatmul.mubr.bf16.gmra.mrb[68].mxu0 %v12102_v14  ;;  %v13202_v14 = vmov 0  }
 0x1ed   : > { %4662 = vmatprep.mubr.bf16.mxu0 %v13180_v56 }
 0x1ee   : > { %3290 = vmatmul.mubr.bf16.gmra.mrb[128].mxu1 %v11699_v35 }
 0x1ef   : > { %3297 = vmatprep.mubr.bf16.mxu1 %v11703_v37  ;;  %v10582_v37 = vld [vmem:[%s11332_s14 + $0x960] ss:$12 sps:$4 sm:$0xff]  }
 0x1f1   : > { %v1690_v16 = vpop.f32.mrb[32].mxu1 }
 0x1f2   : > { %v1691_v28 = vadd.f32 %v1690_v16, %v11866_v42  ;;  %v1692_v53 = vpop.f32.mrb[33].mxu1  ;;  %v10587_v16 = vld [vmem:[%s11332_s14 + $0x97c] ss:$12 sps:$4 sm:$0xff]  }
 0x1f3   : > { %v1693_v29 = vadd.f32 %v1692_v53, %v11869_v45  ;;  %v1694_v3 = vpop.f32.mrb[34].mxu1  ;;  %v10592_v53 = vld [vmem:[%s11332_s14 + $0x638] ss:$12 sps:$4 sm:$0xff]  }
 0x1f4   : > { %8598 = vmatmul.mubr.msk.bf16.vlgmr.msra.gmra.mrb[56].mxu0 %vm1012_vm1, %v12109_v17  ;;  %v1695_v35 = vadd.f32 %v1694_v3, %v11873_v47  ;;  %v1696_v25 = vpop.f32.mrb[35].mxu1  ;;  %v12120_v56 = vadd.f32 %v12004_v40, %v1691_v28  ;;  %v12131_v47 = vld [vmem:[%s11348_s10 + $0x20c] ss:$12 sps:$4 sm:$0xff]  }
 0x1f5   : > { %5290 = vmatpush1.bf16.msra.mxu0 %v10578_v49  ;;  %v1697_v42 = vadd.f32 %v1696_v25, %v11876_v58  ;;  %4672 = vmatprep.mubr.bf16.mxu0 %v13202_v14  ;;  %v12127_v45 = vadd.f32 %v12010_v51, %v1693_v29  ;;  %v10585_v49 = vld [vmem:[%s11332_s14 + $0x978] ss:$12 sps:$4 sm:$0xff]   ;;  %v10590_v51 = vld [vmem:[%s11332_s14 + $0x994] ss:$12 sps:$4 sm:$0xff]   ;;  %v10596_v29 = vld [vmem:[%s11332_s14 + $0x710] ss:$12 sps:$4 sm:$0xff]  }
 0x1f6   : > { %5291 = vmatprep.subr.bf16.mxu0 %v10584_v11  ;;  %3298 = vmatmul.mubr.bf16.gmra.mrb[132].mxu1 %v11713_v41  ;;  %v12134_v40 = vadd.f32 %v12016_v62, %v1695_v35 }
 0x1f7   : > { %9568 = vmatprep.mubr.msk.bf16.mxu1 %vm1012_vm1, %v11969_v55  ;;  %v12140_v58 = vadd.f32 %v12018_v54, %v1697_v42  ;;  %v12173_v42 = vld [vmem:[%s11348_s10 + $0x26c] ss:$12 sps:$4 sm:$0xff]  }
 0x1f9   : > { %5292 = vmatpush1.bf16.msra.mxu0 %v10582_v37  ;;  %v1700_v28 = vpop.f32.mrb[36].mxu1  ;;  %v10597_v37 = vld [vmem:[%s11332_s14 + $0x650] ss:$12 sps:$4 sm:$0xff]  }
 0x1fa   : > { %5293 = vmatprep.subr.bf16.mxu0 %v10587_v16  ;;  %v1701_v41 = vadd.f32 %v1700_v28, %v11886_v61  ;;  %v1702_v11 = vpop.f32.mrb[37].mxu1  ;;  %v10588_v61 = vld [vmem:[%s11332_s14 + $0x990] ss:$12 sps:$4 sm:$0xff]  }
 0x1fb   : > { %v1703_v62 = vadd.f32 %v1702_v11, %v11890_v15  ;;  %v1704_v3 = vpop.f32.mrb[38].mxu1  ;;  %v10600_v28 = vld [vmem:[%s11332_s14 + $0x9c4] ss:$12 sps:$4 sm:$0xff]   ;;  %v10606_v11 = vld [vmem:[%s11332_s14 + $0x740] ss:$12 sps:$4 sm:$0xff]  }
 0x1fc   : > { %v1705_v55 = vadd.f32 %v1704_v3, %v11893_v20  ;;  %v1706_v35 = vpop.f32.mrb[39].mxu1  ;;  %8599 = vmatmul.mubr.msk.bf16.gmra.mrb[60].mxu0 %vm1012_vm1, %v12131_v47  ;;  %v12151_v54 = vadd.f32 %v12036_v0, %v1701_v41  ;;  %v10595_v20 = vld [vmem:[%s11332_s14 + $0x9ac] ss:$12 sps:$4 sm:$0xff]  }
 0x1fd   : > { %5294 = vmatpush1.bf16.msra.mxu0 %v10585_v49  ;;  %v1707_v25 = vadd.f32 %v1706_v35, %v11897_v23  ;;  %4682 = vmatprep.mubr.bf16.mxu0 %v13202_v14  ;;  %v12157_v15 = vadd.f32 %v12043_v36, %v1703_v62  ;;  %v10601_v36 = vld [vmem:[%s11332_s14 + $0x728] ss:$12 sps:$4 sm:$0xff]  }
 0x1fe   : > { %5295 = vmatprep.subr.bf16.mxu0 %v10590_v51  ;;  %9569 = vmatmul.mubr.msk.bf16.vlgmr.msra.gmra.mrb[64].mxu1 %vm1012_vm1, %v11989_v22  ;;  %v12163_v0 = vadd.f32 %v12049_v2, %v1705_v55  ;;  %v10593_v22 = vld [vmem:[%s11332_s14 + $0x9a8] ss:$12 sps:$4 sm:$0xff]   ;;  %v10877_v55 = vld [vmem:[%s11348_s10 + $0x100] ss:$12 sps:$4 sm:$0xff]  }
 0x1ff   : > { %9312 = vmatpush3.bf16.msra.mxu1 %v10592_v53  ;;  %9572 = vmatprep.mubr.msk.bf16.mxu1 %vm1012_vm1, %v12014_v9  ;;  %v12169_v23 = vadd.f32 %v12051_v7, %v1707_v25  ;;  %v10602_v7 = vld [vmem:[%s11332_s14 + $0x668] ss:$12 sps:$4 sm:$0xff]   ;;  %v10603_v25 = vld [vmem:[%s11332_s14 + $0x9d8] ss:$12 sps:$4 sm:$0xff]  }
 0x200   : > { %9313 = vmatprep.subr.bf16.mxu1 %v10596_v29  ;;  %v10598_v29 = vld [vmem:[%s11332_s14 + $0x9c0] ss:$12 sps:$4 sm:$0xff]   ;;  %v10605_v62 = vld [vmem:[%s11332_s14 + $0x9dc] ss:$12 sps:$4 sm:$0xff]  }
 0x201   : > { %5296 = vmatpush1.bf16.msra.mxu0 %v10588_v61  ;;  %v1710_v16 = vpop.f32.mrb[40].mxu1  ;;  %v10611_v61 = vld [vmem:[%s11332_s14 + $0x758] ss:$12 sps:$4 sm:$0xff]  }
 0x202   : > { %5297 = vmatprep.subr.bf16.mxu0 %v10595_v20  ;;  %v1711_v2 = vadd.f32 %v1710_v16, %v11907_v8  ;;  %v1712_v49 = vpop.f32.mrb[41].mxu1  ;;  %v10610_v16 = vld [vmem:[%s11332_s14 + $0x9f4] ss:$12 sps:$4 sm:$0xff]  }
 0x203   : > { %v1713_v51 = vadd.f32 %v1712_v49, %v11911_v38  ;;  %9314 = vmatpush3.bf16.msra.mxu1 %v10597_v37  ;;  %v1714_v9 = vpop.f32.mrb[42].mxu1  ;;  %v12216_v37 = vld [vmem:[%s11348_s10 + $0x1c] ss:$12 sps:$4 sm:$0xff]  }
 0x204   : > { %v1715_v53 = vadd.f32 %v1714_v9, %v11914_v44  ;;  %v1716_v41 = vpop.f32.mrb[43].mxu1  ;;  %9315 = vmatprep.subr.bf16.mxu1 %v10601_v36  ;;  %8600 = vmatmul.mubr.msk.bf16.gmra.mrb[64].mxu0 %vm1012_vm1, %v12173_v42  ;;  %v12185_v8 = vadd.f32 %v12061_v60, %v1711_v2  ;;  %13204 = vst [vmem:[#allocation6_spill] sm:$0xff] %v12216_v37 }
 0x205   : > { %5298 = vmatpush1.bf16.msra.mxu0 %v10593_v22  ;;  %v1717_v38 = vadd.f32 %v1716_v41, %v11918_v13  ;;  %4692 = vmatprep.mubr.bf16.mxu0 %v13202_v14  ;;  %v12191_v44 = vadd.f32 %v12065_v63, %v1713_v51  ;;  %v10607_v13 = vld [vmem:[%s11332_s14 + $0x680] ss:$12 sps:$4 sm:$0xff]  }
 0x206   : > { %5299 = vmatprep.subr.bf16.mxu0 %v10600_v28  ;;  %9573 = vmatmul.mubr.msk.bf16.gmra.mrb[68].mxu1 %vm1012_vm1, %v12046_v50  ;;  %v12197_v60 = vadd.f32 %v12070_v10, %v1715_v53  ;;  %v12210_v50 = vld [vmem:[%s11348_s10 + $0x284] ss:$12 sps:$4 sm:$0xff]  }
 0x207   : > { %v12199_v3 = vpop.f32.mrb[40].mxu0  ;;  %9316 = vmatpush3.bf16.msra.mxu1 %v10602_v7  ;;  %4004 = vmatprep.mubr.bf16.mxu1 %v10877_v55  ;;  %v12204_v63 = vadd.f32 %v12075_v19, %v1717_v38  ;;  %13203 = vst [vmem:[#allocation5_spill] sm:$0xff] %v12210_v50  ;;  %v10612_v28 = vld [vmem:[%s11332_s14 + $0x698] ss:$12 sps:$4 sm:$0xff]   ;;  %v10616_v7 = vld [vmem:[%s11332_s14 + $0x770] ss:$12 sps:$4 sm:$0xff]  }
 0x208   : > { %v12206_v35 = vpop.f32.mrb[41].mxu0  ;;  %9317 = vmatprep.subr.bf16.mxu1 %v10606_v11 }
 0x209   : > { %5300 = vmatpush1.bf16.msra.mxu0 %v10598_v29  ;;  %v12212_v10 = vpop.f32.mrb[42].mxu0  ;;  %v1720_v20 = vpop.f32.mrb[44].mxu1  ;;  %v10617_v29 = vld [vmem:[%s11332_s14 + $0x6b0] ss:$12 sps:$4 sm:$0xff]  }
 0x20a   : > { %v12218_v36 = vpop.f32.mrb[43].mxu0  ;;  %5301 = vmatprep.subr.bf16.mxu0 %v10605_v62  ;;  %v1721_v19 = vadd.f32 %v1720_v20, %v11933_v57  ;;  %v1722_v22 = vpop.f32.mrb[45].mxu1 }
 0x20b   : > { %v1723_v2 = vadd.f32 %v1722_v22, %v11937_v12  ;;  %9318 = vmatpush3.bf16.msra.mxu1 %v10607_v13  ;;  %v1724_v49 = vpop.f32.mrb[46].mxu1  ;;  %v10608_v12 = vld [vmem:[%s11332_s14 + $0x9f0] ss:$12 sps:$4 sm:$0xff]  }
 0x20c   : > { %v1725_v51 = vadd.f32 %v1724_v49, %v11941_v26  ;;  %v1726_v9 = vpop.f32.mrb[47].mxu1  ;;  %9319 = vmatprep.subr.bf16.mxu1 %v10611_v61  ;;  %8601 = vmatmul.mubr.msk.bf16.gmra.mrb[68].mxu0 %vm1012_vm1, %v12210_v50  ;;  %v12229_v57 = vadd.f32 %v12086_v52, %v1721_v19  ;;  %v10615_v26 = vld [vmem:[%s11332_s14 + $0xa0c] ss:$12 sps:$4 sm:$0xff]   ;;  %v10620_v61 = vld [vmem:[%s11332_s14 + $0xa24] ss:$12 sps:$4 sm:$0xff]  }
 0x20d   : > { %5302 = vmatpush1.bf16.msra.mxu0 %v10603_v25  ;;  %v1727_v53 = vadd.f32 %v1726_v9, %v11945_v24  ;;  %5321 = vmatprep.mubr.bf16.mxu0 %v12216_v37  ;;  %v12235_v41 = vadd.f32 %v12089_v39, %v1723_v2  ;;  %v10621_v24 = vld [vmem:[%s11332_s14 + $0x788] ss:$12 sps:$4 sm:$0xff]   ;;  %v10618_v49 = vld [vmem:[%s11332_s14 + $0xa20] ss:$12 sps:$4 sm:$0xff]   ;;  %v10881_v50 = vld [vmem:[%s11348_s10 + $0x178] ss:$12 sps:$4 sm:$0xff]  }
 0x20e   : > { %5303 = vmatprep.subr.bf16.mxu0 %v10610_v16  ;;  %v12239_v11 = vadd.f32 %v12091_v43, %v1725_v51  ;;  %v10613_v39 = vld [vmem:[%s11332_s14 + $0xa08] ss:$12 sps:$4 sm:$0xff]   ;;  %v10627_v16 = vld [vmem:[%s11332_s14 + $0x7a0] ss:$12 sps:$4 sm:$0xff]  }
 0x20f   : > { %9320 = vmatpush3.bf16.msra.mxu1 %v10612_v28  ;;  %v12242_v52 = vpop.f32.mrb[44].mxu0  ;;  %v12245_v38 = vadd.f32 %v12096_v46, %v1727_v53  ;;  %v10622_v19 = vld [vmem:[%s11332_s14 + $0x6c8] ss:$12 sps:$4 sm:$0xff]   ;;  %v10632_v53 = vld [vmem:[%s11332_s14 + $0x7b8] ss:$0 sps:$4 sm:$0xff]  }
 0x210   : > { %9321 = vmatprep.subr.bf16.mxu1 %v10616_v7  ;;  %v12248_v62 = vpop.f32.mrb[45].mxu0  ;;  %v10626_v51 = vld [vmem:[%s11332_s14 + $0xa3c] ss:$12 sps:$4 sm:$0xff]   ;;  %v10628_v7 = vld [vmem:[%s11332_s14 + $0x6e0] ss:$12 sps:$4 sm:$0xff]  }
 0x211   : > { %5304 = vmatpush1.bf16.msra.mxu0 %v10608_v12  ;;  %v9192_v13 = vpop.f32.mrb[48].mxu1  ;;  %v12251_v55 = vpop.f32.mrb[46].mxu0 }
 0x212   : > { %5305 = vmatprep.subr.bf16.mxu0 %v10615_v26  ;;  %v9193_v43 = vpop.f32.mrb[49].mxu1  ;;  %v12254_v25 = vpop.f32.mrb[47].mxu0 }
 0x213   : > { %v9194_v46 = vadd.f32 %v9193_v43, %v9192_v13  ;;  %9322 = vmatpush3.bf16.msra.mxu1 %v10617_v29  ;;  %v9195_v20 = vpop.f32.mrb[50].mxu1 }
 0x214   : > { %v9196_v22 = vpop.f32.mrb[51].mxu1  ;;  %9323 = vmatprep.subr.bf16.mxu1 %v10621_v24 }
 0x215   : > { %5306 = vmatpush1.bf16.msra.mxu0 %v10613_v39  ;;  %v12259_v2 = vadd.f32 %v9194_v46, %v11957_v32  ;;  %v9197_v28 = vadd.f32 %v9196_v22, %v9195_v20  ;;  %v10624_v32 = vld [vmem:[%s11332_s14 + $0xa38] ss:$12 sps:$4 sm:$0xff]   ;;  %v3824_v20 = vsel %vm1025_vm0, %v10632_v53, 0 }
 0x216   : > { %5307 = vmatprep.subr.bf16.mxu0 %v10620_v61 }
 0x217   : > { %v12264_v9 = vadd.f32 %v9197_v28, %v11963_v33  ;;  %9324 = vmatpush3.bf16.msra.mxu1 %v10622_v19  ;;  %v12267_v12 = vpop.f32.mrb[48].mxu0  ;;  %v10631_v33 = vld [vmem:[%s11332_s14 + $0xa54] ss:$12 sps:$4 sm:$0xff]   ;;  %v10655_v19 = vld [vmem:[%s11332_s14 + $0x884] ss:$12 sps:$4 sm:$0xff]  }
 0x218   : > { %9325 = vmatprep.subr.bf16.mxu1 %v10627_v16  ;;  %v12270_v26 = vpop.f32.mrb[49].mxu0  ;;  %v10629_v16 = vld [vmem:[%s11332_s14 + $0xa50] ss:$12 sps:$4 sm:$0xff]  }
 0x219   : > { %5308 = vmatpush1.bf16.msra.mxu0 %v10618_v49  ;;  %v9198_v29 = vpop.f32.mrb[52].mxu1  ;;  %v12273_v24 = vpop.f32.mrb[50].mxu0  ;;  %v10878_v28 = vld [vmem:[%s11348_s10 + $0xfc] ss:$12 sps:$4 sm:$0xff]  }
 0x21a   : > { %5309 = vmatprep.subr.bf16.mxu0 %v10626_v51  ;;  %v9199_v39 = vpop.f32.mrb[53].mxu1  ;;  %v12276_v13 = vpop.f32.mrb[51].mxu0  ;;  %v10636_v51 = vld [vmem:[%s11332_s14 + $0xa6c] ss:$12 sps:$4 sm:$0xff]  }
 0x21b   : > { %v9200_v43 = vadd.f32 %v9199_v39, %v9198_v29  ;;  %9326 = vmatpush3.bf16.msra.mxu1 %v10628_v7  ;;  %v9201_v61 = vpop.f32.mrb[54].mxu1  ;;  %v10879_v29 = vld [vmem:[%s11348_s10 + $0x118] ss:$12 sps:$4 sm:$0xff]  }
 0x21c   : > { %v9202_v46 = vpop.f32.mrb[55].mxu1  ;;  %10038 = vmatprep.subr.msk.bf16.mxu1 %vm1025_vm0, %v10632_v53 }
 0x21d   : > { %5310 = vmatpush1.bf16.msra.mxu0 %v10624_v32  ;;  %v12282_v22 = vadd.f32 %v9200_v43, %v11975_v21  ;;  %v9203_v49 = vadd.f32 %v9202_v46, %v9201_v61  ;;  %v10634_v21 = vld [vmem:[%s11332_s14 + $0xa68] ss:$12 sps:$4 sm:$0xff]   ;;  %v10639_v43 = vld [vmem:[%s11332_s14 + $0xa84] ss:$12 sps:$4 sm:$0xff]  }
 0x21e   : > { %5311 = vmatprep.subr.bf16.mxu0 %v10631_v33  ;;  %4005 = vmatmul.mubr.bf16.vlgmr.msra.gmra.mrb[136].mxu1 %v10878_v28 }
 0x21f   : > { %v12288_v7 = vadd.f32 %v9203_v49, %v11981_v4  ;;  %9577 = vmatpush3.bf16.msra.mxu1 %v3824_v20  ;;  %4012 = vmatprep.mubr.bf16.mxu1 %v10879_v29  ;;  %v12291_v53 = vpop.f32.mrb[52].mxu0  ;;  %v10880_v29 = vld [vmem:[%s11348_s10 + $0x114] ss:$12 sps:$4 sm:$0xff]  }
 0x220   : > { %v12293_v32 = vpop.f32.mrb[53].mxu0  ;;  %9356 = vmatprep.subr.bf16.mxu1 %v10655_v19 }
 0x221   : > { %5312 = vmatpush1.bf16.msra.mxu0 %v10629_v16  ;;  %v9204_v39 = vpop.f32.mrb[56].mxu1  ;;  %v12296_v33 = vpop.f32.mrb[54].mxu0  ;;  %v10637_v16 = vld [vmem:[%s11332_s14 + $0xa80] ss:$12 sps:$4 sm:$0xff]  }
 0x222   : > { %5313 = vmatprep.subr.bf16.mxu0 %v10636_v51  ;;  %v9205_v4 = vpop.f32.mrb[57].mxu1  ;;  %v12299_v61 = vpop.f32.mrb[55].mxu0  ;;  %v10643_v51 = vld [vmem:[%s11332_s14 + $0xa9c] ss:$12 sps:$4 sm:$0xff]  }
 0x223   : > { %v9206_v46 = vadd.f32 %v9205_v4, %v9204_v39  ;;  %v9207_v20 = vpop.f32.mrb[58].mxu1  ;;  %v10646_v4 = vld [vmem:[%s11332_s14 + $0xab4] ss:$12 sps:$4 sm:$0xff]  }
 0x224   : > { %v9208_v49 = vpop.f32.mrb[59].mxu1 }
 0x225   : > { %5314 = vmatpush1.bf16.msra.mxu0 %v10634_v21  ;;  %v12302_v19 = vadd.f32 %v9206_v46, %v11995_v31  ;;  %v9209_v28 = vadd.f32 %v9208_v49, %v9207_v20  ;;  %v10641_v21 = vld [vmem:[%s11332_s14 + $0xa98] ss:$12 sps:$4 sm:$0xff]   ;;  %v8688_v20 = vld [vmem:[%s11332_s14 + $0xac8] sm:$0xff] }
 0x226   : > { %5315 = vmatprep.subr.bf16.mxu0 %v10639_v43  ;;  %4013 = vmatmul.mubr.bf16.gmra.mrb[140].mxu1 %v10880_v29  ;;  %v8751_v29 = vcombine.high %v8688_v20, %v8688_v20 }
 0x227   : > { %v12308_v37 = vadd.f32 %v9209_v28, %v12002_v59  ;;  %4020 = vmatprep.mubr.bf16.mxu1 %v10881_v50  ;;  %v10644_v50 = vld [vmem:[%s11332_s14 + $0xab0] ss:$12 sps:$4 sm:$0xff]  }
 0x229   : > { %5316 = vmatpush1.bf16.msra.mxu0 %v10637_v16  ;;  %v9210_v39 = vpop.f32.mrb[60].mxu1  ;;  %v10882_v16 = vld [vmem:[%s11348_s10 + $0x174] ss:$12 sps:$4 sm:$0xff]  }
 0x22a   : > { %5317 = vmatprep.subr.bf16.mxu0 %v10643_v51  ;;  %v9211_v31 = vpop.f32.mrb[61].mxu1  ;;  %v8750_v51 = vcombine.low %v8688_v20, %v8688_v20  ;;  %v12338_v20 = vld [vmem:[%s11348_s10 + $0x30] ss:$12 sps:$4 sm:$0xff]  }
 0x22b   : > { %v9212_v46 = vadd.f32 %v9211_v31, %v9210_v39  ;;  %v9213_v43 = vpop.f32.mrb[62].mxu1  ;;  %v10883_v31 = vld [vmem:[%s11348_s10 + $0x190] ss:$12 sps:$4 sm:$0xff]   ;;  %13207 = vst [vmem:[#allocation9_spill] sm:$0xff] %v12338_v20 }
 0x22c   : > { %v9214_v49 = vpop.f32.mrb[63].mxu1 }
 0x22d   : > { %5318 = vmatpush1.bf16.msra.mxu0 %v10641_v21  ;;  %v12315_v59 = vadd.f32 %v9212_v46, %v12023_v48  ;;  %v9215_v28 = vadd.f32 %v9214_v49, %v9213_v43  ;;  %v12324_v21 = vld [vmem:[%s11348_s10 + $0x18] ss:$12 sps:$4 sm:$0xff]   ;;  %v12327_v48 = vld [vmem:[%s11348_s10 + $0x34] ss:$12 sps:$4 sm:$0xff]  }
 0x22e   : > { %5319 = vmatprep.subr.bf16.mxu0 %v10646_v4  ;;  %4021 = vmatmul.mubr.bf16.gmra.mrb[144].mxu1 %v10882_v16  ;;  %13205 = vst [vmem:[#allocation7_spill] sm:$0xff] %v12324_v21  ;;  %13206 = vst [vmem:[#allocation8_spill] sm:$0xff] %v12327_v48  ;;  %v5281_v4 = vsel %vm1025_vm0, %v8750_v51, 0  ;;  %v10673_v46 = vld [vmem:[%s11332_s14 + $0xad8] ss:$12 sps:$4 sm:$0xff]  }
 0x22f   : > { %v12320_v39 = vadd.f32 %v9215_v28, %v12034_v5  ;;  %4028 = vmatprep.mubr.bf16.mxu1 %v10883_v31  ;;  %v10884_v5 = vld [vmem:[%s11348_s10 + $0x18c] ss:$12 sps:$4 sm:$0xff]   ;;  %v10885_v43 = vld [vmem:[%s11348_s10 + $0x104] ss:$12 sps:$4 sm:$0xff]   ;;  %v12341_v49 = vld [vmem:[%s11348_s10 + $0x94] ss:$12 sps:$4 sm:$0xff]  }
 0x230   : > { %13208 = vst [vmem:[#allocation10_spill] sm:$0xff] %v12341_v49  ;;  %v10660_v28 = vld [vmem:[%s11332_s14 + $0x89c] ss:$12 sps:$4 sm:$0xff]  }
 0x231   : > { %5320 = vmatpush1.bf16.msra.mxu0 %v10644_v50  ;;  %v10656_v50 = vld [vmem:[%s11332_s14 + $0x7c4] ss:$12 sps:$4 sm:$0xff]   ;;  %v10886_v16 = vld [vmem:[%s11348_s10 + $0x11c] ss:$12 sps:$4 sm:$0xff]  }
 0x232   : > { %8753 = vmatprep.subr.msk.bf16.mxu0 %vm1025_vm0, %v8751_v29  ;;  %v10661_v29 = vld [vmem:[%s11332_s14 + $0x7dc] ss:$12 sps:$4 sm:$0xff]  }
 0x233   : > { %v10887_v51 = vld [vmem:[%s11348_s10 + $0x17c] ss:$12 sps:$4 sm:$0xff]  }
 0x234   : > { %5322 = vmatmul.mubr.bf16.vlgmr.msra.gmra.mrb[56].mxu0 %v12324_v21  ;;  %v12353_v31 = vld [vmem:[%s11348_s10 + $0x90] ss:$12 sps:$4 sm:$0xff]  }
 0x235   : > { %5363 = vmatpush1.bf16.msra.mxu0 %v5281_v4  ;;  %5331 = vmatprep.mubr.bf16.mxu0 %v12327_v48  ;;  %v10662_v4 = vld [vmem:[%s11332_s14 + $0x8b4] ss:$12 sps:$4 sm:$0xff]   ;;  %v10667_v48 = vld [vmem:[%s11332_s14 + $0x8cc] ss:$12 sps:$4 sm:$0xff]  }
 0x236   : > { %4029 = vmatmul.mubr.bf16.gmra.mrb[148].mxu1 %v10884_v5  ;;  %6020 = vmatprep.subr.bf16.mxu0 %v10673_v46  ;;  %v12357_v5 = vld [vmem:[%s11348_s10 + $0xac] ss:$12 sps:$4 sm:$0xff]  }
 0x237   : > { %9578 = vmatprep.mubr.msk.bf16.mxu1 %vm1012_vm1, %v10885_v43 }
 0x23c   : > { %5332 = vmatmul.mubr.bf16.gmra.mrb[60].mxu0 %v12338_v20  ;;  %v10663_v20 = vld [vmem:[%s11332_s14 + $0x7f4] ss:$12 sps:$4 sm:$0xff]  }
 0x23d   : > { %5341 = vmatprep.mubr.bf16.mxu0 %v12341_v49 }
 0x23e   : > { %9579 = vmatmul.mubr.msk.bf16.vlgmr.msra.gmra.mrb[64].mxu1 %vm1012_vm1, %v10886_v16 }
 0x23f   : > { %9357 = vmatpush3.bf16.msra.mxu1 %v10656_v50  ;;  %9582 = vmatprep.mubr.msk.bf16.mxu1 %vm1012_vm1, %v10887_v51 }
 0x240   : > { %9358 = vmatprep.subr.bf16.mxu1 %v10660_v28 }
 0x241   : > { %v2470_v46 = vpop.f32.mrb[72].mxu1 }
 0x242   : > { %v9629_v43 = vadd.f32 %v12120_v56, %v2470_v46  ;;  %v2472_v49 = vpop.f32.mrb[73].mxu1 }
 0x243   : > { %9359 = vmatpush3.bf16.msra.mxu1 %v10661_v29  ;;  %v9636_v16 = vadd.f32 %v12127_v45, %v2472_v49  ;;  %v2474_v50 = vpop.f32.mrb[74].mxu1  ;;  %v10888_v49 = vld [vmem:[%s11348_s10 + $0x194] ss:$12 sps:$4 sm:$0xff]   ;;  %v10668_v29 = vld [vmem:[%s11332_s14 + $0x80c] ss:$12 sps:$4 sm:$0xff]  }
 0x244   : > { %5342 = vmatmul.mubr.bf16.gmra.mrb[64].mxu0 %v12353_v31  ;;  %v9643_v51 = vadd.f32 %v12134_v40, %v2474_v50  ;;  %v2476_v28 = vpop.f32.mrb[75].mxu1  ;;  %9360 = vmatprep.subr.bf16.mxu1 %v10662_v4  ;;  %v12366_v21 = vadd.f32 %v9629_v43, %v12199_v3  ;;  %v10889_v4 = vld [vmem:[%s11348_s10 + $0x1f0] ss:$12 sps:$4 sm:$0xff]  }
 0x245   : > { %v9650_v56 = vadd.f32 %v12140_v58, %v2476_v28  ;;  %5351 = vmatprep.mubr.bf16.mxu0 %v12357_v5  ;;  %v12371_v45 = vadd.f32 %v9636_v16, %v12206_v35  ;;  %v12384_v58 = vld [vmem:[%s11348_s10 + $0xa8] ss:$12 sps:$4 sm:$0xff]   ;;  %v10669_v35 = vld [vmem:[%s11332_s14 + $0x8e4] ss:$12 sps:$4 sm:$0xff]  }
 0x246   : > { %9583 = vmatmul.mubr.msk.bf16.gmra.mrb[68].mxu1 %vm1012_vm1, %v10888_v49  ;;  %v12376_v40 = vadd.f32 %v9643_v51, %v12212_v10  ;;  %v10670_v50 = vld [vmem:[%s11332_s14 + $0x824] ss:$12 sps:$4 sm:$0xff]  }
 0x247   : > { %9361 = vmatpush3.bf16.msra.mxu1 %v10663_v20  ;;  %4735 = vmatprep.mubr.bf16.mxu1 %v10889_v4  ;;  %v12381_v3 = vadd.f32 %v9650_v56, %v12218_v36 }
 0x248   : > { %9362 = vmatprep.subr.bf16.mxu1 %v10667_v48  ;;  %v10675_v48 = vld [vmem:[%s11332_s14 + $0x8fc] ss:$12 sps:$4 sm:$0xff]  }
 0x249   : > { %v2480_v46 = vpop.f32.mrb[76].mxu1 }
 0x24a   : > { %v9657_v43 = vadd.f32 %v12151_v54, %v2480_v46  ;;  %v2482_v16 = vpop.f32.mrb[77].mxu1  ;;  %v10679_v46 = vld [vmem:[%s11332_s14 + $0xaf0] ss:$12 sps:$4 sm:$0xff]  }
 0x24b   : > { %9363 = vmatpush3.bf16.msra.mxu1 %v10668_v29  ;;  %v9664_v10 = vadd.f32 %v12157_v15, %v2482_v16  ;;  %v2484_v20 = vpop.f32.mrb[78].mxu1  ;;  %v12409_v29 = vld [vmem:[%s11348_s10 + $0x20] ss:$12 sps:$4 sm:$0xff]  }
 0x24c   : > { %5352 = vmatmul.mubr.bf16.gmra.mrb[68].mxu0 %v12384_v58  ;;  %v9671_v36 = vadd.f32 %v12163_v0, %v2484_v20  ;;  %v2486_v51 = vpop.f32.mrb[79].mxu1  ;;  %9364 = vmatprep.subr.bf16.mxu1 %v10669_v35  ;;  %v12394_v54 = vadd.f32 %v9657_v43, %v12242_v52  ;;  %v10676_v0 = vld [vmem:[%s11332_s14 + $0x83c] ss:$12 sps:$4 sm:$0xff]   ;;  %v10680_v52 = vld [vmem:[%s11332_s14 + $0x914] ss:$12 sps:$4 sm:$0xff]  }
 0x24d   : > { %v9678_v28 = vadd.f32 %v12169_v23, %v2486_v51  ;;  %5394 = vmatprep.mubr.bf16.mxu0 %v13202_v14  ;;  %v12399_v15 = vadd.f32 %v9664_v10, %v12248_v62  ;;  %v10671_v23 = vld [vmem:[%s11332_s14 + $0xad4] ss:$12 sps:$4 sm:$0xff]   ;;  %v10685_v20 = vld [vmem:[%s11332_s14 + $0x92c] ss:$12 sps:$4 sm:$0xff]  }
 0x24e   : > { %v12402_v56 = vadd.f32 %v9671_v36, %v12251_v55  ;;  %v10681_v16 = vld [vmem:[%s11332_s14 + $0x854] ss:$12 sps:$4 sm:$0xff]  }
 0x24f   : > { %9365 = vmatpush3.bf16.msra.mxu1 %v10670_v50  ;;  %v12406_v49 = vadd.f32 %v9678_v28, %v12254_v25  ;;  %v10677_v50 = vld [vmem:[%s11332_s14 + $0xaec] ss:$12 sps:$4 sm:$0xff]   ;;  %v10690_v28 = vld [vmem:[%s11332_s14 + $0x944] ss:$0 sps:$4 sm:$0xff]  }
 0x250   : > { %9366 = vmatprep.subr.bf16.mxu1 %v10675_v48  ;;  %v10686_v48 = vld [vmem:[%s11332_s14 + $0x86c] ss:$12 sps:$4 sm:$0xff]  }
 0x251   : > { %v2490_v4 = vpop.f32.mrb[80].mxu1 }
 0x252   : > { %v9685_v62 = vadd.f32 %v12185_v8, %v2490_v4  ;;  %v2492_v35 = vpop.f32.mrb[81].mxu1 }
 0x253   : > { %9367 = vmatpush3.bf16.msra.mxu1 %v10676_v0  ;;  %v9692_v55 = vadd.f32 %v12191_v44, %v2492_v35  ;;  %v2494_v43 = vpop.f32.mrb[82].mxu1  ;;  %v12440_v0 = vld [vmem:[%s11348_s10 + $0x38] ss:$12 sps:$4 sm:$0xff]  }
 0x254   : > { %8754 = vmatmul.mubr.msk.bf16.vlgmr.msra.gmra.mrb[56].mxu0 %vm1012_vm1, %v12409_v29  ;;  %v9699_v25 = vadd.f32 %v12197_v60, %v2494_v43  ;;  %v2496_v10 = vpop.f32.mrb[83].mxu1  ;;  %9368 = vmatprep.subr.bf16.mxu1 %v10680_v52  ;;  %v12422_v8 = vadd.f32 %v9685_v62, %v12267_v12  ;;  %v10684_v60 = vld [vmem:[%s11332_s14 + $0xb08] ss:$12 sps:$4 sm:$0xff]  }
 0x255   : > { %6021 = vmatpush1.bf16.msra.mxu0 %v10671_v23  ;;  %v9706_v44 = vadd.f32 %v12204_v63, %v2496_v10  ;;  %5404 = vmatprep.mubr.bf16.mxu0 %v13202_v14  ;;  %v12428_v36 = vadd.f32 %v9692_v55, %v12270_v26  ;;  %v10682_v63 = vld [vmem:[%s11332_s14 + $0xb04] ss:$12 sps:$4 sm:$0xff]  }
 0x256   : > { %6022 = vmatprep.subr.bf16.mxu0 %v10679_v46  ;;  %v12432_v51 = vadd.f32 %v9699_v25, %v12273_v24  ;;  %v10689_v24 = vld [vmem:[%s11332_s14 + $0xb20] ss:$12 sps:$4 sm:$0xff]   ;;  %v4555_v46 = vsel %vm1025_vm0, %v10690_v28, 0  ;;  %v10716_v55 = vld [vmem:[%s11332_s14 + $0xa10] ss:$12 sps:$4 sm:$0xff]  }
 0x257   : > { %9369 = vmatpush3.bf16.msra.mxu1 %v10681_v16  ;;  %v12436_v12 = vadd.f32 %v9706_v44, %v12276_v13  ;;  %v10693_v16 = vld [vmem:[%s11332_s14 + $0xb38] ss:$12 sps:$4 sm:$0xff]  }
 0x258   : > { %9370 = vmatprep.subr.bf16.mxu1 %v10685_v20  ;;  %v10696_v20 = vld [vmem:[%s11332_s14 + $0xb50] ss:$12 sps:$4 sm:$0xff]  }
 0x259   : > { %6023 = vmatpush1.bf16.msra.mxu0 %v10677_v50  ;;  %v2500_v26 = vpop.f32.mrb[84].mxu1 }
 0x25a   : > { %6024 = vmatprep.subr.bf16.mxu0 %v10684_v60  ;;  %v9713_v52 = vadd.f32 %v12229_v57, %v2500_v26  ;;  %v2502_v23 = vpop.f32.mrb[85].mxu1 }
 0x25b   : > { %9371 = vmatpush3.bf16.msra.mxu1 %v10686_v48  ;;  %v9720_v4 = vadd.f32 %v12235_v41, %v2502_v23  ;;  %v2504_v13 = vpop.f32.mrb[86].mxu1  ;;  %v10687_v41 = vld [vmem:[%s11332_s14 + $0xb1c] ss:$12 sps:$4 sm:$0xff]  }
 0x25c   : > { %v9727_v62 = vadd.f32 %v12239_v11, %v2504_v13  ;;  %v2506_v35 = vpop.f32.mrb[87].mxu1  ;;  %10039 = vmatprep.subr.msk.bf16.mxu1 %vm1025_vm0, %v10690_v28  ;;  %8755 = vmatmul.mubr.msk.bf16.gmra.mrb[60].mxu0 %vm1012_vm1, %v12440_v0  ;;  %v12453_v57 = vadd.f32 %v9713_v52, %v12291_v53  ;;  %v10699_v48 = vld [vmem:[%s11332_s14 + $0xb68] ss:$12 sps:$4 sm:$0xff]   ;;  %v12493_v52 = vld [vmem:[%s11348_s10 + $0x10c] ss:$12 sps:$4 sm:$0xff]  }
 0x25d   : > { %6025 = vmatpush1.bf16.msra.mxu0 %v10682_v63  ;;  %v9734_v43 = vadd.f32 %v12245_v38, %v2506_v35  ;;  %5414 = vmatprep.mubr.bf16.mxu0 %v13202_v14  ;;  %v12459_v11 = vadd.f32 %v9720_v4, %v12293_v32  ;;  %v12471_v38 = vld [vmem:[%s11348_s10 + $0x98] ss:$12 sps:$4 sm:$0xff]   ;;  %v10691_v32 = vld [vmem:[%s11332_s14 + $0xb34] ss:$12 sps:$4 sm:$0xff]   ;;  %v12489_v63 = vld [vmem:[%s11348_s10 + $0xb0] ss:$12 sps:$4 sm:$0xff]  }
 0x25e   : > { %6026 = vmatprep.subr.bf16.mxu0 %v10689_v24  ;;  %4736 = vmatmul.mubr.bf16.vlgmr.msra.gmra.mrb[152].mxu1 %v12030_v34  ;;  %v12464_v25 = vadd.f32 %v9727_v62, %v12296_v33  ;;  %v10702_v24 = vld [vmem:[%s11332_s14 + $0xb80] ss:$12 sps:$4 sm:$0xff]   ;;  %v10705_v35 = vld [vmem:[%s11332_s14 + $0xb98] ss:$12 sps:$4 sm:$0xff]  }
 0x25f   : > { %9587 = vmatpush3.bf16.msra.mxu1 %v4555_v46  ;;  %4743 = vmatprep.mubr.bf16.mxu1 %v12041_v6  ;;  %v12468_v53 = vadd.f32 %v9734_v43, %v12299_v61  ;;  %v10694_v61 = vld [vmem:[%s11332_s14 + $0xb4c] ss:$12 sps:$4 sm:$0xff]   ;;  %v10708_v43 = vld [vmem:[%s11332_s14 + $0xbb0] ss:$12 sps:$4 sm:$0xff]  }
 0x260   : > { %9401 = vmatprep.subr.bf16.mxu1 %v10716_v55  ;;  %v10703_v55 = vld [vmem:[%s11332_s14 + $0xb94] ss:$12 sps:$4 sm:$0xff]  }
 0x261   : > { %6027 = vmatpush1.bf16.msra.mxu0 %v10687_v41  ;;  %v9237_v10 = vpop.f32.mrb[88].mxu1 }
 0x262   : > { %6028 = vmatprep.subr.bf16.mxu0 %v10693_v16  ;;  %v9238_v34 = vpop.f32.mrb[89].mxu1 }
 0x263   : > { %v9239_v33 = vadd.f32 %v9238_v34, %v9237_v10  ;;  %v9240_v50 = vpop.f32.mrb[90].mxu1 }
 0x264   : > { %v9241_v44 = vpop.f32.mrb[91].mxu1  ;;  %8756 = vmatmul.mubr.msk.bf16.gmra.mrb[64].mxu0 %vm1012_vm1, %v12471_v38 }
 0x265   : > { %6029 = vmatpush1.bf16.msra.mxu0 %v10691_v32  ;;  %v12478_v6 = vadd.f32 %v9239_v33, %v12259_v2  ;;  %v9242_v60 = vadd.f32 %v9241_v44, %v9240_v50  ;;  %5424 = vmatprep.mubr.bf16.mxu0 %v13202_v14  ;;  %v10697_v2 = vld [vmem:[%s11332_s14 + $0xb64] ss:$12 sps:$4 sm:$0xff]  }
 0x266   : > { %6030 = vmatprep.subr.bf16.mxu0 %v10696_v20  ;;  %4744 = vmatmul.mubr.bf16.gmra.mrb[156].mxu1 %v12068_v1  ;;  %v10712_v20 = vld [vmem:[%s11332_s14 + $0xbc8] ss:$12 sps:$4 sm:$0xff]   ;;  %v10710_v50 = vld [vmem:[%s11332_s14 + $0xbc4] ss:$12 sps:$4 sm:$0xff]  }
 0x267   : > { %v12485_v28 = vadd.f32 %v9242_v60, %v12264_v9  ;;  %4751 = vmatprep.mubr.bf16.mxu1 %v12073_v18  ;;  %v10700_v9 = vld [vmem:[%s11332_s14 + $0xb7c] ss:$12 sps:$4 sm:$0xff]  }
 0x269   : > { %6031 = vmatpush1.bf16.msra.mxu0 %v10694_v61  ;;  %v9243_v26 = vpop.f32.mrb[92].mxu1  ;;  %v10715_v61 = vld [vmem:[%s11332_s14 + $0xbe0] ss:$12 sps:$4 sm:$0xff]  }
 0x26a   : > { %6032 = vmatprep.subr.bf16.mxu0 %v10699_v48  ;;  %v9244_v23 = vpop.f32.mrb[93].mxu1 }
 0x26b   : > { %v9245_v1 = vadd.f32 %v9244_v23, %v9243_v26  ;;  %v9246_v4 = vpop.f32.mrb[94].mxu1  ;;  %v10722_v23 = vld [vmem:[%s11332_s14 + $0xa28] ss:$12 sps:$4 sm:$0xff]  }
 0x26c   : > { %v9247_v13 = vpop.f32.mrb[95].mxu1  ;;  %8757 = vmatmul.mubr.msk.bf16.gmra.mrb[68].mxu0 %vm1012_vm1, %v12489_v63 }
 0x26d   : > { %6033 = vmatpush1.bf16.msra.mxu0 %v10697_v2  ;;  %v12499_v18 = vadd.f32 %v9245_v1, %v12282_v22  ;;  %v9248_v62 = vadd.f32 %v9247_v13, %v9246_v4  ;;  %6052 = vmatprep.mubr.bf16.mxu0 %v12493_v52  ;;  %v10717_v2 = vld [vmem:[%s11332_s14 + $0x950] ss:$12 sps:$4 sm:$0xff]   ;;  %v10721_v1 = vld [vmem:[%s11332_s14 + $0xbf8] ss:$12 sps:$4 sm:$0xff]   ;;  %v10723_v13 = vld [vmem:[%s11332_s14 + $0x968] ss:$12 sps:$4 sm:$0xff]  }
 0x26e   : > { %6034 = vmatprep.subr.bf16.mxu0 %v10702_v24  ;;  %4752 = vmatmul.mubr.bf16.gmra.mrb[160].mxu1 %v12084_v27 }
 0x26f   : > { %v12506_v46 = vadd.f32 %v9248_v62, %v12288_v7  ;;  %4759 = vmatprep.mubr.bf16.mxu1 %v12094_v30  ;;  %v10706_v7 = vld [vmem:[%s11332_s14 + $0xbac] ss:$12 sps:$4 sm:$0xff]   ;;  %v13209_v30 = vld [vmem:[#allocation4_spill] sm:$0xff]  ;;  %v10726_v62 = vld [vmem:[%s11332_s14 + $0xc10] ss:$12 sps:$4 sm:$0xff]  }
 0x271   : > { %6035 = vmatpush1.bf16.msra.mxu0 %v10700_v9  ;;  %v9249_v41 = vpop.f32.mrb[96].mxu1  ;;  %v10719_v9 = vld [vmem:[%s11332_s14 + $0xbf4] ss:$12 sps:$4 sm:$0xff]  }
 0x272   : > { %6036 = vmatprep.subr.bf16.mxu0 %v10705_v35  ;;  %v9250_v22 = vpop.f32.mrb[97].mxu1  ;;  %v10724_v35 = vld [vmem:[%s11332_s14 + $0xc0c] ss:$12 sps:$4 sm:$0xff]  }
 0x273   : > { %v9251_v16 = vadd.f32 %v9250_v22, %v9249_v41  ;;  %v9252_v32 = vpop.f32.mrb[98].mxu1  ;;  %v10734_v41 = vld [vmem:[%s11332_s14 + $0x998] ss:$12 sps:$4 sm:$0xff]   ;;  %v13211_v22 = vld [vmem:[#allocation6_spill] sm:$0xff] }
 0x274   : > { %v9253_v10 = vpop.f32.mrb[99].mxu1 }
 0x275   : > { %6037 = vmatpush1.bf16.msra.mxu0 %v10703_v55  ;;  %v12512_v27 = vadd.f32 %v9251_v16, %v12302_v19  ;;  %v9254_v34 = vadd.f32 %v9253_v10, %v9252_v32  ;;  %v13210_v55 = vld [vmem:[#allocation5_spill] sm:$0xff]  ;;  %v10730_v16 = vld [vmem:[%s11332_s14 + $0xc24] ss:$12 sps:$4 sm:$0xff]  }
 0x276   : > { %6038 = vmatprep.subr.bf16.mxu0 %v10708_v43  ;;  %4760 = vmatmul.mubr.bf16.gmra.mrb[164].mxu1 %v13209_v30  ;;  %v10738_v43 = vld [vmem:[%s11332_s14 + $0xa70] ss:$12 sps:$4 sm:$0xff]   ;;  %v10737_v32 = vld [vmem:[%s11332_s14 + $0xc40] ss:$12 sps:$4 sm:$0xff]  }
 0x277   : > { %v12518_v33 = vadd.f32 %v9254_v34, %v12308_v37  ;;  %9588 = vmatprep.mubr.msk.bf16.mxu1 %vm1012_vm1, %v12109_v17  ;;  %v10713_v17 = vld [vmem:[%s11332_s14 + $0xbdc] ss:$12 sps:$4 sm:$0xff]  }
 0x278   : > { %v10739_v10 = vld [vmem:[%s11332_s14 + $0x9b0] ss:$12 sps:$4 sm:$0xff]   ;;  %v10744_v34 = vld [vmem:[%s11332_s14 + $0xa88] ss:$12 sps:$4 sm:$0xff]  }
 0x279   : > { %6039 = vmatpush1.bf16.msra.mxu0 %v10706_v7  ;;  %v9255_v19 = vpop.f32.mrb[100].mxu1  ;;  %v8845_v7 = vld [vmem:[%s11332_s14 + $0xc54] sm:$0xff]  ;;  %v10735_v30 = vld [vmem:[%s11332_s14 + $0xc3c] ss:$12 sps:$4 sm:$0xff]  }
 0x27a   : > { %6040 = vmatprep.subr.bf16.mxu0 %v10712_v20  ;;  %v9256_v44 = vpop.f32.mrb[101].mxu1  ;;  %v8908_v20 = vcombine.high %v8845_v7, %v8845_v7 }
 0x27b   : > { %v9257_v60 = vadd.f32 %v9256_v44, %v9255_v19  ;;  %v9258_v48 = vpop.f32.mrb[102].mxu1  ;;  %v10746_v19 = vld [vmem:[%s11332_s14 + $0x9c8] ss:$12 sps:$4 sm:$0xff]  }
 0x27c   : > { %v9259_v26 = vpop.f32.mrb[103].mxu1  ;;  %v12559_v44 = vld [vmem:[%s11348_s10 + $0x108] ss:$12 sps:$4 sm:$0xff]  }
 0x27d   : > { %6041 = vmatpush1.bf16.msra.mxu0 %v10710_v50  ;;  %v12527_v37 = vadd.f32 %v9257_v60, %v12315_v59  ;;  %v9260_v24 = vadd.f32 %v9259_v26, %v9258_v48  ;;  %v10727_v59 = vld [vmem:[%s11332_s14 + $0xa40] ss:$12 sps:$4 sm:$0xff]   ;;  %v8907_v50 = vcombine.low %v8845_v7, %v8845_v7  ;;  %v12563_v48 = vld [vmem:[%s11348_s10 + $0x124] ss:$12 sps:$4 sm:$0xff]  }
 0x27e   : > { %6042 = vmatprep.subr.bf16.mxu0 %v10715_v61  ;;  %9589 = vmatmul.mubr.msk.bf16.vlgmr.msra.gmra.mrb[64].mxu1 %vm1012_vm1, %v12131_v47  ;;  %v10728_v47 = vld [vmem:[%s11332_s14 + $0x980] ss:$12 sps:$4 sm:$0xff]  }
 0x27f   : > { %v12534_v4 = vadd.f32 %v9260_v24, %v12320_v39  ;;  %9402 = vmatpush3.bf16.msra.mxu1 %v10717_v2  ;;  %9592 = vmatprep.mubr.msk.bf16.mxu1 %vm1012_vm1, %v12173_v42  ;;  %v10733_v39 = vld [vmem:[%s11332_s14 + $0xa58] ss:$12 sps:$4 sm:$0xff]   ;;  %v10732_v42 = vld [vmem:[%s11332_s14 + $0xc28] ss:$12 sps:$4 sm:$0xff]   ;;  %v10747_v61 = vld [vmem:[%s11332_s14 + $0xaa0] ss:$12 sps:$4 sm:$0xff]  }
 0x280   : > { %9403 = vmatprep.subr.bf16.mxu1 %v10722_v23  ;;  %v6012_v2 = vsel %vm1025_vm0, %v8907_v50, 0  ;;  %v12612_v7 = vld [vmem:[%s11348_s10 + $0x180] ss:$12 sps:$4 sm:$0xff]  }
 0x281   : > { %6043 = vmatpush1.bf16.msra.mxu0 %v10713_v17  ;;  %v10763_v17 = vld [vmem:[%s11332_s14 + $0xc64] ss:$12 sps:$4 sm:$0xff]  }
 0x282   : > { %6044 = vmatprep.subr.bf16.mxu0 %v10721_v1 }
 0x283   : > { %9404 = vmatpush3.bf16.msra.mxu1 %v10723_v13  ;;  %v10748_v13 = vld [vmem:[%s11332_s14 + $0x9e0] ss:$12 sps:$4 sm:$0xff]  }
 0x284   : > { %9405 = vmatprep.subr.bf16.mxu1 %v10727_v59 }
 0x285   : > { %6045 = vmatpush1.bf16.msra.mxu0 %v10719_v9  ;;  %v10752_v9 = vld [vmem:[%s11332_s14 + $0xab8] ss:$12 sps:$4 sm:$0xff]  }
 0x286   : > { %6046 = vmatprep.subr.bf16.mxu0 %v10726_v62  ;;  %9593 = vmatmul.mubr.msk.bf16.gmra.mrb[68].mxu1 %vm1012_vm1, %v13210_v55 }
 0x287   : > { %9406 = vmatpush3.bf16.msra.mxu1 %v10728_v47  ;;  %5467 = vmatprep.mubr.bf16.mxu1 %v13211_v22  ;;  %v12586_v47 = vld [vmem:[%s11348_s10 + $0x120] ss:$12 sps:$4 sm:$0xff]  }
 0x288   : > { %9407 = vmatprep.subr.bf16.mxu1 %v10733_v39  ;;  %v10754_v39 = vld [vmem:[%s11332_s14 + $0xad0] ss:$0 sps:$4 sm:$0xff]  }
 0x289   : > { %6047 = vmatpush1.bf16.msra.mxu0 %v10724_v35 }
 0x28a   : > { %6048 = vmatprep.subr.bf16.mxu0 %v10732_v42 }
 0x28b   : > { %9408 = vmatpush3.bf16.msra.mxu1 %v10734_v41 }
 0x28c   : > { %9409 = vmatprep.subr.bf16.mxu1 %v10738_v43 }
 0x28d   : > { %6049 = vmatpush1.bf16.msra.mxu0 %v10730_v16  ;;  %v5287_v16 = vsel %vm1025_vm0, %v10754_v39, 0 }
 0x28e   : > { %6050 = vmatprep.subr.bf16.mxu0 %v10737_v32 }
 0x28f   : > { %9410 = vmatpush3.bf16.msra.mxu1 %v10739_v10  ;;  %v13213_v10 = vld [vmem:[#allocation8_spill] sm:$0xff] }
 0x290   : > { %9411 = vmatprep.subr.bf16.mxu1 %v10744_v34  ;;  %v12615_v34 = vld [vmem:[%s11348_s10 + $0x19c] ss:$12 sps:$4 sm:$0xff]  }
 0x291   : > { %6051 = vmatpush1.bf16.msra.mxu0 %v10735_v30  ;;  %v3202_v60 = vpop.f32.mrb[104].mxu1 }
 0x292   : > { %8910 = vmatprep.subr.msk.bf16.mxu0 %vm1025_vm0, %v8908_v20  ;;  %v12568_v26 = vadd.f32 %v12366_v21, %v3202_v60  ;;  %v3204_v23 = vpop.f32.mrb[105].mxu1 }
 0x293   : > { %9412 = vmatpush3.bf16.msra.mxu1 %v10746_v19  ;;  %v12572_v24 = vadd.f32 %v12371_v45, %v3204_v23  ;;  %v3206_v1 = vpop.f32.mrb[106].mxu1  ;;  %v10753_v45 = vld [vmem:[%s11332_s14 + $0x9f8] ss:$12 sps:$4 sm:$0xff]  }
 0x294   : > { %6053 = vmatmul.mubr.bf16.vlgmr.msra.gmra.mrb[56].mxu0 %v12559_v44  ;;  %v12577_v59 = vadd.f32 %v12376_v40, %v3206_v1  ;;  %9413 = vmatprep.subr.bf16.mxu1 %v10747_v61  ;;  %v3208_v21 = vpop.f32.mrb[107].mxu1  ;;  %v12590_v40 = vld [vmem:[%s11348_s10 + $0x184] ss:$12 sps:$4 sm:$0xff]  }
 0x295   : > { %6094 = vmatpush1.bf16.msra.mxu0 %v6012_v2  ;;  %v12581_v62 = vadd.f32 %v12381_v3, %v3208_v21  ;;  %6062 = vmatprep.mubr.bf16.mxu0 %v12563_v48  ;;  %v13214_v2 = vld [vmem:[#allocation9_spill] sm:$0xff] }
 0x296   : > { %6751 = vmatprep.subr.bf16.mxu0 %v10763_v17 }
 0x297   : > { %9414 = vmatpush3.bf16.msra.mxu1 %v10748_v13 }
 0x298   : > { %9415 = vmatprep.subr.bf16.mxu1 %v10752_v9 }
 0x299   : > { %v3212_v35 = vpop.f32.mrb[108].mxu1 }
 0x29a   : > { %v12593_v42 = vadd.f32 %v12394_v54, %v3212_v35  ;;  %v3214_v55 = vpop.f32.mrb[109].mxu1  ;;  %v10774_v54 = vld [vmem:[%s11332_s14 + $0xb9c] ss:$12 sps:$4 sm:$0xff]  }
 0x29b   : > { %9416 = vmatpush3.bf16.msra.mxu1 %v10753_v45  ;;  %v12596_v3 = vadd.f32 %v12399_v15, %v3214_v55  ;;  %v3216_v41 = vpop.f32.mrb[110].mxu1  ;;  %v13212_v15 = vld [vmem:[#allocation7_spill] sm:$0xff] }
 0x29c   : > { %6063 = vmatmul.mubr.bf16.gmra.mrb[60].mxu0 %v12586_v47  ;;  %v12600_v22 = vadd.f32 %v12402_v56, %v3216_v41  ;;  %10040 = vmatprep.subr.msk.bf16.mxu1 %vm1025_vm0, %v10754_v39  ;;  %v3218_v43 = vpop.f32.mrb[111].mxu1  ;;  %v10767_v39 = vld [vmem:[%s11332_s14 + $0xc7c] ss:$12 sps:$4 sm:$0xff]  }
 0x29d   : > { %v12606_v32 = vadd.f32 %v12406_v49, %v3218_v43  ;;  %6072 = vmatprep.mubr.bf16.mxu0 %v12590_v40  ;;  %v10770_v43 = vld [vmem:[%s11332_s14 + $0xc94] ss:$12 sps:$4 sm:$0xff]  }
 0x29e   : > { %5468 = vmatmul.mubr.bf16.vlgmr.msra.gmra.mrb[168].mxu1 %v13212_v15 }
 0x29f   : > { %9597 = vmatpush3.bf16.msra.mxu1 %v5287_v16  ;;  %5475 = vmatprep.mubr.bf16.mxu1 %v13213_v10  ;;  %v10773_v10 = vld [vmem:[%s11332_s14 + $0xcac] ss:$12 sps:$4 sm:$0xff]  }
 0x2a0   : > { %9446 = vmatprep.subr.bf16.mxu1 %v10774_v54  ;;  %v12672_v54 = vld [vmem:[%s11348_s10 + $0x128] ss:$12 sps:$4 sm:$0xff]  }
 0x2a1   : > { %v3222_v56 = vpop.f32.mrb[112].mxu1 }
 0x2a2   : > { %v12618_v30 = vadd.f32 %v12422_v8, %v3222_v56  ;;  %v3224_v20 = vpop.f32.mrb[113].mxu1  ;;  %v13215_v8 = vld [vmem:[#allocation10_spill] sm:$0xff] }
 0x2a3   : > { %v12621_v49 = vadd.f32 %v12428_v36, %v3224_v20  ;;  %v3226_v50 = vpop.f32.mrb[114].mxu1  ;;  %v12634_v36 = vld [vmem:[%s11348_s10 + $0x198] ss:$12 sps:$4 sm:$0xff]  }
 0x2a4   : > { %6073 = vmatmul.mubr.bf16.gmra.mrb[64].mxu0 %v12612_v7  ;;  %v12625_v19 = vadd.f32 %v12432_v51, %v3226_v50  ;;  %v3228_v61 = vpop.f32.mrb[115].mxu1  ;;  %v10775_v50 = vld [vmem:[%s11332_s14 + $0xadc] ss:$12 sps:$4 sm:$0xff]  }
 0x2a5   : > { %v12628_v60 = vadd.f32 %v12436_v12, %v3228_v61  ;;  %6082 = vmatprep.mubr.bf16.mxu0 %v12615_v34 }
 0x2a6   : > { %5476 = vmatmul.mubr.bf16.gmra.mrb[172].mxu1 %v13214_v2 }
 0x2a7   : > { %5483 = vmatprep.mubr.bf16.mxu1 %v13215_v8 }
 0x2a9   : > { %v3232_v23 = vpop.f32.mrb[116].mxu1 }
 0x2aa   : > { %v12637_v17 = vadd.f32 %v12453_v57, %v3232_v23  ;;  %v3234_v51 = vpop.f32.mrb[117].mxu1  ;;  %v12653_v57 = vld [vmem:[%s11348_s10 + $0x110] ss:$12 sps:$4 sm:$0xff]  }
 0x2ab   : > { %v12640_v1 = vadd.f32 %v12459_v11, %v3234_v51  ;;  %v3236_v12 = vpop.f32.mrb[118].mxu1  ;;  %v10761_v11 = vld [vmem:[%s11332_s14 + $0xc60] ss:$12 sps:$4 sm:$0xff]   ;;  %v10778_v23 = vld [vmem:[%s11332_s14 + $0xcc4] ss:$12 sps:$4 sm:$0xff]  }
 0x2ac   : > { %6083 = vmatmul.mubr.bf16.gmra.mrb[68].mxu0 %v12634_v36  ;;  %v12644_v13 = vadd.f32 %v12464_v25, %v3236_v12  ;;  %v3238_v21 = vpop.f32.mrb[119].mxu1  ;;  %v10780_v12 = vld [vmem:[%s11332_s14 + $0xaf4] ss:$12 sps:$4 sm:$0xff]  }
 0x2ad   : > { %v12647_v9 = vadd.f32 %v12468_v53, %v3238_v21  ;;  %6125 = vmatprep.mubr.bf16.mxu0 %v13202_v14  ;;  %v12696_v21 = vld [vmem:[%s11348_s10 + $0x188] ss:$12 sps:$4 sm:$0xff]  }
 0x2ae   : > { %5484 = vmatmul.mubr.bf16.gmra.mrb[176].mxu1 %v12353_v31  ;;  %v10765_v31 = vld [vmem:[%s11332_s14 + $0xc78] ss:$12 sps:$4 sm:$0xff]  }
 0x2af   : > { %5491 = vmatprep.mubr.bf16.mxu1 %v12357_v5 }
 0x2b1   : > { %v9282_v45 = vpop.f32.mrb[120].mxu1 }
 0x2b2   : > { %v9283_v25 = vpop.f32.mrb[121].mxu1 }
 0x2b3   : > { %v9284_v35 = vadd.f32 %v9283_v25, %v9282_v45  ;;  %v9285_v55 = vpop.f32.mrb[122].mxu1 }
 0x2b4   : > { %8911 = vmatmul.mubr.msk.bf16.vlgmr.msra.gmra.mrb[56].mxu0 %vm1012_vm1, %v12653_v57  ;;  %v9286_v53 = vpop.f32.mrb[123].mxu1 }
 0x2b5   : > { %6752 = vmatpush1.bf16.msra.mxu0 %v10761_v11  ;;  %v12661_v5 = vadd.f32 %v12478_v6, %v9284_v35  ;;  %v9287_v41 = vadd.f32 %v9286_v53, %v9285_v55  ;;  %6135 = vmatprep.mubr.bf16.mxu0 %v13202_v14  ;;  %v10768_v6 = vld [vmem:[%s11332_s14 + $0xc90] ss:$12 sps:$4 sm:$0xff]   ;;  %v10776_v11 = vld [vmem:[%s11332_s14 + $0xcc0] ss:$12 sps:$4 sm:$0xff]   ;;  %v10781_v53 = vld [vmem:[%s11332_s14 + $0xcd8] ss:$12 sps:$4 sm:$0xff]  }
 0x2b6   : > { %6753 = vmatprep.subr.bf16.mxu0 %v10767_v39  ;;  %5492 = vmatmul.mubr.bf16.gmra.mrb[180].mxu1 %v12384_v58  ;;  %v10785_v35 = vld [vmem:[%s11332_s14 + $0xb0c] ss:$12 sps:$4 sm:$0xff]   ;;  %v10789_v55 = vld [vmem:[%s11332_s14 + $0xbe4] ss:$12 sps:$4 sm:$0xff]  }
 0x2b7   : > { %v12667_v16 = vadd.f32 %v12485_v28, %v9287_v41  ;;  %9598 = vmatprep.mubr.msk.bf16.mxu1 %vm1012_vm1, %v12409_v29  ;;  %v10779_v28 = vld [vmem:[%s11332_s14 + $0xbb4] ss:$12 sps:$4 sm:$0xff]  }
 0x2b8   : > { %v10771_v29 = vld [vmem:[%s11332_s14 + $0xca8] ss:$12 sps:$4 sm:$0xff]  }
 0x2b9   : > { %6754 = vmatpush1.bf16.msra.mxu0 %v10765_v31  ;;  %v9288_v15 = vpop.f32.mrb[124].mxu1 }
 0x2ba   : > { %6755 = vmatprep.subr.bf16.mxu0 %v10770_v43  ;;  %v9289_v56 = vpop.f32.mrb[125].mxu1  ;;  %v10788_v43 = vld [vmem:[%s11332_s14 + $0xcf4] ss:$12 sps:$4 sm:$0xff]  }
 0x2bb   : > { %v9290_v20 = vadd.f32 %v9289_v56, %v9288_v15  ;;  %v9291_v58 = vpop.f32.mrb[126].mxu1  ;;  %v10790_v15 = vld [vmem:[%s11332_s14 + $0xb24] ss:$12 sps:$4 sm:$0xff]  }
 0x2bc   : > { %v9292_v61 = vpop.f32.mrb[127].mxu1  ;;  %8912 = vmatmul.mubr.msk.bf16.gmra.mrb[60].mxu0 %vm1012_vm1, %v12672_v54  ;;  %v10786_v56 = vld [vmem:[%s11332_s14 + $0xcf0] ss:$12 sps:$4 sm:$0xff]  }
 0x2bd   : > { %6756 = vmatpush1.bf16.msra.mxu0 %v10768_v6  ;;  %v12682_v2 = vadd.f32 %v12499_v18, %v9290_v20  ;;  %v9293_v8 = vadd.f32 %v9292_v61, %v9291_v58  ;;  %6145 = vmatprep.mubr.bf16.mxu0 %v13202_v14  ;;  %v10784_v18 = vld [vmem:[%s11332_s14 + $0xbcc] ss:$12 sps:$4 sm:$0xff]   ;;  %v12723_v58 = vld [vmem:[%s11348_s10 + $0x1fc] ss:$12 sps:$4 sm:$0xff]  }
 0x2be   : > { %6757 = vmatprep.subr.bf16.mxu0 %v10773_v10  ;;  %9599 = vmatmul.mubr.msk.bf16.vlgmr.msra.gmra.mrb[64].mxu1 %vm1012_vm1, %v12440_v0  ;;  %v10783_v0 = vld [vmem:[%s11332_s14 + $0xcdc] ss:$12 sps:$4 sm:$0xff]   ;;  %v12719_v10 = vld [vmem:[%s11348_s10 + $0x1a0] ss:$12 sps:$4 sm:$0xff]  }
 0x2bf   : > { %9447 = vmatpush3.bf16.msra.mxu1 %v10775_v50  ;;  %v12689_v51 = vadd.f32 %v12506_v46, %v9293_v8  ;;  %9602 = vmatprep.mubr.msk.bf16.mxu1 %vm1012_vm1, %v12471_v38  ;;  %v10791_v8 = vld [vmem:[%s11332_s14 + $0xd08] ss:$12 sps:$4 sm:$0xff]  }
 0x2c0   : > { %9448 = vmatprep.subr.bf16.mxu1 %v10779_v28 }
 0x2c1   : > { %6758 = vmatpush1.bf16.msra.mxu0 %v10771_v29  ;;  %v9294_v45 = vpop.f32.mrb[128].mxu1  ;;  %v10799_v29 = vld [vmem:[%s11332_s14 + $0xc14] ss:$12 sps:$4 sm:$0xff]  }
 0x2c2   : > { %6759 = vmatprep.subr.bf16.mxu0 %v10778_v23  ;;  %v9295_v39 = vpop.f32.mrb[129].mxu1 }
 0x2c3   : > { %9449 = vmatpush3.bf16.msra.mxu1 %v10780_v12  ;;  %v9296_v46 = vadd.f32 %v9295_v39, %v9294_v45  ;;  %v9297_v25 = vpop.f32.mrb[130].mxu1  ;;  %v10800_v45 = vld [vmem:[%s11332_s14 + $0xb54] ss:$12 sps:$4 sm:$0xff]   ;;  %v10803_v39 = vld [vmem:[%s11332_s14 + $0xd3c] ss:$12 sps:$4 sm:$0xff]  }
 0x2c4   : > { %9450 = vmatprep.subr.bf16.mxu1 %v10784_v18  ;;  %v9298_v38 = vpop.f32.mrb[131].mxu1  ;;  %8913 = vmatmul.mubr.msk.bf16.gmra.mrb[64].mxu0 %vm1012_vm1, %v12696_v21  ;;  %v10798_v18 = vld [vmem:[%s11332_s14 + $0xd24] ss:$12 sps:$4 sm:$0xff]  }
 0x2c5   : > { %6760 = vmatpush1.bf16.msra.mxu0 %v10776_v11  ;;  %v12706_v31 = vadd.f32 %v12512_v27, %v9296_v46  ;;  %v9299_v41 = vadd.f32 %v9298_v38, %v9297_v25  ;;  %6155 = vmatprep.mubr.bf16.mxu0 %v13202_v14  ;;  %v10794_v27 = vld [vmem:[%s11332_s14 + $0xbfc] ss:$12 sps:$4 sm:$0xff]   ;;  %v10805_v46 = vld [vmem:[%s11332_s14 + $0xb6c] ss:$12 sps:$4 sm:$0xff]   ;;  %v10810_v25 = vld [vmem:[%s11332_s14 + $0xc44] ss:$12 sps:$4 sm:$0xff]  }
 0x2c6   : > { %6761 = vmatprep.subr.bf16.mxu0 %v10783_v0  ;;  %9603 = vmatmul.mubr.msk.bf16.gmra.mrb[68].mxu1 %vm1012_vm1, %v12489_v63  ;;  %v10793_v63 = vld [vmem:[%s11332_s14 + $0xd0c] ss:$12 sps:$4 sm:$0xff]   ;;  %v10811_v38 = vld [vmem:[%s11332_s14 + $0xb84] ss:$12 sps:$4 sm:$0xff]  }
 0x2c7   : > { %9451 = vmatpush3.bf16.msra.mxu1 %v10785_v35  ;;  %v12713_v6 = vadd.f32 %v12518_v33, %v9299_v41  ;;  %6198 = vmatprep.mubr.bf16.mxu1 %v12493_v52  ;;  %v10795_v52 = vld [vmem:[%s11332_s14 + $0xb3c] ss:$12 sps:$4 sm:$0xff]   ;;  %v10804_v0 = vld [vmem:[%s11332_s14 + $0xc2c] ss:$12 sps:$4 sm:$0xff]  }
 0x2c8   : > { %9452 = vmatprep.subr.bf16.mxu1 %v10789_v55  ;;  %v10801_v35 = vld [vmem:[%s11332_s14 + $0xd38] ss:$12 sps:$4 sm:$0xff]   ;;  %v10815_v55 = vld [vmem:[%s11332_s14 + $0xc5c] ss:$0 sps:$4 sm:$0xff]  }
 0x2c9   : > { %6762 = vmatpush1.bf16.msra.mxu0 %v10781_v53  ;;  %v9300_v20 = vpop.f32.mrb[132].mxu1  ;;  %v10807_v53 = vld [vmem:[%s11332_s14 + $0xd50] ss:$12 sps:$4 sm:$0xff]   ;;  %v10814_v41 = vld [vmem:[%s11332_s14 + $0xd6c] ss:$12 sps:$4 sm:$0xff]  }
 0x2ca   : > { %6763 = vmatprep.subr.bf16.mxu0 %v10788_v43  ;;  %v9301_v33 = vpop.f32.mrb[133].mxu1  ;;  %v6018_v43 = vsel %vm1025_vm0, %v10815_v55, 0 }
 0x2cb   : > { %9453 = vmatpush3.bf16.msra.mxu1 %v10790_v15  ;;  %v9302_v50 = vadd.f32 %v9301_v33, %v9300_v20  ;;  %v9303_v61 = vpop.f32.mrb[134].mxu1  ;;  %v10838_v15 = vld [vmem:[%s11332_s14 + $0xd28] ss:$12 sps:$4 sm:$0xff]   ;;  %v10817_v20 = vld [vmem:[%s11332_s14 + $0xd80] ss:$12 sps:$4 sm:$0xff]  }
 0x2cc   : > { %9454 = vmatprep.subr.bf16.mxu1 %v10794_v27  ;;  %v9304_v28 = vpop.f32.mrb[135].mxu1  ;;  %8914 = vmatmul.mubr.msk.bf16.gmra.mrb[68].mxu0 %vm1012_vm1, %v12719_v10  ;;  %v10812_v27 = vld [vmem:[%s11332_s14 + $0xd68] ss:$12 sps:$4 sm:$0xff]   ;;  %v10820_v33 = vld [vmem:[%s11332_s14 + $0xd98] ss:$12 sps:$4 sm:$0xff]  }
 0x2cd   : > { %6764 = vmatpush1.bf16.msra.mxu0 %v10786_v56  ;;  %v12732_v23 = vadd.f32 %v12527_v37, %v9302_v50  ;;  %v9305_v12 = vadd.f32 %v9304_v28, %v9303_v61  ;;  %6783 = vmatprep.mubr.bf16.mxu0 %v12723_v58  ;;  %v10796_v37 = vld [vmem:[%s11332_s14 + $0xd20] ss:$12 sps:$4 sm:$0xff]   ;;  %v10819_v56 = vld [vmem:[%s11332_s14 + $0xd84] ss:$12 sps:$4 sm:$0xff]  }
 0x2ce   : > { %6765 = vmatprep.subr.bf16.mxu0 %v10793_v63  ;;  %v10822_v63 = vld [vmem:[%s11332_s14 + $0xd9c] ss:$12 sps:$4 sm:$0xff]   ;;  %v9002_v61 = vld [vmem:[%s11332_s14 + $0xde0] sm:$0xff] }
 0x2cf   : > { %9455 = vmatpush3.bf16.msra.mxu1 %v10795_v52  ;;  %v12737_v11 = vadd.f32 %v12534_v4, %v9305_v12  ;;  %v10809_v4 = vld [vmem:[%s11332_s14 + $0xd54] ss:$12 sps:$4 sm:$0xff]   ;;  %v10824_v50 = vld [vmem:[%s11332_s14 + $0xdb0] ss:$12 sps:$4 sm:$0xff]   ;;  %v9065_v28 = vcombine.high %v9002_v61, %v9002_v61 }
 0x2d0   : > { %9456 = vmatprep.subr.bf16.mxu1 %v10799_v29  ;;  %v10827_v52 = vld [vmem:[%s11332_s14 + $0xdc8] ss:$12 sps:$4 sm:$0xff]   ;;  %v9064_v29 = vcombine.low %v9002_v61, %v9002_v61 }
 0x2d1   : > { %6766 = vmatpush1.bf16.msra.mxu0 %v10791_v8  ;;  %v12774_v8 = vld [vmem:[%s11348_s10 + $0x214] ss:$12 sps:$4 sm:$0xff]  }
 0x2d2   : > { %6767 = vmatprep.subr.bf16.mxu0 %v10798_v18  ;;  %v6743_v12 = vsel %vm1025_vm0, %v9064_v29, 0  ;;  %v10852_v29 = vld [vmem:[%s11332_s14 + $0xd88] ss:$12 sps:$4 sm:$0xff]  }
 0x2d3   : > { %9457 = vmatpush3.bf16.msra.mxu1 %v10800_v45  ;;  %v12779_v45 = vld [vmem:[%s11332_s14 + $0xde8] ss:$0 sps:$4 sm:$0xff]  }
 0x2d4   : > { %9458 = vmatprep.subr.bf16.mxu1 %v10804_v0 }
 0x2d5   : > { %6768 = vmatpush1.bf16.msra.mxu0 %v10796_v37 }
 0x2d6   : > { %6769 = vmatprep.subr.bf16.mxu0 %v10803_v39 }
 0x2d7   : > { %9459 = vmatpush3.bf16.msra.mxu1 %v10805_v46 }
 0x2d8   : > { %9460 = vmatprep.subr.bf16.mxu1 %v10810_v25  ;;  %v12795_v25 = vld [vmem:[%s11348_s10 + $0x210] ss:$12 sps:$4 sm:$0xff]  }
 0x2d9   : > { %6770 = vmatpush1.bf16.msra.mxu0 %v10801_v35  ;;  %v12798_v35 = vld [vmem:[%s11348_s10 + $0x274] ss:$12 sps:$4 sm:$0xff]  }
 0x2da   : > { %6771 = vmatprep.subr.bf16.mxu0 %v10809_v4 }
 0x2db   : > { %9461 = vmatpush3.bf16.msra.mxu1 %v10811_v38 }
 0x2dc   : > { %10041 = vmatprep.subr.msk.bf16.mxu1 %vm1025_vm0, %v10815_v55  ;;  %v10839_v55 = vld [vmem:[%s11332_s14 + $0xc68] ss:$12 sps:$4 sm:$0xff]  }
 0x2dd   : > { %6772 = vmatpush1.bf16.msra.mxu0 %v10807_v53  ;;  %v10843_v53 = vld [vmem:[%s11332_s14 + $0xd40] ss:$12 sps:$4 sm:$0xff]  }
 0x2de   : > { %6773 = vmatprep.subr.bf16.mxu0 %v10814_v41  ;;  %6199 = vmatmul.mubr.bf16.vlgmr.msra.gmra.mrb[184].mxu1 %v12559_v44  ;;  %v10826_v44 = vld [vmem:[%s11332_s14 + $0xdb4] ss:$12 sps:$4 sm:$0xff]  }
 0x2df   : > { %9607 = vmatpush3.bf16.msra.mxu1 %v6018_v43  ;;  %6206 = vmatprep.mubr.bf16.mxu1 %v12563_v48  ;;  %v10829_v48 = vld [vmem:[%s11332_s14 + $0xdcc] ss:$12 sps:$4 sm:$0xff]  }
 0x2e0   : > { %9491 = vmatprep.subr.bf16.mxu1 %v10838_v15  ;;  %v10844_v15 = vld [vmem:[%s11332_s14 + $0xc80] ss:$12 sps:$4 sm:$0xff]  }
 0x2e1   : > { %6774 = vmatpush1.bf16.msra.mxu0 %v10812_v27  ;;  %v12816_v27 = vld [vmem:[%s11348_s10 + $0x270] ss:$12 sps:$4 sm:$0xff]  }
 0x2e2   : > { %6775 = vmatprep.subr.bf16.mxu0 %v10819_v56 }
 0x2e5   : > { %6776 = vmatpush1.bf16.msra.mxu0 %v10817_v20  ;;  %v12820_v20 = vld [vmem:[%s11348_s10 + $0x28c] ss:$12 sps:$4 sm:$0xff]  }
 0x2e6   : > { %6777 = vmatprep.subr.bf16.mxu0 %v10822_v63  ;;  %6207 = vmatmul.mubr.bf16.gmra.mrb[188].mxu1 %v12586_v47  ;;  %v12771_v47 = vld [vmem:[%s11348_s10 + $0x1f8] ss:$12 sps:$4 sm:$0xff]  }
 0x2e7   : > { %6214 = vmatprep.mubr.bf16.mxu1 %v12590_v40 }
 0x2e9   : > { %6778 = vmatpush1.bf16.msra.mxu0 %v10820_v33 }
 0x2ea   : > { %6779 = vmatprep.subr.bf16.mxu0 %v10826_v44 }
 0x2ed   : > { %6780 = vmatpush1.bf16.msra.mxu0 %v10824_v50 }
 0x2ee   : > { %6781 = vmatprep.subr.bf16.mxu0 %v10829_v48  ;;  %6215 = vmatmul.mubr.bf16.gmra.mrb[192].mxu1 %v12612_v7 }
 0x2ef   : > { %6222 = vmatprep.mubr.bf16.mxu1 %v12615_v34 }
 0x2f1   : > { %6782 = vmatpush1.bf16.msra.mxu0 %v10827_v52  ;;  %v9327_v40 = vpop.f32.mrb[136].mxu1  ;;  %v10851_v52 = vld [vmem:[%s11332_s14 + $0xcb0] ss:$12 sps:$4 sm:$0xff]  }
 0x2f2   : > { %9067 = vmatprep.subr.msk.bf16.mxu0 %vm1025_vm0, %v9065_v28  ;;  %v9328_v18 = vpop.f32.mrb[137].mxu1  ;;  %v10849_v28 = vld [vmem:[%s11348_s10 + $0x288] ss:$12 sps:$4 sm:$0xff]  }
 0x2f3   : > { %v9329_v7 = vadd.f32 %v9328_v18, %v9327_v40  ;;  %v9330_v0 = vpop.f32.mrb[138].mxu1 }
 0x2f4   : > { %6784 = vmatmul.mubr.bf16.vlgmr.msra.gmra.mrb[56].mxu0 %v12771_v47  ;;  %v9331_v34 = vpop.f32.mrb[139].mxu1 }
 0x2f5   : > { %6825 = vmatpush1.bf16.msra.mxu0 %v6743_v12  ;;  %v12783_v37 = vadd.f32 %v12661_v5, %v9329_v7  ;;  %v9332_v39 = vadd.f32 %v9331_v34, %v9330_v0  ;;  %6793 = vmatprep.mubr.bf16.mxu0 %v12774_v8  ;;  %v10855_v7 = vld [vmem:[%s11332_s14 + $0xda0] ss:$12 sps:$4 sm:$0xff]  }
 0x2f6   : > { %6223 = vmatmul.mubr.bf16.gmra.mrb[196].mxu1 %v12634_v36  ;;  %10042 = vmatprep.subr.msk.bf16.mxu0 %vm1025_vm0, %v12779_v45 }
 0x2f7   : > { %v12790_v46 = vadd.f32 %v12667_v16, %v9332_v39  ;;  %9608 = vmatprep.mubr.msk.bf16.mxu1 %vm1012_vm1, %v12653_v57  ;;  %v10857_v39 = vld [vmem:[%s11332_s14 + $0xce0] ss:$12 sps:$4 sm:$0xff]  }
 0x2f9   : > { %v9333_v5 = vpop.f32.mrb[140].mxu1 }
 0x2fa   : > { %v9334_v4 = vpop.f32.mrb[141].mxu1 }
 0x2fb   : > { %v9335_v38 = vadd.f32 %v9334_v4, %v9333_v5  ;;  %v9336_v36 = vpop.f32.mrb[142].mxu1  ;;  %v10854_v5 = vld [vmem:[%s11348_s10 + $0x200] ss:$12 sps:$4 sm:$0xff]   ;;  %v10858_v4 = vld [vmem:[%s11332_s14 + $0xdb8] ss:$12 sps:$4 sm:$0xff]  }
 0x2fc   : > { %6794 = vmatmul.mubr.bf16.gmra.mrb[60].mxu0 %v12795_v25  ;;  %v9337_v16 = vpop.f32.mrb[143].mxu1 }
 0x2fd   : > { %v12804_v41 = vadd.f32 %v12682_v2, %v9335_v38  ;;  %v9338_v57 = vadd.f32 %v9337_v16, %v9336_v36  ;;  %6803 = vmatprep.mubr.bf16.mxu0 %v12798_v35  ;;  %v10845_v2 = vld [vmem:[%s11332_s14 + $0xd58] ss:$12 sps:$4 sm:$0xff]   ;;  %v6749_v38 = vsel %vm1025_vm0, %v12779_v45, 0  ;;  %v10861_v36 = vld [vmem:[%s11332_s14 + $0xdd0] ss:$12 sps:$4 sm:$0xff]  }
 0x2fe   : > { %9609 = vmatmul.mubr.msk.bf16.vlgmr.msra.gmra.mrb[64].mxu1 %vm1012_vm1, %v12672_v54  ;;  %v10863_v45 = vld [vmem:[%s11348_s10 + $0x278] ss:$12 sps:$4 sm:$0xff]   ;;  %v10864_v16 = vld [vmem:[%s11348_s10 + $0x290] ss:$12 sps:$4 sm:$0xff]  }
 0x2ff   : > { %9492 = vmatpush3.bf16.msra.mxu1 %v10839_v55  ;;  %v12810_v43 = vadd.f32 %v12689_v51, %v9338_v57  ;;  %9612 = vmatprep.mubr.msk.bf16.mxu1 %vm1012_vm1, %v12696_v21  ;;  %v10846_v51 = vld [vmem:[%s11332_s14 + $0xc98] ss:$12 sps:$4 sm:$0xff]   ;;  %v10850_v21 = vld [vmem:[%s11332_s14 + $0xd70] ss:$12 sps:$4 sm:$0xff]  }
 0x300   : > { %9493 = vmatprep.subr.bf16.mxu1 %v10843_v53  ;;  %v10860_v55 = vld [vmem:[%s11348_s10 + $0x218] ss:$12 sps:$4 sm:$0xff]  }
 0x301   : > { %v9339_v56 = vpop.f32.mrb[144].mxu1 }
 0x302   : > { %v9340_v63 = vpop.f32.mrb[145].mxu1 }
 0x303   : > { %9494 = vmatpush3.bf16.msra.mxu1 %v10844_v15  ;;  %v9341_v54 = vadd.f32 %v9340_v63, %v9339_v56  ;;  %v9342_v33 = vpop.f32.mrb[146].mxu1 }
 0x304   : > { %6804 = vmatmul.mubr.bf16.gmra.mrb[64].mxu0 %v12816_v27  ;;  %9495 = vmatprep.subr.bf16.mxu1 %v10845_v2  ;;  %v9343_v44 = vpop.f32.mrb[147].mxu1 }
 0x305   : > { %v12826_v50 = vadd.f32 %v12706_v31, %v9341_v54  ;;  %v9344_v48 = vadd.f32 %v9343_v44, %v9342_v33  ;;  %6813 = vmatprep.mubr.bf16.mxu0 %v12820_v20 }
 0x306   : > { %9613 = vmatmul.mubr.msk.bf16.gmra.mrb[68].mxu1 %vm1012_vm1, %v12719_v10  ;;  %v10853_v10 = vld [vmem:[%s11332_s14 + $0xcc8] ss:$12 sps:$4 sm:$0xff]  }
 0x307   : > { %9496 = vmatpush3.bf16.msra.mxu1 %v10846_v51  ;;  %v12832_v61 = vadd.f32 %v12713_v6, %v9344_v48  ;;  %6929 = vmatprep.mubr.bf16.mxu1 %v12723_v58 }
 0x308   : > { %9497 = vmatprep.subr.bf16.mxu1 %v10850_v21 }
 0x309   : > { %v9345_v31 = vpop.f32.mrb[148].mxu1 }
 0x30a   : > { %v9346_v40 = vpop.f32.mrb[149].mxu1 }
 0x30b   : > { %9498 = vmatpush3.bf16.msra.mxu1 %v10851_v52  ;;  %v9347_v12 = vadd.f32 %v9346_v40, %v9345_v31  ;;  %v9348_v18 = vpop.f32.mrb[150].mxu1 }
 0x30c   : > { %6814 = vmatmul.mubr.bf16.gmra.mrb[68].mxu0 %v10849_v28  ;;  %9499 = vmatprep.subr.bf16.mxu1 %v10852_v29  ;;  %v9349_v6 = vpop.f32.mrb[151].mxu1 }
 0x30d   : > { %v12841_v58 = vadd.f32 %v12732_v23, %v9347_v12  ;;  %v9350_v0 = vadd.f32 %v9349_v6, %v9348_v18  ;;  %6856 = vmatprep.mubr.bf16.mxu0 %v13202_v14  ;;  %v10859_v23 = vld [vmem:[%s11332_s14 + $0xcf8] ss:$12 sps:$4 sm:$0xff]  }
 0x30f   : > { %9500 = vmatpush3.bf16.msra.mxu1 %v10853_v10  ;;  %v12845_v34 = vadd.f32 %v12737_v11, %v9350_v0  ;;  %v10862_v11 = vld [vmem:[%s11332_s14 + $0xd10] ss:$12 sps:$4 sm:$0xff]  }
 0x310   : > { %9501 = vmatprep.subr.bf16.mxu1 %v10855_v7 }
 0x313   : > { %9502 = vmatpush3.bf16.msra.mxu1 %v10857_v39 }
 0x314   : > { %9068 = vmatmul.mubr.msk.bf16.vlgmr.msra.gmra.mrb[56].mxu0 %vm1012_vm1, %v10854_v5  ;;  %9503 = vmatprep.subr.bf16.mxu1 %v10858_v4 }
 0x315   : > { %9617 = vmatpush3.bf16.msra.mxu0 %v6749_v38  ;;  %6866 = vmatprep.mubr.bf16.mxu0 %v13202_v14 }
 0x317   : > { %9504 = vmatpush3.bf16.msra.mxu1 %v10859_v23 }
 0x318   : > { %9505 = vmatprep.subr.bf16.mxu1 %v10861_v36 }
 0x31b   : > { %9506 = vmatpush3.bf16.msra.mxu1 %v10862_v11 }
 0x31c   : > { %9069 = vmatmul.mubr.msk.bf16.gmra.mrb[60].mxu0 %vm1012_vm1, %v10860_v55 }
 0x31d   : > { %6876 = vmatprep.mubr.bf16.mxu0 %v13202_v14 }
 0x31e   : > { %6930 = vmatmul.mubr.bf16.vlgmr.msra.gmra.mrb[200].mxu1 %v12771_v47 }
 0x31f   : > { %6937 = vmatprep.mubr.bf16.mxu1 %v12774_v8 }
 0x324   : > { %9070 = vmatmul.mubr.msk.bf16.gmra.mrb[64].mxu0 %vm1012_vm1, %v10863_v45 }
 0x325   : > { %6886 = vmatprep.mubr.bf16.mxu0 %v13202_v14 }
 0x326   : > { %6938 = vmatmul.mubr.bf16.gmra.mrb[204].mxu1 %v12795_v25 }
 0x327   : > { %6945 = vmatprep.mubr.bf16.mxu1 %v12798_v35 }
 0x32c   : > { %9071 = vmatmul.mubr.msk.bf16.gmra.mrb[68].mxu0 %vm1012_vm1, %v10864_v16 }
 0x32d   : > { %9618 = vmatprep.mubr.msk.bf16.mxu0 %vm1012_vm1, %v10854_v5 }
 0x32e   : > { %6946 = vmatmul.mubr.bf16.gmra.mrb[208].mxu1 %v12816_v27 }
 0x32f   : > { %6953 = vmatprep.mubr.bf16.mxu1 %v12820_v20 }
 0x331   : > { %v9372_v47 = vpop.f32.mrb[152].mxu1 }
 0x332   : > { %v9373_v8 = vpop.f32.mrb[153].mxu1 }
 0x333   : > { %v9374_v53 = vadd.f32 %v9373_v8, %v9372_v47  ;;  %v9375_v57 = vpop.f32.mrb[154].mxu1 }
 0x334   : > { %9619 = vmatmul.mubr.msk.bf16.vlgmr.msra.gmra.mrb[72].mxu0 %vm1012_vm1, %v10860_v55  ;;  %v9376_v14 = vpop.f32.mrb[155].mxu1 }
 0x335   : > { %v9754_v25 = vadd.f32 %v12783_v37, %v9374_v53  ;;  %v9377_v15 = vadd.f32 %v9376_v14, %v9375_v57  ;;  %9622 = vmatprep.mubr.msk.bf16.mxu0 %vm1012_vm1, %v10863_v45 }
 0x336   : > { %6954 = vmatmul.mubr.bf16.gmra.mrb[212].mxu1 %v10849_v28 }
 0x337   : > { %v9776_v35 = vadd.f32 %v12790_v46, %v9377_v15 }
 0x339   : > { %v9378_v2 = vpop.f32.mrb[156].mxu1 }
 0x33a   : > { %v9379_v56 = vpop.f32.mrb[157].mxu1 }
 0x33b   : > { %v9380_v27 = vadd.f32 %v9379_v56, %v9378_v2  ;;  %v9381_v63 = vpop.f32.mrb[158].mxu1 }
 0x33c   : > { %9623 = vmatmul.mubr.msk.bf16.gmra.mrb[76].mxu0 %vm1012_vm1, %v10864_v16  ;;  %v9382_v20 = vpop.f32.mrb[159].mxu1 }
 0x33d   : > { %v9743_v54 = vadd.f32 %v12804_v41, %v9380_v27  ;;  %v9383_v33 = vadd.f32 %v9382_v20, %v9381_v63 }
 0x33f   : > { %v9765_v51 = vadd.f32 %v12810_v43, %v9383_v33 }
 0x341   : > { %v9384_v44 = vpop.f32.mrb[160].mxu1 }
 0x342   : > { %v9385_v37 = vpop.f32.mrb[161].mxu1 }
 0x343   : > { %v9386_v21 = vadd.f32 %v9385_v37, %v9384_v44  ;;  %v9387_v48 = vpop.f32.mrb[162].mxu1 }
 0x344   : > { %v9388_v52 = vpop.f32.mrb[163].mxu1 }
 0x345   : > { %v9798_v28 = vadd.f32 %v12826_v50, %v9386_v21  ;;  %v9389_v46 = vadd.f32 %v9388_v52, %v9387_v48 }
 0x347   : > { %v9820_v29 = vadd.f32 %v12832_v61, %v9389_v46 }
 0x349   : > { %v9390_v31 = vpop.f32.mrb[164].mxu1 }
 0x34a   : > { %v9391_v40 = vpop.f32.mrb[165].mxu1 }
 0x34b   : > { %v9392_v12 = vadd.f32 %v9391_v40, %v9390_v31  ;;  %v9393_v18 = vpop.f32.mrb[166].mxu1 }
 0x34c   : > { %v9394_v10 = vpop.f32.mrb[167].mxu1 }
 0x34d   : > { %v9787_v41 = vadd.f32 %v12841_v58, %v9392_v12  ;;  %v9395_v6 = vadd.f32 %v9394_v10, %v9393_v18 }
 0x34f   : > { %v9809_v43 = vadd.f32 %v12845_v34, %v9395_v6 }
 0x371   : > { %v9417_v7 = vpop.f32.mrb[168].mxu1 }
 0x372   : > { %v9418_v0 = vpop.f32.mrb[169].mxu1 }
 0x373   : > { %v9419_v39 = vadd.f32 %v9418_v0, %v9417_v7  ;;  %v9420_v5 = vpop.f32.mrb[170].mxu1 }
 0x374   : > { %v9421_v4 = vpop.f32.mrb[171].mxu1 }
 0x375   : > { %v9755_v38 = vadd.f32 %v9754_v25, %v9419_v39  ;;  %v9422_v50 = vadd.f32 %v9421_v4, %v9420_v5 }
 0x377   : > { %v9777_v23 = vadd.f32 %v9776_v35, %v9422_v50 }
 0x379   : > { %v9423_v36 = vpop.f32.mrb[172].mxu1 }
 0x37a   : > { %v9424_v61 = vpop.f32.mrb[173].mxu1 }
 0x37b   : > { %v9425_v11 = vadd.f32 %v9424_v61, %v9423_v36  ;;  %v9426_v55 = vpop.f32.mrb[174].mxu1 }
 0x37c   : > { %v9427_v45 = vpop.f32.mrb[175].mxu1 }
 0x37d   : > { %v9744_v16 = vadd.f32 %v9743_v54, %v9425_v11  ;;  %v9428_v47 = vadd.f32 %v9427_v45, %v9426_v55 }
 0x37f   : > { %v9766_v8 = vadd.f32 %v9765_v51, %v9428_v47 }
 0x381   : > { %v9429_v58 = vpop.f32.mrb[176].mxu1 }
 0x382   : > { %v9430_v53 = vpop.f32.mrb[177].mxu1 }
 0x383   : > { %v9431_v57 = vadd.f32 %v9430_v53, %v9429_v58  ;;  %v9432_v34 = vpop.f32.mrb[178].mxu1 }
 0x384   : > { %v9433_v14 = vpop.f32.mrb[179].mxu1 }
 0x385   : > { %v9799_v15 = vadd.f32 %v9798_v28, %v9431_v57  ;;  %v9434_v2 = vadd.f32 %v9433_v14, %v9432_v34 }
 0x387   : > { %v9821_v56 = vadd.f32 %v9820_v29, %v9434_v2 }
 0x389   : > { %v9435_v27 = vpop.f32.mrb[180].mxu1 }
 0x38a   : > { %v9436_v25 = vpop.f32.mrb[181].mxu1 }
 0x38b   : > { %v9437_v63 = vadd.f32 %v9436_v25, %v9435_v27  ;;  %v9438_v35 = vpop.f32.mrb[182].mxu1 }
 0x38c   : > { %v9439_v20 = vpop.f32.mrb[183].mxu1 }
 0x38d   : > { %v9788_v33 = vadd.f32 %v9787_v41, %v9437_v63  ;;  %v9440_v44 = vadd.f32 %v9439_v20, %v9438_v35 }
 0x38f   : > { %v9810_v37 = vadd.f32 %v9809_v43, %v9440_v44 }
 0x3b1   : > { %v9462_v21 = vpop.f32.mrb[184].mxu1 }
 0x3b2   : > { %v9463_v54 = vpop.f32.mrb[185].mxu1 }
 0x3b3   : > { %v9464_v48 = vadd.f32 %v9463_v54, %v9462_v21  ;;  %v9465_v51 = vpop.f32.mrb[186].mxu1 }
 0x3b4   : > { %v9466_v52 = vpop.f32.mrb[187].mxu1 }
 0x3b5   : > { %v9467_v46 = vadd.f32 %v9466_v52, %v9465_v51  ;;  %v9756_v31 = vadd.f32 %v9755_v38, %v9464_v48 }
 0x3b7   : > { %v9778_v40 = vadd.f32 %v9777_v23, %v9467_v46 }
 0x3b9   : > { %v9468_v12 = vpop.f32.mrb[188].mxu1 }
 0x3ba   : > { %v9469_v28 = vpop.f32.mrb[189].mxu1 }
 0x3bb   : > { %v9470_v18 = vadd.f32 %v9469_v28, %v9468_v12  ;;  %v9471_v29 = vpop.f32.mrb[190].mxu1 }
 0x3bc   : > { %v9472_v10 = vpop.f32.mrb[191].mxu1 }
 0x3bd   : > { %v9473_v6 = vadd.f32 %v9472_v10, %v9471_v29  ;;  %v9745_v7 = vadd.f32 %v9744_v16, %v9470_v18 }
 0x3bf   : > { %v9767_v0 = vadd.f32 %v9766_v8, %v9473_v6 }
 0x3c1   : > { %v9474_v39 = vpop.f32.mrb[192].mxu1 }
 0x3c2   : > { %v9475_v41 = vpop.f32.mrb[193].mxu1 }
 0x3c3   : > { %v9476_v5 = vadd.f32 %v9475_v41, %v9474_v39  ;;  %v9477_v43 = vpop.f32.mrb[194].mxu1 }
 0x3c4   : > { %v9478_v4 = vpop.f32.mrb[195].mxu1 }
 0x3c5   : > { %v9479_v50 = vadd.f32 %v9478_v4, %v9477_v43  ;;  %v9800_v36 = vadd.f32 %v9799_v15, %v9476_v5 }
 0x3c7   : > { %v9822_v61 = vadd.f32 %v9821_v56, %v9479_v50 }
 0x3c9   : > { %v9480_v11 = vpop.f32.mrb[196].mxu1 }
 0x3ca   : > { %v9481_v55 = vpop.f32.mrb[197].mxu1 }
 0x3cb   : > { %v9482_v38 = vadd.f32 %v9481_v55, %v9480_v11  ;;  %v9483_v23 = vpop.f32.mrb[198].mxu1 }
 0x3cc   : > { %v9484_v45 = vpop.f32.mrb[199].mxu1 }
 0x3cd   : > { %v9485_v47 = vadd.f32 %v9484_v45, %v9483_v23  ;;  %v9789_v58 = vadd.f32 %v9788_v33, %v9482_v38 }
 0x3cf   : > { %v9811_v53 = vadd.f32 %v9810_v37, %v9485_v47 }
 0x3d1   : > { %v9610_v57 = vpop.f32.mrb[64].mxu1 }
 0x3d2   : > { %v9746_v34 = vadd.f32 %v9745_v7, %v9610_v57  ;;  %v6265_v16 = vpop.f32.mrb[65].mxu1 }
 0x3d3   : > { %v9757_v8 = vadd.f32 %v9756_v31, %v6265_v16  ;;  %v9611_v14 = vpop.f32.mrb[66].mxu1 }
 0x3d4   : > { %v9768_v2 = vadd.f32 %v9767_v0, %v9611_v14  ;;  %v6268_v27 = vpop.f32.mrb[67].mxu1 }
 0x3d5   : > { %v9779_v25 = vadd.f32 %v9778_v40, %v6268_v27 }
 0x3d9   : > { %v9614_v63 = vpop.f32.mrb[68].mxu1 }
 0x3da   : > { %v12883_v35 = vadd.f32 %v9789_v58, %v9614_v63  ;;  %v6281_v15 = vpop.f32.mrb[69].mxu1 }
 0x3db   : > { %v9801_v56 = vadd.f32 %v9800_v36, %v6281_v15  ;;  %v9615_v20 = vpop.f32.mrb[70].mxu1 }
 0x3dc   : > { %v12885_v44 = vadd.f32 %v9811_v53, %v9615_v20  ;;  %v6284_v21 = vpop.f32.mrb[71].mxu1 }
 0x3dd   : > { %v9823_v54 = vadd.f32 %v9822_v61, %v6284_v21 }
 0x3e7   : > { %v6858_v33 = vpop.f32.mrb[56].mxu0 }
 0x3e8   : > { %v12888_v37 = vadd.f32 %v12568_v26, %v6858_v33  ;;  %v6860_v48 = vpop.f32.mrb[57].mxu0 }
 0x3e9   : > { %v12891_v51 = vadd.f32 %v12572_v24, %v6860_v48  ;;  %v6862_v52 = vpop.f32.mrb[58].mxu0 }
 0x3ea   : > { %v12894_v46 = vadd.f32 %v12577_v59, %v6862_v52  ;;  %v6864_v31 = vpop.f32.mrb[59].mxu0 }
 0x3eb   : > { %v12897_v40 = vadd.f32 %v12581_v62, %v6864_v31 }
 0x3ef   : > { %v6868_v12 = vpop.f32.mrb[60].mxu0 }
 0x3f0   : > { %v12900_v28 = vadd.f32 %v12593_v42, %v6868_v12  ;;  %v6870_v18 = vpop.f32.mrb[61].mxu0 }
 0x3f1   : > { %v12903_v26 = vadd.f32 %v12596_v3, %v6870_v18  ;;  %v6872_v29 = vpop.f32.mrb[62].mxu0  ;;  %v9507_v10 = vpop.f32.mrb[200].mxu1 }
 0x3f2   : > { %v12906_v24 = vadd.f32 %v12600_v22, %v6872_v29  ;;  %v6874_v6 = vpop.f32.mrb[63].mxu0  ;;  %v9508_v59 = vpop.f32.mrb[201].mxu1 }
 0x3f3   : > { %v12909_v7 = vadd.f32 %v12606_v32, %v6874_v6  ;;  %v9509_v62 = vadd.f32 %v9508_v59, %v9507_v10  ;;  %v9510_v0 = vpop.f32.mrb[202].mxu1 }
 0x3f4   : > { %v9511_v39 = vpop.f32.mrb[203].mxu1 }
 0x3f5   : > { %v9512_v41 = vadd.f32 %v9511_v39, %v9510_v0  ;;  %v9758_v42 = vadd.f32 %v9757_v8, %v9509_v62 }
 0x3f7   : > { %v6878_v5 = vpop.f32.mrb[64].mxu0  ;;  %v9780_v43 = vadd.f32 %v9779_v25, %v9512_v41 }
 0x3f8   : > { %v12912_v3 = vadd.f32 %v12618_v30, %v6878_v5  ;;  %v6880_v4 = vpop.f32.mrb[65].mxu0 }
 0x3f9   : > { %v12915_v50 = vadd.f32 %v12621_v49, %v6880_v4  ;;  %v6882_v22 = vpop.f32.mrb[66].mxu0  ;;  %v9513_v36 = vpop.f32.mrb[204].mxu1 }
 0x3fa   : > { %v12918_v61 = vadd.f32 %v12625_v19, %v6882_v22  ;;  %v6884_v32 = vpop.f32.mrb[67].mxu0  ;;  %v9514_v11 = vpop.f32.mrb[205].mxu1 }
 0x3fb   : > { %v12921_v55 = vadd.f32 %v12628_v60, %v6884_v32  ;;  %v9515_v38 = vadd.f32 %v9514_v11, %v9513_v36  ;;  %v9516_v23 = vpop.f32.mrb[206].mxu1 }
 0x3fc   : > { %v9517_v45 = vpop.f32.mrb[207].mxu1 }
 0x3fd   : > { %v9518_v47 = vadd.f32 %v9517_v45, %v9516_v23  ;;  %v9747_v30 = vadd.f32 %v9746_v34, %v9515_v38 }
 0x3ff   : > { %v6888_v58 = vpop.f32.mrb[68].mxu0  ;;  %v9769_v53 = vadd.f32 %v9768_v2, %v9518_v47 }
 0x400   : > { %v12924_v49 = vadd.f32 %v12637_v17, %v6888_v58  ;;  %v6890_v57 = vpop.f32.mrb[69].mxu0 }
 0x401   : > { %v12927_v16 = vadd.f32 %v12640_v1, %v6890_v57  ;;  %v6892_v19 = vpop.f32.mrb[70].mxu0  ;;  %v9519_v8 = vpop.f32.mrb[208].mxu1 }
 0x402   : > { %13216 = vst [vmem:[#allocation4_spill] sm:$0xff] %v12924_v49  ;;  %v12930_v14 = vadd.f32 %v12644_v13, %v6892_v19  ;;  %v6894_v60 = vpop.f32.mrb[71].mxu0  ;;  %v9520_v27 = vpop.f32.mrb[209].mxu1 }
 0x403   : > { %13217 = vst [vmem:[#allocation5_spill] sm:$0xff] %v12927_v16  ;;  %v12933_v25 = vadd.f32 %v12647_v9, %v6894_v60  ;;  %v9521_v34 = vadd.f32 %v9520_v27, %v9519_v8  ;;  %v9522_v63 = vpop.f32.mrb[210].mxu1 }
 0x404   : > { %13218 = vst [vmem:[#allocation6_spill] sm:$0xff] %v12930_v14  ;;  %v9523_v2 = vpop.f32.mrb[211].mxu1 }
 0x405   : > { %13219 = vst [vmem:[#allocation7_spill] sm:$0xff] %v12933_v25  ;;  %v9524_v15 = vadd.f32 %v9523_v2, %v9522_v63  ;;  %v9802_v17 = vadd.f32 %v9801_v56, %v9521_v34 }
 0x407   : > { %v9620_v20 = vpop.f32.mrb[72].mxu0  ;;  %v9824_v21 = vadd.f32 %v9823_v54, %v9524_v15 }
 0x408   : > { %v12935_v33 = vadd.f32 %v9747_v30, %v9620_v20  ;;  %v6996_v1 = vpop.f32.mrb[73].mxu0 }
 0x409   : > { %v12937_v48 = vadd.f32 %v9758_v42, %v6996_v1  ;;  %v9621_v52 = vpop.f32.mrb[74].mxu0  ;;  %v9525_v13 = vpop.f32.mrb[212].mxu1 }
 0x40a   : > { %v12939_v31 = vadd.f32 %v9769_v53, %v9621_v52  ;;  %v6999_v12 = vpop.f32.mrb[75].mxu0  ;;  %v9526_v18 = vpop.f32.mrb[213].mxu1 }
 0x40b   : > { %v12941_v9 = vadd.f32 %v9780_v43, %v6999_v12  ;;  %v9527_v29 = vadd.f32 %v9526_v18, %v9525_v13  ;;  %v9528_v10 = vpop.f32.mrb[214].mxu1 }
 0x40c   : > { %v9529_v6 = vpop.f32.mrb[215].mxu1 }
 0x40d   : > { %v9530_v56 = vadd.f32 %v9529_v6, %v9528_v10  ;;  %v9791_v54 = vadd.f32 %v12883_v35, %v9527_v29  ;;  %v7055_v35 = vlaneseq (!%p9076_p1) }
 0x40f   : > { %v9624_v59 = vpop.f32.mrb[76].mxu0  ;;  %v9813_v62 = vadd.f32 %v12885_v44, %v9530_v56  ;;  %7054 = sbr.rel (%p9076_p1) target bundleno = 1046 (0x416), region = 58  ;;  %vm7057_vm2 = vcmp.lt.s32.totalorder (!%p9076_p1), %v7055_v35, 264  ;;  %v10963_v44 = vmov (!%p9076_p1), 0.0  }
 0x410   : > { %v12945_v0 = vadd.f32 %v9791_v54, %v9624_v59  ;;  %v7012_v39 = vpop.f32.mrb[77].mxu0  ;;  %7059 = vst.msk [vmem:[%s11338_s28] sm:$0x7] (!%p9076_p1), %vm7057_vm2, %v10963_v44  ;;  %7060 = vst.msk [vmem:[%s11343_s30] sm:$0x7] (!%p9076_p1), %vm7057_vm2, %v10963_v44 }
 0x411   : > { %v12947_v41 = vadd.f32 %v9802_v17, %v7012_v39  ;;  %v9625_v42 = vpop.f32.mrb[78].mxu0 }
 0x412   : > { %13220 = vst [vmem:[#allocation8_spill] sm:$0xff] %v12945_v0  ;;  %v12949_v5 = vadd.f32 %v9813_v62, %v9625_v42  ;;  %v7015_v4 = vpop.f32.mrb[79].mxu0 }
 0x413   : > { %v12951_v43 = vadd.f32 %v9824_v21, %v7015_v4 }
 0x414   : > { %13221 = vst [vmem:[#allocation9_spill] sm:$0xff] %v12949_v5 }
 0x415   : > { %13222 = vst [vmem:[#allocation10_spill] sm:$0xff] %v12951_v43 }
 0x416 PF: > { %v7062_v22 = vadd.f32 %v12894_v46, %v12888_v37  ;;  %v7075_v36 = vadd.f32 %v12897_v40, %v12891_v51  ;;  %v7088_v32 = vsel %vm1012_vm1, %v12937_v48, 0.0  ;;  %v7089_v11 = vsel %vm1012_vm1, %v12941_v9, 0.0  ;;  %s10049_s29 = smul.u32 (%p11058_p9), 12, %s10944_s19 }
 0x417   : > { %v7090_v38 = vadd.f32 %v7089_v11, %v7088_v32  ;;  %v7091_v23 = vsel %vm1012_vm1, %v12935_v33, 0.0  ;;  %v7093_v45 = vsel %vm1012_vm1, %v12939_v31, 0.0  ;;  %v7095_v58 = vsel %vm1012_vm1, %v12947_v41, 0.0  ;;  %s10050_s6 = smul.u32 (%p11058_p9), 48, %s10948_s20 }
 0x418   : > { %v7063_v47 = vadd.f32 %v12900_v28, %v7062_v22  ;;  %v7076_v30 = vadd.f32 %v12903_v26, %v7075_v36  ;;  %v7097_v53 = vsel %vm1012_vm1, %v12951_v43, 0.0  ;;  %v7099_v19 = vsel %vm1012_vm1, %v12945_v0, 0.0 }
 0x419   : > { %v7092_v57 = vadd.f32 %v7091_v23, %v7090_v38  ;;  %v13189_v8 = vlaneseq  ;;  %v7101_v34 = vsel %vm1012_vm1, %v12949_v5, 0.0  ;;  %v10964_v63 = vmov 1966171168   ;;  %s7382_s7 = sadd.s32 (%p11058_p9), %s10050_s6, %s10049_s29 }
 0x41a   : > { %v7064_v60 = vadd.f32 %v12906_v24, %v7063_v47  ;;  %v7077_v27 = vadd.f32 %v12909_v7, %v7076_v30  ;;  %v7114_v2 = vunpack.c.l.s4 %v10964_v63  ;;  %v7143_v20 = vmul.f32 %v12888_v37, %v12888_v37  ;;  %s9095_s11 = sshll.u32 (%p11058_p9), %s7382_s7, 2 }
 0x41b   : > { %v7094_v15 = vadd.f32 %v7093_v45, %v7092_v57  ;;  %v7117_v17 = vshrl.u32 %v13189_v8, 7  ;;  %v7144_v21 = vmul.f32 %v12891_v51, %v12891_v51  ;;  %v7145_v12 = vmul.f32 %v12937_v48, %v12937_v48  ;;  %s7384_s12 = scalar_lea.vmem (%p11058_p9), %s13177_s2, %s9095_s11 }
 0x41c   : > { %v7065_v1 = vadd.f32 %v12912_v3, %v7064_v60  ;;  %v7078_v52 = vadd.f32 %v12915_v50, %v7077_v27  ;;  %v7115_v13 = vunpack.c.0.s8 %v7114_v2  ;;  %v7146_v29 = vmul.f32 %v12894_v46, %v12894_v46 }
 0x41d   : > { %v7096_v18 = vadd.f32 %v7095_v58, %v7094_v15  ;;  %v7147_v10 = vmul.f32 %v12897_v40, %v12897_v40  ;;  %v7148_v6 = vmul.f32 %v12941_v9, %v12941_v9  ;;  %v7149_v62 = vmul.f32 %v12900_v28, %v12900_v28 }
 0x41e   : > { %v7066_v56 = vadd.f32 %v12918_v61, %v7065_v1  ;;  %v7079_v54 = vadd.f32 %v12921_v55, %v7078_v52  ;;  %v13000_v59 = vsub.s32 %v7115_v13, %v7117_v17  ;;  %v7150_v42 = vmul.f32 %v12903_v26, %v12903_v26 }
 0x41f   : > { %v7098_v39 = vadd.f32 %v7097_v53, %v7096_v18  ;;  %v7151_v4 = vmul.f32 %v12935_v33, %v12935_v33  ;;  %v7152_v35 = vmul.f32 %v12906_v24, %v12906_v24  ;;  %v7153_v36 = vmul.f32 %v12909_v7, %v12909_v7 }
 0x420   : > { %v7067_v44 = vadd.f32 %v12924_v49, %v7066_v56  ;;  %v7080_v22 = vadd.f32 %v12927_v16, %v7079_v54  ;;  %v7154_v32 = vmul.f32 %v12939_v31, %v12939_v31  ;;  %v7155_v38 = vmul.f32 %v12912_v3, %v12912_v3 }
 0x421   : > { %v7100_v11 = vadd.f32 %v7099_v19, %v7098_v39  ;;  %v7156_v23 = vmul.f32 %v12915_v50, %v12915_v50  ;;  %v7157_v45 = vmul.f32 %v12947_v41, %v12947_v41  ;;  %v7158_v58 = vmul.f32 %v12918_v61, %v12918_v61 }
 0x422   : > { %v7068_v47 = vadd.f32 %v12930_v14, %v7067_v44  ;;  %v7081_v30 = vadd.f32 %v12933_v25, %v7080_v22  ;;  %v7159_v53 = vmul.f32 %v12921_v55, %v12921_v55  ;;  %v7160_v19 = vmul.f32 %v12951_v43, %v12951_v43 }
 0x423   : > { %v7102_v57 = vadd.f32 %v7101_v34, %v7100_v11  ;;  %v7161_v60 = vmul.f32 %v12924_v49, %v12924_v49  ;;  %v7162_v27 = vmul.f32 %v12927_v16, %v12927_v16  ;;  %v7163_v15 = vmul.f32 %v12945_v0, %v12945_v0 }
 0x424   : > { %v7069_v63 = vrot.slane %v7068_v47, 4  ;;  %v7082_v2 = vrot.slane %v7081_v30, 4  ;;  %v7164_v17 = vmul.f32 %v12930_v14, %v12930_v14  ;;  %v7165_v34 = vmul.f32 %v12933_v25, %v12933_v25 }
 0x425   : > { %v7103_v1 = vrot.slane %v7102_v57, 4  ;;  %v7166_v52 = vmul.f32 %v12949_v5, %v12949_v5  ;;  %v7167_v13 = vadd.f32 %v7146_v29, %v7143_v20  ;;  %v7180_v54 = vadd.f32 %v7147_v10, %v7144_v21 }
 0x426   : > { %v7070_v18 = vadd.f32 %v7069_v63, %v7068_v47  ;;  %v7083_v56 = vadd.f32 %v7082_v2, %v7081_v30  ;;  %v7193_v39 = vsel %vm1012_vm1, %v7145_v12, 0.0  ;;  %v7194_v11 = vsel %vm1012_vm1, %v7148_v6, 0.0 }
 0x427   : > { %v7104_v44 = vadd.f32 %v7103_v1, %v7102_v57  ;;  %v7168_v22 = vadd.f32 %v7167_v13, %v7149_v62  ;;  %v7196_v8 = vsel %vm1012_vm1, %v7151_v4, 0.0  ;;  %v7181_v16 = vadd.f32 %v7180_v54, %v7150_v42  ;;  %v7061_v1 = vld [vmem:[%s11338_s28] sm:$0x7] }
 0x428   : > { %v7071_v14 = vrot.slane %v7070_v18, 2  ;;  %v7084_v0 = vrot.slane %v7083_v56, 2  ;;  %v7195_v49 = vadd.f32 %v7194_v11, %v7193_v39  ;;  %v7198_v5 = vsel %vm1012_vm1, %v7154_v32, 0.0 }
 0x429   : > { %v7105_v25 = vrot.slane %v7104_v44, 2  ;;  %v7169_v43 = vadd.f32 %v7168_v22, %v7152_v35  ;;  %v7200_v20 = vsel %vm1012_vm1, %v7157_v45, 0.0  ;;  %v7182_v10 = vadd.f32 %v7181_v16, %v7153_v36  ;;  %v13231_v22 = vld [vmem:[#allocation7_spill] sm:$0xff] }
 0x42a   : > { %v7072_v29 = vadd.f32 %v7071_v14, %v7070_v18  ;;  %v7085_v21 = vadd.f32 %v7084_v0, %v7083_v56  ;;  %v7197_v12 = vadd.f32 %v7196_v8, %v7195_v49  ;;  %v7202_v6 = vsel %vm1012_vm1, %v7160_v19, 0.0  ;;  %v13226_v56 = vld [vmem:[#allocation8_spill] sm:$0xff] }
 0x42b   : > { %v7106_v47 = vadd.f32 %v7105_v25, %v7104_v44  ;;  %v7170_v62 = vadd.f32 %v7169_v43, %v7155_v38  ;;  %v7204_v4 = vsel %vm1012_vm1, %v7163_v15, 0.0  ;;  %v7183_v57 = vadd.f32 %v7182_v10, %v7156_v23  ;;  %v13230_v44 = vld [vmem:[#allocation6_spill] sm:$0xff] }
 0x42c   : > { %v7073_v30 = vrot.slane %v7072_v29, 1  ;;  %v7086_v42 = vrot.slane %v7085_v21, 1  ;;  %v7199_v63 = vadd.f32 %v7198_v5, %v7197_v12  ;;  %v7206_v32 = vsel %vm1012_vm1, %v7166_v52, 0.0 }
 0x42d   : > { %v7107_v35 = vrot.slane %v7106_v47, 1  ;;  %v7171_v2 = vadd.f32 %v7170_v62, %v7158_v58  ;;  %v9115_v14 = vpack.c.bf16 %v12891_v51, %v12888_v37  ;;  %v7184_v25 = vadd.f32 %v7183_v57, %v7159_v53 }
 0x42e   : > { %v7074_v49 = vadd.f32 %v7073_v30, %v7072_v29  ;;  %v7087_v16 = vadd.f32 %v7086_v42, %v7085_v21  ;;  %v7201_v0 = vadd.f32 %v7200_v20, %v7199_v63  ;;  %v9116_v36 = vpack.c.bf16 %v12937_v48, %v12937_v48  ;;  %v13232_v20 = vld [vmem:[#allocation9_spill] sm:$0xff] }
 0x42f   : > { %v7108_v43 = vadd.f32 %v7107_v35, %v7106_v47  ;;  %v7172_v8 = vadd.f32 %v7171_v2, %v7161_v60  ;;  %7347 = vst [vmem:[%s12954_s0] sm:$0xff] %v9115_v14  ;;  %vm7348_vm3 = vcmask 60416   ;;  %v7185_v38 = vadd.f32 %v7184_v25, %v7162_v27  ;;  %v7142_v25 = vld [vmem:[%s11343_s30] sm:$0x7] }
 0x430   : > { %v7112_v5 = vcombine.low %v7074_v49, %v7087_v16  ;;  %v7203_v23 = vadd.f32 %v7202_v6, %v7201_v0  ;;  %v9117_v37 = vpack.c.bf16 %v12897_v40, %v12894_v46  ;;  %7349 = vst.msk [vmem:[%s12954_s0 + $0x8] sm:$0xf] %vm7348_vm3, %v9116_v36  ;;  %v9118_v58 = vpack.c.bf16 %v12941_v9, %v12941_v9 }
 0x431   : > { %v7126_v51 = vrot.slane %v7108_v43, %v13000_v59  ;;  %v7173_v45 = vadd.f32 %v7172_v8, %v7164_v17  ;;  %v9119_v48 = vpack.c.bf16 %v12903_v26, %v12900_v28  ;;  %v7186_v19 = vadd.f32 %v7185_v38, %v7165_v34 }
 0x432   : > { %v7119_v53 = vrot.slane %v7112_v5, %v13000_v59  ;;  %v7205_v60 = vadd.f32 %v7204_v4, %v7203_v23  ;;  %7350 = vst [vmem:[%s12954_s0 + $0xc] sm:$0xff] %v9117_v37  ;;  %v9120_v46 = vpack.c.bf16 %v12935_v33, %v12935_v33  ;;  %7351 = vst.msk [vmem:[%s12954_s0 + $0x14] sm:$0xf] %vm7348_vm3, %v9118_v58 }
 0x433   : > { %v7174_v40 = vrot.slane %v7173_v45, 4  ;;  %7352 = vst [vmem:[%s12954_s0 + $0x18] sm:$0xff] %v9119_v48  ;;  %v9121_v9 = vpack.c.bf16 %v12909_v7, %v12906_v24  ;;  %v9122_v28 = vpack.c.bf16 %v12939_v31, %v12939_v31  ;;  %v9123_v26 = vpack.c.bf16 %v12915_v50, %v12912_v3  ;;  %v13223_v7 = vld [vmem:[#allocation10_spill] sm:$0xff]  ;;  %v13224_v50 = vld [vmem:[#allocation4_spill] sm:$0xff]  ;;  %v13225_v31 = vld [vmem:[#allocation5_spill] sm:$0xff] }
 0x434   : > { %v7127_v27 = vcombine.low %v7119_v53, %v7126_v51  ;;  %v7187_v15 = vrot.slane %v7186_v19, 4  ;;  %v7207_v17 = vadd.f32 %v7206_v32, %v7205_v60  ;;  %7353 = vst.msk [vmem:[%s12954_s0 + $0x20] sm:$0xf] %vm7348_vm3, %v9120_v46  ;;  %v9124_v33 = vpack.c.bf16 %v12947_v41, %v12947_v41 }
 0x435   : > { %v7175_v34 = vadd.f32 %v7174_v40, %v7173_v45  ;;  %7354 = vst [vmem:[%s12954_s0 + $0x24] sm:$0xff] %v9121_v9  ;;  %7355 = vst.msk [vmem:[%s12954_s0 + $0x2c] sm:$0xf] %vm7348_vm3, %v9122_v28  ;;  %v9125_v24 = vpack.c.bf16 %v12921_v55, %v12918_v61  ;;  %v9126_v3 = vpack.c.bf16 %v13223_v7, %v13223_v7  ;;  %v13227_v61 = vlaneseq }
 0x436   : > { %7356 = vst [vmem:[%s12954_s0 + $0x30] sm:$0xff] %v9123_v26  ;;  %v9127_v52 = vpack.c.bf16 %v13225_v31, %v13224_v50  ;;  %v7134_v41 = vrot.slane %v7127_v27, %v13000_v59  ;;  %v7188_v13 = vadd.f32 %v7187_v15, %v7186_v19  ;;  %v7208_v18 = vrot.slane %v7207_v17, 4  ;;  %7357 = vst.msk [vmem:[%s12954_s0 + $0x38] sm:$0xf] %vm7348_vm3, %v9124_v33 }
 0x437   : > { %v9128_v54 = vpack.c.bf16 %v13226_v56, %v13226_v56  ;;  %vm13098_vm4 = vcmp.lt.s32.totalorder %v13227_v61, 264  ;;  %v7176_v39 = vrot.slane %v7175_v34, 2  ;;  %7358 = vst [vmem:[%s12954_s0 + $0x3c] sm:$0xff] %v9125_v24  ;;  %7359 = vst.msk [vmem:[%s12954_s0 + $0x44] sm:$0xf] %vm7348_vm3, %v9126_v3  ;;  %v9129_v11 = vpack.c.bf16 %v13231_v22, %v13230_v44 }
 0x438   : > { %7360 = vst [vmem:[%s12954_s0 + $0x48] sm:$0xff] %v9127_v52  ;;  %v9130_v29 = vpack.c.bf16 %v13232_v20, %v13232_v20  ;;  %v7136_v21 = vadd.f32 %v7134_v41, %v7061_v1  ;;  %v7189_v10 = vrot.slane %v7188_v13, 2  ;;  %v7209_v12 = vadd.f32 %v7208_v18, %v7207_v17  ;;  %v9096_v45 = vld [vmem:[%s12954_s0 + $0x8] sm:$0xf] (%p11058_p9) }
 0x439   : > { %7361 = vst.msk [vmem:[%s12954_s0 + $0x50] sm:$0xf] %vm7348_vm3, %v9128_v54  ;;  %v7177_v47 = vadd.f32 %v7176_v39, %v7175_v34  ;;  %7362 = vst [vmem:[%s12954_s0 + $0x54] sm:$0xff] %v9129_v11  ;;  %v7401_v8 = vld [vmem:[%s12954_s0 + $0xc] sm:$0xff] (%p11058_p9)  ;;  %v9098_v58 = vld [vmem:[%s12954_s0 + $0x14] sm:$0xf] (%p11058_p9) }
 0x43a   : > { %7363 = vst.msk [vmem:[%s12954_s0 + $0x5c] sm:$0xf] %vm7348_vm3, %v9130_v29  ;;  %v7190_v62 = vadd.f32 %v7189_v10, %v7188_v13  ;;  %v7210_v6 = vrot.slane %v7209_v12, 2  ;;  %v7403_v36 = vld [vmem:[%s12954_s0 + $0x18] sm:$0xff] (%p11058_p9)  ;;  %7402 = vst [vmem:[%s7384_s12 + $0xc] sm:$0xff] (%p11058_p9), %v7401_v8 }
 0x43b   : > { %7141 = vst.msk [vmem:[%s11338_s28] sm:$0x7] %vm13098_vm4, %v7136_v21  ;;  %v7178_v4 = vrot.slane %v7177_v47, 1  ;;  %v9100_v48 = vld [vmem:[%s12954_s0 + $0x20] sm:$0xf] (%p11058_p9)  ;;  %7404 = vst [vmem:[%s7384_s12 + $0x18] sm:$0xff] (%p11058_p9), %v7403_v36 }
 0x43c   : > { %v7191_v30 = vrot.slane %v7190_v62, 1  ;;  %v7211_v42 = vadd.f32 %v7210_v6, %v7209_v12  ;;  %v7405_v5 = vld [vmem:[%s12954_s0 + $0x24] sm:$0xff] (%p11058_p9)  ;;  %v9102_v53 = vld [vmem:[%s12954_s0 + $0x2c] sm:$0xf] (%p11058_p9)  ;;  %9097 = vst [vmem:[%s7384_s12 + $0x8] sm:$0xf] (%p11058_p9), %v9096_v45 }
 0x43d   : > { %v7179_v57 = vadd.f32 %v7178_v4, %v7177_v47  ;;  %v7407_v38 = vld [vmem:[%s12954_s0 + $0x30] sm:$0xff] (%p11058_p9)  ;;  %v9104_v19 = vld [vmem:[%s12954_s0 + $0x38] sm:$0xf] (%p11058_p9)  ;;  %7406 = vst [vmem:[%s7384_s12 + $0x24] sm:$0xff] (%p11058_p9), %v7405_v5  ;;  %9099 = vst [vmem:[%s7384_s12 + $0x14] sm:$0xf] (%p11058_p9), %v9098_v58 }
 0x43e   : > { %v7192_v63 = vadd.f32 %v7191_v30, %v7190_v62  ;;  %v7212_v35 = vrot.slane %v7211_v42, 1  ;;  %v7409_v23 = vld [vmem:[%s12954_s0 + $0x3c] sm:$0xff] (%p11058_p9)  ;;  %v9106_v60 = vld [vmem:[%s12954_s0 + $0x44] sm:$0xf] (%p11058_p9)  ;;  %7408 = vst [vmem:[%s7384_s12 + $0x60] sm:$0xff] (%p11058_p9), %v7407_v38 }
 0x43f   : > { %v7411_v37 = vld [vmem:[%s12954_s0 + $0x48] sm:$0xff] (%p11058_p9)  ;;  %7410 = vst [vmem:[%s7384_s12 + $0x6c] sm:$0xff] (%p11058_p9), %v7409_v23  ;;  %9101 = vst [vmem:[%s7384_s12 + $0x20] sm:$0xf] (%p11058_p9), %v9100_v48 }
 0x440   : > { %v7213_v2 = vadd.f32 %v7212_v35, %v7211_v42  ;;  %v7217_v32 = vcombine.low %v7179_v57, %v7192_v63  ;;  %v7413_v51 = vld [vmem:[%s12954_s0 + $0x54] sm:$0xff] (%p11058_p9)  ;;  %v9108_v46 = vld [vmem:[%s12954_s0 + $0x50] sm:$0xf] (%p11058_p9)  ;;  %7412 = vst [vmem:[%s7384_s12 + $0x78] sm:$0xff] (%p11058_p9), %v7411_v37  ;;  %9103 = vst [vmem:[%s7384_s12 + $0x2c] sm:$0xf] (%p11058_p9), %v9102_v53 }
 0x441   : > { %v9110_v40 = vld [vmem:[%s12954_s0 + $0x5c] sm:$0xf] (%p11058_p9)  ;;  %7414 = vst [vmem:[%s7384_s12 + $0x84] sm:$0xff] (%p11058_p9), %v7413_v51  ;;  %9105 = vst [vmem:[%s7384_s12 + $0x68] sm:$0xf] (%p11058_p9), %v9104_v19 }
 0x442   : > { %v7224_v14 = vrot.slane %v7217_v32, %v13000_v59  ;;  %v7231_v49 = vrot.slane %v7213_v2, %v13000_v59  ;;  %9107 = vst [vmem:[%s7384_s12 + $0x74] sm:$0xf] (%p11058_p9), %v9106_v60  ;;  %9109 = vst [vmem:[%s7384_s12 + $0x80] sm:$0xf] (%p11058_p9), %v9108_v46 }
 0x443   : > { %9111 = vst [vmem:[%s7384_s12 + $0x8c] sm:$0xf] (%p11058_p9), %v9110_v40 }
 0x444   : > { %v7232_v16 = vcombine.low %v7224_v14, %v7231_v49  ;;  %7378 = sbr.rel (!%p11058_p9) target bundleno = 1099 (0x44b), region = 62 }
 0x446   : > { %v7239_v0 = vrot.slane %v7232_v16, %v13000_v59  ;;  %v7399_v59 = vld [vmem:[%s12954_s0] sm:$0xff] (%p11058_p9) }
 0x447   : > { %7400 = vst [vmem:[%s7384_s12] sm:$0xff] (%p11058_p9), %v7399_v59 }
 0x448   : > { %v7241_v43 = vadd.f32 %v7239_v0, %v7142_v25 }
 0x44a   : > { %7242 = vst.msk [vmem:[%s11343_s30] sm:$0x7] %vm13098_vm4, %v7241_v43 }
 0x44b PF: > { %s15_s23 = sadd.s32 1, %s10960_s23   ;;  %s13233_s15 = smov %s10932_s16 }
 0x44c   : > { %p12_p2 = scmp.ge.s32.totalorder %s15_s23, 6   ;;  %s13234_s16 = smov %s11066_s9 }
 0x44d   : > { %s13235_s17 = smov %s10940_s18  ;;  %s13236_s18 = smov %s11063_s8 }
 0x44e   : > { %s13237_s19 = smov %s10952_s21  ;;  %s13238_s20 = smov %s10956_s22 }
 0x44f   : > { %s13239_s21 = smov %s13242_s24  ;;  %s13240_s22 = smov %s13246_s25 }
 0x450   :  { %14 = sbr.rel (!%p12_p2) target bundleno = 7 (0x7), region = 175 }

</bundles_post_ra>
